<compile_context>
chip_gen: v5e
topology: v5e:2x2
jax: 0.10.0
libtpu: 0.0.40
codegen_flags: <defaults>
</compile_context>

<pallas_src>
import math

import numpy as np

import jax
import jax.numpy as jnp
from jax.experimental import pallas as pl
from jax.experimental.pallas import tpu as pltpu

LEAKY_SLOPE = 0.2
BN_EPS = 1e-5

IMG_H = 32
IMG_W = 32
# (W_in, Cin, Cout) per conv block; spatial halves every block.
_LAYER_DIMS = [(32, 1, 16), (16, 16, 32), (8, 32, 64), (4, 64, 128)]
_LANES = 256  # W_out * C_out of every block output (16*16 = 8*32 = 4*64 = 2*128)


# --------------------------------------------------------------------------
# In-kernel helpers
# --------------------------------------------------------------------------
def _conv_step(a, m0, m1, m2, bias_row, scale_row, shift_row):
    """Conv3x3(stride2,pad1) + bias + LeakyReLU(0.2) + folded BN on one activation.

    a        : (H, TB, W*Cin) f32 value (H even), lane packing = w*Cin + ci
    m0,m1,m2 : (W*Cin, OW*Cout) bf16 banded weight matrices for kh = 0, 1, 2
    bias/scale/shift_row : (1, OW*Cout) f32, per-channel values tiled along lanes
    returns  : (OH, TB, OW*Cout) f32
    """
    H, TB, WC = a.shape
    OH = H // 2
    N = m0.shape[-1]

    # Row taps for kh=0,1,2: input rows 2*oh-1+kh.  Only the top pad row is ever read.
    av = a.reshape(OH, 2, TB, WC)                      # split H -> (oh, parity), free
    a_even = av[:, 0]                                  # rows 0,2,...  -> kh=1 taps
    a_odd = av[:, 1]                                   # rows 1,3,...  -> kh=2 taps
    zrow = jnp.zeros((1, TB, WC), jnp.float32)
    t0 = jnp.concatenate([zrow, a_odd[:OH - 1]], axis=0)   # rows -1,1,... -> kh=0 taps

    def _mm(tap, m):
        lhs = tap.reshape(OH * TB, WC).astype(jnp.bfloat16)
        return jnp.dot(lhs, m, preferred_element_type=jnp.float32)

    acc = _mm(t0, m0) + _mm(a_even, m1) + _mm(a_odd, m2)    # (OH*TB, N) f32

    y = acc + bias_row
    y = jnp.where(y >= 0.0, y, LEAKY_SLOPE * y)        # LeakyReLU; Dropout2d(eval)=id
    y = y * scale_row + shift_row                      # folded BatchNorm (eval) / identity
    return y.reshape(OH, TB, N)


def _disc_kernel(x_ref, m1_ref, m234_ref, c_ref, o_ref):
    """Whole Discriminator forward for one batch chunk (everything VMEM-resident)."""
    a = x_ref[...].astype(jnp.float32)                 # (32, TB, 32)

    # Block 1 (no BN: scale=1, shift=0 rows in the packed constants).
    a = _conv_step(a, m1_ref[0], m1_ref[1], m1_ref[2],
                   c_ref[0:1, :], c_ref[1:2, :], c_ref[2:3, :])

    # Blocks 2-4 (BN folded into scale/shift rows).
    for li in range(3):
        r = 3 + 3 * li
        a = _conv_step(a, m234_ref[3 * li], m234_ref[3 * li + 1], m234_ref[3 * li + 2],
                       c_ref[r:r + 1, :], c_ref[r + 1:r + 2, :], c_ref[r + 2:r + 3, :])

    # adv head: Linear(512 -> 1) + Sigmoid.  a is (2, TB, 256) with lanes = ow*128 + c;
    # rows 12/13 of the constants hold the adv weight pre-permuted from PyTorch's NCHW
    # flatten order (c*4 + oh*2 + ow), row 14 holds the bias.
    z = jnp.sum(a[0] * c_ref[12:13, :], axis=-1, keepdims=True)
    z = z + jnp.sum(a[1] * c_ref[13:14, :], axis=-1, keepdims=True)
    z = z + c_ref[14:15, 0:1]
    o_ref[...] = (1.0 / (1.0 + jnp.exp(-z))).astype(o_ref.dtype)


# --------------------------------------------------------------------------
# One-time host-side parameter prep (hoisted out of the forward)
# --------------------------------------------------------------------------
def _band_matrix(w_conv, kh, w_in):
    """(W_in*Cin, OW*Cout) matrix so that a row GEMM == 1-D conv (k=3, s=2, p=1) along W.

    M[w*Cin + ci, ow*Cout + co] = w_conv[co, ci, kh, kw]  with kw = w - (2*ow - 1),
    zero outside 0 <= kw <= 2 (this also absorbs the left/right column padding).
    """
    cout, cin = w_conv.shape[:2]
    ow_n = w_in // 2
    m = np.zeros((w_in * cin, ow_n * cout), np.float32)
    for ow in range(ow_n):
        for kw in range(3):
            w = 2 * ow - 1 + kw
            if 0 <= w < w_in:
                m[w * cin:(w + 1) * cin, ow * cout:(ow + 1) * cout] = w_conv[:, :, kh, kw].T
    return m


def precompute_kernel_params(p):
    """Band weight matrices (bf16), folded BN, packed epilogue constants.  Run once."""
    pn = {k: np.asarray(v, np.float32) for k, v in p.items()}

    m1 = np.stack([_band_matrix(pn["w1"], kh, 32) for kh in range(3)])          # (3,32,256)
    m234 = np.stack([_band_matrix(pn[f"w{li}"], kh, _LAYER_DIMS[li - 1][0])
                     for li in (2, 3, 4) for kh in range(3)])                    # (9,256,256)

    const = np.zeros((16, _LANES), np.float32)
    for idx, li in enumerate((1, 2, 3, 4)):
        w_in, _, cout = _LAYER_DIMS[li - 1]
        ow_n = w_in // 2
        bias = pn[f"b{li}"]
        if li == 1:
            scale = np.ones((cout,), np.float32)
            shift = np.zeros((cout,), np.float32)
        else:  # BatchNorm (eval) folded to a per-channel FMA
            scale = pn[f"g{li}"] / np.sqrt(pn[f"v{li}"] + BN_EPS)
            shift = pn[f"be{li}"] - pn[f"m{li}"] * scale
        r = 3 * idx
        const[r + 0] = np.tile(bias, ow_n)      # lane = ow*Cout + co
        const[r + 1] = np.tile(scale, ow_n)
        const[r + 2] = np.tile(shift, ow_n)

    # adv weight: PyTorch flatten index c*4 + oh*2 + ow  ->  our (oh, ow*128 + c) layout.
    wa = np.transpose(pn["w_adv"].reshape(128, 2, 2), (1, 2, 0)).reshape(2, 2 * 128)
    const[12:14] = wa
    const[14, :] = pn["b_adv"][0]

    return {
        "m1": jnp.asarray(m1, jnp.bfloat16),
        "m234": jnp.asarray(m234, jnp.bfloat16),
        "const": jnp.asarray(const, jnp.float32),
    }


# --------------------------------------------------------------------------
# Forward wrapper
# --------------------------------------------------------------------------
def _choose_tb(bp):
    # Prefer 2 parallel grid steps (feeds both v7x TensorCores) with a per-step batch
    # cap of 64 so VMEM stays well under every generation's default scoped limit.
    for tb in (64, 56, 48, 40, 32, 24, 16, 8):
        if bp % tb == 0 and bp // tb >= 2:
            return tb
    return bp                                   # tiny batch: single step


def discriminator_forward(img_nchw, kp):
    B = img_nchw.shape[0]
    bp = ((B + 7) // 8) * 8                     # sublane-align the batch axis
    x = jnp.transpose(img_nchw[:, 0, :, :], (1, 0, 2)).astype(jnp.float32)  # (32, B, 32)
    if bp != B:
        x = jnp.pad(x, ((0, 0), (0, bp - B), (0, 0)))
    tb = _choose_tb(bp)

    out = pl.pallas_call(
        _disc_kernel,
        out_shape=jax.ShapeDtypeStruct((bp, 1), jnp.float32),
        grid=(bp // tb,),
        in_specs=[
            pl.BlockSpec((IMG_H, tb, IMG_W), lambda i: (0, i, 0)),   # image chunk
            pl.BlockSpec((3, 32, _LANES), lambda i: (0, 0, 0)),      # layer-1 band weights
            pl.BlockSpec((9, _LANES, _LANES), lambda i: (0, 0, 0)),  # layer-2..4 band weights
            pl.BlockSpec((16, _LANES), lambda i: (0, 0)),            # packed constants
        ],
        out_specs=pl.BlockSpec((tb, 1), lambda i: (i, 0)),
        compiler_params=pltpu.CompilerParams(dimension_semantics=("parallel",)),
    )(x, kp["m1"], kp["m234"], kp["const"])
    return out[:B]


# --------------------------------------------------------------------------
# Parameter init (deterministic, mirrors the PyTorch module shapes)
# --------------------------------------------------------------------------
def init_params(key):
    channels = [(1, 16), (16, 32), (32, 64), (64, 128)]
    params = {}
    keys = jax.random.split(key, 4 * 2 + 4 * 4 + 2)
    ki = 0
    for li, (cin, cout) in enumerate(channels, start=1):
        fan_in = cin * 9
        bound = 1.0 / math.sqrt(fan_in)
        params[f"w{li}"] = jax.random.uniform(keys[ki], (cout, cin, 3, 3), jnp.float32,
                                              -bound, bound); ki += 1
        params[f"b{li}"] = jax.random.uniform(keys[ki], (cout,), jnp.float32,
                                              -bound, bound); ki += 1
        if li >= 2:  # BatchNorm2d params + running stats (eval mode)
            params[f"g{li}"] = 1.0 + 0.05 * jax.random.normal(keys[ki], (cout,), jnp.float32); ki += 1
            params[f"be{li}"] = 0.05 * jax.random.normal(keys[ki], (cout,), jnp.float32); ki += 1
            params[f"m{li}"] = 0.05 * jax.random.normal(keys[ki], (cout,), jnp.float32); ki += 1
            params[f"v{li}"] = 1.0 + 0.05 * jnp.abs(jax.random.normal(keys[ki], (cout,), jnp.float32)); ki += 1
    ds_size = 32 // 2 ** 4          # = 2
    feat = 128 * ds_size ** 2       # = 512
    bound = 1.0 / math.sqrt(feat)
    params["w_adv"] = jax.random.uniform(keys[ki], (1, feat), jnp.float32, -bound, bound); ki += 1
    params["b_adv"] = jax.random.uniform(keys[ki], (1,), jnp.float32, -bound, bound); ki += 1
    return params


# --------------------------------------------------------------------------
# Pure-JAX reference (for correctness check in __main__)
# --------------------------------------------------------------------------
def reference_forward(img, p):
    def leaky(x):
        return jnp.where(x >= 0, x, LEAKY_SLOPE * x)

    def conv(x, w, b):
        y = jax.lax.conv_general_dilated(
            x, w, window_strides=(2, 2), padding=((1, 1), (1, 1)),
            dimension_numbers=("NCHW", "OIHW", "NCHW"))
        return y + b[None, :, None, None]

    def bn(x, g, be, m, v):
        return (x - m[None, :, None, None]) / jnp.sqrt(v[None, :, None, None] + BN_EPS) \
               * g[None, :, None, None] + be[None, :, None, None]

    x = leaky(conv(img, p["w1"], p["b1"]))
    x = bn(leaky(conv(x, p["w2"], p["b2"])), p["g2"], p["be2"], p["m2"], p["v2"])
    x = bn(leaky(conv(x, p["w3"], p["b3"])), p["g3"], p["be3"], p["m3"], p["v3"])
    x = bn(leaky(conv(x, p["w4"], p["b4"])), p["g4"], p["be4"], p["m4"], p["v4"])
    flat = x.reshape(x.shape[0], -1)
    logit = flat @ p["w_adv"].T + p["b_adv"]
    return jax.nn.sigmoid(logit)


if __name__ == "__main__":
    key = jax.random.PRNGKey(0)
    k_img, k_par = jax.random.split(key)
    B = 16                                  # small batch (reference uses BATCH_SIZE=128);
                                            # exercises the 2-step parallel batch grid
    img = jax.random.normal(k_img, (B, 1, 32, 32), jnp.float32)      # (B, C=1, 32, 32)
    params = init_params(k_par)

    kparams = precompute_kernel_params(params)          # one-time host-side prep
    fwd = jax.jit(discriminator_forward)
    out = fwd(img, kparams)
    out = jax.block_until_ready(out)

    assert out.shape == (B, 1)
    assert bool(jnp.all(jnp.isfinite(out)))
    assert bool(jnp.all((out >= 0.0) & (out <= 1.0)))

    ref = reference_forward(img, params)
    max_diff = float(jnp.max(jnp.abs(out - ref)))
    assert max_diff < 2e-2, f"mismatch vs reference: {max_diff}"

    print("KERNEL_OK")
</pallas_src>

<mosaic_0001>
module attributes {stable_mosaic.version = 11 : i64} {
  func.func @_disc_kernel(%arg0: i32, %arg1: memref<32x8x32xf32, #tpu.memory_space<vmem>>, %arg2: memref<3x32x256xbf16, #tpu.memory_space<vmem>>, %arg3: memref<9x256x256xbf16, #tpu.memory_space<vmem>>, %arg4: memref<16x256xf32, #tpu.memory_space<vmem>>, %arg5: memref<8x1xf32, #tpu.memory_space<vmem>>) attributes {dimension_semantics = [#tpu.dimension_semantics<parallel>], iteration_bounds = array<i64: 2>, scalar_prefetch = 0 : i64, scratch_operands = 0 : i64, tpu.core_type = #tpu.core_type<tc>, window_params = [{transform_indices = @transform_0, window_bounds = array<i64: 32, 8, 32>}, {pipeline_mode = #tpu.pipeline_mode<synchronous>, transform_indices = @transform_1, window_bounds = array<i64: 3, 32, 256>}, {pipeline_mode = #tpu.pipeline_mode<synchronous>, transform_indices = @transform_2, window_bounds = array<i64: 9, 256, 256>}, {pipeline_mode = #tpu.pipeline_mode<synchronous>, transform_indices = @transform_3, window_bounds = array<i64: 16, 256>}, {transform_indices = @transform_4, window_bounds = array<i64: 8, 1>}]} {
    %c0 = arith.constant 0 : index
    %c0_0 = arith.constant 0 : index
    %c0_1 = arith.constant 0 : index
    %0 = vector.load %arg1[%c0, %c0_0, %c0_1] : memref<32x8x32xf32, #tpu.memory_space<vmem>>, vector<32x8x32xf32>
    %c0_2 = arith.constant 0 : index
    %c0_3 = arith.constant 0 : index
    %c0_4 = arith.constant 0 : index
    %1 = vector.load %arg2[%c0_2, %c0_3, %c0_4] : memref<3x32x256xbf16, #tpu.memory_space<vmem>>, vector<1x32x256xbf16>
    %2 = vector.shape_cast %1 : vector<1x32x256xbf16> to vector<32x256xbf16>
    %c1 = arith.constant 1 : index
    %c0_5 = arith.constant 0 : index
    %c0_6 = arith.constant 0 : index
    %3 = vector.load %arg2[%c1, %c0_5, %c0_6] : memref<3x32x256xbf16, #tpu.memory_space<vmem>>, vector<1x32x256xbf16>
    %4 = vector.shape_cast %3 : vector<1x32x256xbf16> to vector<32x256xbf16>
    %c2 = arith.constant 2 : index
    %c0_7 = arith.constant 0 : index
    %c0_8 = arith.constant 0 : index
    %5 = vector.load %arg2[%c2, %c0_7, %c0_8] : memref<3x32x256xbf16, #tpu.memory_space<vmem>>, vector<1x32x256xbf16>
    %6 = vector.shape_cast %5 : vector<1x32x256xbf16> to vector<32x256xbf16>
    %c0_9 = arith.constant 0 : index
    %c0_10 = arith.constant 0 : index
    %7 = vector.load %arg4[%c0_9, %c0_10] : memref<16x256xf32, #tpu.memory_space<vmem>>, vector<1x256xf32>
    %c1_11 = arith.constant 1 : index
    %c0_12 = arith.constant 0 : index
    %8 = vector.load %arg4[%c1_11, %c0_12] : memref<16x256xf32, #tpu.memory_space<vmem>>, vector<1x256xf32>
    %c2_13 = arith.constant 2 : index
    %c0_14 = arith.constant 0 : index
    %9 = vector.load %arg4[%c2_13, %c0_14] : memref<16x256xf32, #tpu.memory_space<vmem>>, vector<1x256xf32>
    %10 = vector.shape_cast %0 : vector<32x8x32xf32> to vector<16x2x8x32xf32>
    %11 = vector.extract_strided_slice %10 {offsets = [0, 0, 0, 0], sizes = [16, 1, 8, 32], strides = [1, 1, 1, 1]} : vector<16x2x8x32xf32> to vector<16x1x8x32xf32>
    %12 = vector.shape_cast %11 : vector<16x1x8x32xf32> to vector<16x8x32xf32>
    %13 = vector.extract_strided_slice %10 {offsets = [0, 1, 0, 0], sizes = [16, 1, 8, 32], strides = [1, 1, 1, 1]} : vector<16x2x8x32xf32> to vector<16x1x8x32xf32>
    %14 = vector.shape_cast %13 : vector<16x1x8x32xf32> to vector<16x8x32xf32>
    %cst = arith.constant 0.000000e+00 : f32
    %15 = vector.broadcast %cst : f32 to vector<1x8x32xf32>
    %16 = vector.extract_strided_slice %14 {offsets = [0, 0, 0], sizes = [15, 8, 32], strides = [1, 1, 1]} : vector<16x8x32xf32> to vector<15x8x32xf32>
    %17 = tpu.concatenate %15, %16 in 0 : vector<1x8x32xf32>, vector<15x8x32xf32> -> vector<16x8x32xf32>
    %18 = vector.shape_cast %17 : vector<16x8x32xf32> to vector<128x32xf32>
    %19 = arith.truncf %18 : vector<128x32xf32> to vector<128x32xbf16>
    %cst_15 = arith.constant dense<0.000000e+00> : vector<128x256xf32>
    %20 = tpu.matmul %19, %2, %cst_15 {dimension_numbers = #tpu.dot_dimension_numbers<[1], [0], [0], [1], [0, 0, 1, 1], [], []>} : vector<128x32xbf16>, vector<32x256xbf16>, vector<128x256xf32> -> vector<128x256xf32>
    %21 = vector.shape_cast %12 : vector<16x8x32xf32> to vector<128x32xf32>
    %22 = arith.truncf %21 : vector<128x32xf32> to vector<128x32xbf16>
    %cst_16 = arith.constant dense<0.000000e+00> : vector<128x256xf32>
    %23 = tpu.matmul %22, %4, %cst_16 {dimension_numbers = #tpu.dot_dimension_numbers<[1], [0], [0], [1], [0, 0, 1, 1], [], []>} : vector<128x32xbf16>, vector<32x256xbf16>, vector<128x256xf32> -> vector<128x256xf32>
    %24 = arith.addf %20, %23 : vector<128x256xf32>
    %25 = vector.shape_cast %14 : vector<16x8x32xf32> to vector<128x32xf32>
    %26 = arith.truncf %25 : vector<128x32xf32> to vector<128x32xbf16>
    %cst_17 = arith.constant dense<0.000000e+00> : vector<128x256xf32>
    %27 = tpu.matmul %26, %6, %cst_17 {dimension_numbers = #tpu.dot_dimension_numbers<[1], [0], [0], [1], [0, 0, 1, 1], [], []>} : vector<128x32xbf16>, vector<32x256xbf16>, vector<128x256xf32> -> vector<128x256xf32>
    %28 = arith.addf %24, %27 : vector<128x256xf32>
    %29 = vector.broadcast %7 : vector<1x256xf32> to vector<128x256xf32>
    %30 = arith.addf %28, %29 : vector<128x256xf32>
    %cst_18 = arith.constant 0.000000e+00 : f32
    %31 = vector.broadcast %cst_18 : f32 to vector<128x256xf32>
    %32 = arith.cmpf oge, %30, %31 : vector<128x256xf32>
    %cst_19 = arith.constant 2.000000e-01 : f32
    %33 = vector.broadcast %cst_19 : f32 to vector<128x256xf32>
    %34 = arith.mulf %33, %30 : vector<128x256xf32>
    %35 = arith.select %32, %30, %34 : vector<128x256xi1>, vector<128x256xf32>
    %36 = vector.broadcast %8 : vector<1x256xf32> to vector<128x256xf32>
    %37 = arith.mulf %35, %36 : vector<128x256xf32>
    %38 = vector.broadcast %9 : vector<1x256xf32> to vector<128x256xf32>
    %39 = arith.addf %37, %38 : vector<128x256xf32>
    %40 = vector.shape_cast %39 : vector<128x256xf32> to vector<16x8x256xf32>
    %c0_20 = arith.constant 0 : index
    %c0_21 = arith.constant 0 : index
    %c0_22 = arith.constant 0 : index
    %41 = vector.load %arg3[%c0_20, %c0_21, %c0_22] : memref<9x256x256xbf16, #tpu.memory_space<vmem>>, vector<1x256x256xbf16>
    %42 = vector.shape_cast %41 : vector<1x256x256xbf16> to vector<256x256xbf16>
    %c1_23 = arith.constant 1 : index
    %c0_24 = arith.constant 0 : index
    %c0_25 = arith.constant 0 : index
    %43 = vector.load %arg3[%c1_23, %c0_24, %c0_25] : memref<9x256x256xbf16, #tpu.memory_space<vmem>>, vector<1x256x256xbf16>
    %44 = vector.shape_cast %43 : vector<1x256x256xbf16> to vector<256x256xbf16>
    %c2_26 = arith.constant 2 : index
    %c0_27 = arith.constant 0 : index
    %c0_28 = arith.constant 0 : index
    %45 = vector.load %arg3[%c2_26, %c0_27, %c0_28] : memref<9x256x256xbf16, #tpu.memory_space<vmem>>, vector<1x256x256xbf16>
    %46 = vector.shape_cast %45 : vector<1x256x256xbf16> to vector<256x256xbf16>
    %c3 = arith.constant 3 : index
    %c0_29 = arith.constant 0 : index
    %47 = vector.load %arg4[%c3, %c0_29] : memref<16x256xf32, #tpu.memory_space<vmem>>, vector<1x256xf32>
    %c4 = arith.constant 4 : index
    %c0_30 = arith.constant 0 : index
    %48 = vector.load %arg4[%c4, %c0_30] : memref<16x256xf32, #tpu.memory_space<vmem>>, vector<1x256xf32>
    %c5 = arith.constant 5 : index
    %c0_31 = arith.constant 0 : index
    %49 = vector.load %arg4[%c5, %c0_31] : memref<16x256xf32, #tpu.memory_space<vmem>>, vector<1x256xf32>
    %50 = vector.shape_cast %40 : vector<16x8x256xf32> to vector<8x2x8x256xf32>
    %51 = vector.extract_strided_slice %50 {offsets = [0, 0, 0, 0], sizes = [8, 1, 8, 256], strides = [1, 1, 1, 1]} : vector<8x2x8x256xf32> to vector<8x1x8x256xf32>
    %52 = vector.shape_cast %51 : vector<8x1x8x256xf32> to vector<8x8x256xf32>
    %53 = vector.extract_strided_slice %50 {offsets = [0, 1, 0, 0], sizes = [8, 1, 8, 256], strides = [1, 1, 1, 1]} : vector<8x2x8x256xf32> to vector<8x1x8x256xf32>
    %54 = vector.shape_cast %53 : vector<8x1x8x256xf32> to vector<8x8x256xf32>
    %cst_32 = arith.constant 0.000000e+00 : f32
    %55 = vector.broadcast %cst_32 : f32 to vector<1x8x256xf32>
    %56 = vector.extract_strided_slice %54 {offsets = [0, 0, 0], sizes = [7, 8, 256], strides = [1, 1, 1]} : vector<8x8x256xf32> to vector<7x8x256xf32>
    %57 = tpu.concatenate %55, %56 in 0 : vector<1x8x256xf32>, vector<7x8x256xf32> -> vector<8x8x256xf32>
    %58 = vector.shape_cast %57 : vector<8x8x256xf32> to vector<64x256xf32>
    %59 = arith.truncf %58 : vector<64x256xf32> to vector<64x256xbf16>
    %cst_33 = arith.constant dense<0.000000e+00> : vector<64x256xf32>
    %60 = tpu.matmul %59, %42, %cst_33 {dimension_numbers = #tpu.dot_dimension_numbers<[1], [0], [0], [1], [0, 0, 1, 1], [], []>} : vector<64x256xbf16>, vector<256x256xbf16>, vector<64x256xf32> -> vector<64x256xf32>
    %61 = vector.shape_cast %52 : vector<8x8x256xf32> to vector<64x256xf32>
    %62 = arith.truncf %61 : vector<64x256xf32> to vector<64x256xbf16>
    %cst_34 = arith.constant dense<0.000000e+00> : vector<64x256xf32>
    %63 = tpu.matmul %62, %44, %cst_34 {dimension_numbers = #tpu.dot_dimension_numbers<[1], [0], [0], [1], [0, 0, 1, 1], [], []>} : vector<64x256xbf16>, vector<256x256xbf16>, vector<64x256xf32> -> vector<64x256xf32>
    %64 = arith.addf %60, %63 : vector<64x256xf32>
    %65 = vector.shape_cast %54 : vector<8x8x256xf32> to vector<64x256xf32>
    %66 = arith.truncf %65 : vector<64x256xf32> to vector<64x256xbf16>
    %cst_35 = arith.constant dense<0.000000e+00> : vector<64x256xf32>
    %67 = tpu.matmul %66, %46, %cst_35 {dimension_numbers = #tpu.dot_dimension_numbers<[1], [0], [0], [1], [0, 0, 1, 1], [], []>} : vector<64x256xbf16>, vector<256x256xbf16>, vector<64x256xf32> -> vector<64x256xf32>
    %68 = arith.addf %64, %67 : vector<64x256xf32>
    %69 = vector.broadcast %47 : vector<1x256xf32> to vector<64x256xf32>
    %70 = arith.addf %68, %69 : vector<64x256xf32>
    %cst_36 = arith.constant 0.000000e+00 : f32
    %71 = vector.broadcast %cst_36 : f32 to vector<64x256xf32>
    %72 = arith.cmpf oge, %70, %71 : vector<64x256xf32>
    %cst_37 = arith.constant 2.000000e-01 : f32
    %73 = vector.broadcast %cst_37 : f32 to vector<64x256xf32>
    %74 = arith.mulf %73, %70 : vector<64x256xf32>
    %75 = arith.select %72, %70, %74 : vector<64x256xi1>, vector<64x256xf32>
    %76 = vector.broadcast %48 : vector<1x256xf32> to vector<64x256xf32>
    %77 = arith.mulf %75, %76 : vector<64x256xf32>
    %78 = vector.broadcast %49 : vector<1x256xf32> to vector<64x256xf32>
    %79 = arith.addf %77, %78 : vector<64x256xf32>
    %80 = vector.shape_cast %79 : vector<64x256xf32> to vector<8x8x256xf32>
    %c3_38 = arith.constant 3 : index
    %c0_39 = arith.constant 0 : index
    %c0_40 = arith.constant 0 : index
    %81 = vector.load %arg3[%c3_38, %c0_39, %c0_40] : memref<9x256x256xbf16, #tpu.memory_space<vmem>>, vector<1x256x256xbf16>
    %82 = vector.shape_cast %81 : vector<1x256x256xbf16> to vector<256x256xbf16>
    %c4_41 = arith.constant 4 : index
    %c0_42 = arith.constant 0 : index
    %c0_43 = arith.constant 0 : index
    %83 = vector.load %arg3[%c4_41, %c0_42, %c0_43] : memref<9x256x256xbf16, #tpu.memory_space<vmem>>, vector<1x256x256xbf16>
    %84 = vector.shape_cast %83 : vector<1x256x256xbf16> to vector<256x256xbf16>
    %c5_44 = arith.constant 5 : index
    %c0_45 = arith.constant 0 : index
    %c0_46 = arith.constant 0 : index
    %85 = vector.load %arg3[%c5_44, %c0_45, %c0_46] : memref<9x256x256xbf16, #tpu.memory_space<vmem>>, vector<1x256x256xbf16>
    %86 = vector.shape_cast %85 : vector<1x256x256xbf16> to vector<256x256xbf16>
    %c6 = arith.constant 6 : index
    %c0_47 = arith.constant 0 : index
    %87 = vector.load %arg4[%c6, %c0_47] : memref<16x256xf32, #tpu.memory_space<vmem>>, vector<1x256xf32>
    %c7 = arith.constant 7 : index
    %c0_48 = arith.constant 0 : index
    %88 = vector.load %arg4[%c7, %c0_48] : memref<16x256xf32, #tpu.memory_space<vmem>>, vector<1x256xf32>
    %c8 = arith.constant 8 : index
    %c0_49 = arith.constant 0 : index
    %89 = vector.load %arg4[%c8, %c0_49] : memref<16x256xf32, #tpu.memory_space<vmem>>, vector<1x256xf32>
    %90 = vector.shape_cast %80 : vector<8x8x256xf32> to vector<4x2x8x256xf32>
    %91 = vector.extract_strided_slice %90 {offsets = [0, 0, 0, 0], sizes = [4, 1, 8, 256], strides = [1, 1, 1, 1]} : vector<4x2x8x256xf32> to vector<4x1x8x256xf32>
    %92 = vector.shape_cast %91 : vector<4x1x8x256xf32> to vector<4x8x256xf32>
    %93 = vector.extract_strided_slice %90 {offsets = [0, 1, 0, 0], sizes = [4, 1, 8, 256], strides = [1, 1, 1, 1]} : vector<4x2x8x256xf32> to vector<4x1x8x256xf32>
    %94 = vector.shape_cast %93 : vector<4x1x8x256xf32> to vector<4x8x256xf32>
    %cst_50 = arith.constant 0.000000e+00 : f32
    %95 = vector.broadcast %cst_50 : f32 to vector<1x8x256xf32>
    %96 = vector.extract_strided_slice %94 {offsets = [0, 0, 0], sizes = [3, 8, 256], strides = [1, 1, 1]} : vector<4x8x256xf32> to vector<3x8x256xf32>
    %97 = tpu.concatenate %95, %96 in 0 : vector<1x8x256xf32>, vector<3x8x256xf32> -> vector<4x8x256xf32>
    %98 = vector.shape_cast %97 : vector<4x8x256xf32> to vector<32x256xf32>
    %99 = arith.truncf %98 : vector<32x256xf32> to vector<32x256xbf16>
    %cst_51 = arith.constant dense<0.000000e+00> : vector<32x256xf32>
    %100 = tpu.matmul %99, %82, %cst_51 {dimension_numbers = #tpu.dot_dimension_numbers<[1], [0], [0], [1], [0, 0, 1, 1], [], []>} : vector<32x256xbf16>, vector<256x256xbf16>, vector<32x256xf32> -> vector<32x256xf32>
    %101 = vector.shape_cast %92 : vector<4x8x256xf32> to vector<32x256xf32>
    %102 = arith.truncf %101 : vector<32x256xf32> to vector<32x256xbf16>
    %cst_52 = arith.constant dense<0.000000e+00> : vector<32x256xf32>
    %103 = tpu.matmul %102, %84, %cst_52 {dimension_numbers = #tpu.dot_dimension_numbers<[1], [0], [0], [1], [0, 0, 1, 1], [], []>} : vector<32x256xbf16>, vector<256x256xbf16>, vector<32x256xf32> -> vector<32x256xf32>
    %104 = arith.addf %100, %103 : vector<32x256xf32>
    %105 = vector.shape_cast %94 : vector<4x8x256xf32> to vector<32x256xf32>
    %106 = arith.truncf %105 : vector<32x256xf32> to vector<32x256xbf16>
    %cst_53 = arith.constant dense<0.000000e+00> : vector<32x256xf32>
    %107 = tpu.matmul %106, %86, %cst_53 {dimension_numbers = #tpu.dot_dimension_numbers<[1], [0], [0], [1], [0, 0, 1, 1], [], []>} : vector<32x256xbf16>, vector<256x256xbf16>, vector<32x256xf32> -> vector<32x256xf32>
    %108 = arith.addf %104, %107 : vector<32x256xf32>
    %109 = vector.broadcast %87 : vector<1x256xf32> to vector<32x256xf32>
    %110 = arith.addf %108, %109 : vector<32x256xf32>
    %cst_54 = arith.constant 0.000000e+00 : f32
    %111 = vector.broadcast %cst_54 : f32 to vector<32x256xf32>
    %112 = arith.cmpf oge, %110, %111 : vector<32x256xf32>
    %cst_55 = arith.constant 2.000000e-01 : f32
    %113 = vector.broadcast %cst_55 : f32 to vector<32x256xf32>
    %114 = arith.mulf %113, %110 : vector<32x256xf32>
    %115 = arith.select %112, %110, %114 : vector<32x256xi1>, vector<32x256xf32>
    %116 = vector.broadcast %88 : vector<1x256xf32> to vector<32x256xf32>
    %117 = arith.mulf %115, %116 : vector<32x256xf32>
    %118 = vector.broadcast %89 : vector<1x256xf32> to vector<32x256xf32>
    %119 = arith.addf %117, %118 : vector<32x256xf32>
    %120 = vector.shape_cast %119 : vector<32x256xf32> to vector<4x8x256xf32>
    %c6_56 = arith.constant 6 : index
    %c0_57 = arith.constant 0 : index
    %c0_58 = arith.constant 0 : index
    %121 = vector.load %arg3[%c6_56, %c0_57, %c0_58] : memref<9x256x256xbf16, #tpu.memory_space<vmem>>, vector<1x256x256xbf16>
    %122 = vector.shape_cast %121 : vector<1x256x256xbf16> to vector<256x256xbf16>
    %c7_59 = arith.constant 7 : index
    %c0_60 = arith.constant 0 : index
    %c0_61 = arith.constant 0 : index
    %123 = vector.load %arg3[%c7_59, %c0_60, %c0_61] : memref<9x256x256xbf16, #tpu.memory_space<vmem>>, vector<1x256x256xbf16>
    %124 = vector.shape_cast %123 : vector<1x256x256xbf16> to vector<256x256xbf16>
    %c8_62 = arith.constant 8 : index
    %c0_63 = arith.constant 0 : index
    %c0_64 = arith.constant 0 : index
    %125 = vector.load %arg3[%c8_62, %c0_63, %c0_64] : memref<9x256x256xbf16, #tpu.memory_space<vmem>>, vector<1x256x256xbf16>
    %126 = vector.shape_cast %125 : vector<1x256x256xbf16> to vector<256x256xbf16>
    %c9 = arith.constant 9 : index
    %c0_65 = arith.constant 0 : index
    %127 = vector.load %arg4[%c9, %c0_65] : memref<16x256xf32, #tpu.memory_space<vmem>>, vector<1x256xf32>
    %c10 = arith.constant 10 : index
    %c0_66 = arith.constant 0 : index
    %128 = vector.load %arg4[%c10, %c0_66] : memref<16x256xf32, #tpu.memory_space<vmem>>, vector<1x256xf32>
    %c11 = arith.constant 11 : index
    %c0_67 = arith.constant 0 : index
    %129 = vector.load %arg4[%c11, %c0_67] : memref<16x256xf32, #tpu.memory_space<vmem>>, vector<1x256xf32>
    %130 = vector.shape_cast %120 : vector<4x8x256xf32> to vector<2x2x8x256xf32>
    %131 = vector.extract_strided_slice %130 {offsets = [0, 0, 0, 0], sizes = [2, 1, 8, 256], strides = [1, 1, 1, 1]} : vector<2x2x8x256xf32> to vector<2x1x8x256xf32>
    %132 = vector.shape_cast %131 : vector<2x1x8x256xf32> to vector<2x8x256xf32>
    %133 = vector.extract_strided_slice %130 {offsets = [0, 1, 0, 0], sizes = [2, 1, 8, 256], strides = [1, 1, 1, 1]} : vector<2x2x8x256xf32> to vector<2x1x8x256xf32>
    %134 = vector.shape_cast %133 : vector<2x1x8x256xf32> to vector<2x8x256xf32>
    %cst_68 = arith.constant 0.000000e+00 : f32
    %135 = vector.broadcast %cst_68 : f32 to vector<1x8x256xf32>
    %136 = vector.extract_strided_slice %134 {offsets = [0, 0, 0], sizes = [1, 8, 256], strides = [1, 1, 1]} : vector<2x8x256xf32> to vector<1x8x256xf32>
    %137 = tpu.concatenate %135, %136 in 0 : vector<1x8x256xf32>, vector<1x8x256xf32> -> vector<2x8x256xf32>
    %138 = vector.shape_cast %137 : vector<2x8x256xf32> to vector<16x256xf32>
    %139 = arith.truncf %138 : vector<16x256xf32> to vector<16x256xbf16>
    %cst_69 = arith.constant dense<0.000000e+00> : vector<16x256xf32>
    %140 = tpu.matmul %139, %122, %cst_69 {dimension_numbers = #tpu.dot_dimension_numbers<[1], [0], [0], [1], [0, 0, 1, 1], [], []>} : vector<16x256xbf16>, vector<256x256xbf16>, vector<16x256xf32> -> vector<16x256xf32>
    %141 = vector.shape_cast %132 : vector<2x8x256xf32> to vector<16x256xf32>
    %142 = arith.truncf %141 : vector<16x256xf32> to vector<16x256xbf16>
    %cst_70 = arith.constant dense<0.000000e+00> : vector<16x256xf32>
    %143 = tpu.matmul %142, %124, %cst_70 {dimension_numbers = #tpu.dot_dimension_numbers<[1], [0], [0], [1], [0, 0, 1, 1], [], []>} : vector<16x256xbf16>, vector<256x256xbf16>, vector<16x256xf32> -> vector<16x256xf32>
    %144 = arith.addf %140, %143 : vector<16x256xf32>
    %145 = vector.shape_cast %134 : vector<2x8x256xf32> to vector<16x256xf32>
    %146 = arith.truncf %145 : vector<16x256xf32> to vector<16x256xbf16>
    %cst_71 = arith.constant dense<0.000000e+00> : vector<16x256xf32>
    %147 = tpu.matmul %146, %126, %cst_71 {dimension_numbers = #tpu.dot_dimension_numbers<[1], [0], [0], [1], [0, 0, 1, 1], [], []>} : vector<16x256xbf16>, vector<256x256xbf16>, vector<16x256xf32> -> vector<16x256xf32>
    %148 = arith.addf %144, %147 : vector<16x256xf32>
    %149 = vector.broadcast %127 : vector<1x256xf32> to vector<16x256xf32>
    %150 = arith.addf %148, %149 : vector<16x256xf32>
    %cst_72 = arith.constant 0.000000e+00 : f32
    %151 = vector.broadcast %cst_72 : f32 to vector<16x256xf32>
    %152 = arith.cmpf oge, %150, %151 : vector<16x256xf32>
    %cst_73 = arith.constant 2.000000e-01 : f32
    %153 = vector.broadcast %cst_73 : f32 to vector<16x256xf32>
    %154 = arith.mulf %153, %150 : vector<16x256xf32>
    %155 = arith.select %152, %150, %154 : vector<16x256xi1>, vector<16x256xf32>
    %156 = vector.broadcast %128 : vector<1x256xf32> to vector<16x256xf32>
    %157 = arith.mulf %155, %156 : vector<16x256xf32>
    %158 = vector.broadcast %129 : vector<1x256xf32> to vector<16x256xf32>
    %159 = arith.addf %157, %158 : vector<16x256xf32>
    %160 = vector.shape_cast %159 : vector<16x256xf32> to vector<2x8x256xf32>
    %161 = vector.extract_strided_slice %160 {offsets = [0, 0, 0], sizes = [1, 8, 256], strides = [1, 1, 1]} : vector<2x8x256xf32> to vector<1x8x256xf32>
    %162 = vector.shape_cast %161 : vector<1x8x256xf32> to vector<8x256xf32>
    %c12 = arith.constant 12 : index
    %c0_74 = arith.constant 0 : index
    %163 = vector.load %arg4[%c12, %c0_74] : memref<16x256xf32, #tpu.memory_space<vmem>>, vector<1x256xf32>
    %164 = vector.broadcast %163 : vector<1x256xf32> to vector<8x256xf32>
    %165 = arith.mulf %162, %164 : vector<8x256xf32>
    %cst_75 = arith.constant dense<0.000000e+00> : vector<8xf32>
    %166 = vector.multi_reduction <add>, %165, %cst_75 [1] : vector<8x256xf32> to vector<8xf32>
    %167 = vector.shape_cast %166 : vector<8xf32> to vector<8x1xf32>
    %168 = vector.extract_strided_slice %160 {offsets = [1, 0, 0], sizes = [1, 8, 256], strides = [1, 1, 1]} : vector<2x8x256xf32> to vector<1x8x256xf32>
    %169 = vector.shape_cast %168 : vector<1x8x256xf32> to vector<8x256xf32>
    %c13 = arith.constant 13 : index
    %c0_76 = arith.constant 0 : index
    %170 = vector.load %arg4[%c13, %c0_76] : memref<16x256xf32, #tpu.memory_space<vmem>>, vector<1x256xf32>
    %171 = vector.broadcast %170 : vector<1x256xf32> to vector<8x256xf32>
    %172 = arith.mulf %169, %171 : vector<8x256xf32>
    %cst_77 = arith.constant dense<0.000000e+00> : vector<8xf32>
    %173 = vector.multi_reduction <add>, %172, %cst_77 [1] : vector<8x256xf32> to vector<8xf32>
    %174 = vector.shape_cast %173 : vector<8xf32> to vector<8x1xf32>
    %175 = arith.addf %167, %174 : vector<8x1xf32>
    %c14 = arith.constant 14 : index
    %c0_78 = arith.constant 0 : index
    %176 = vector.load %arg4[%c14, %c0_78] : memref<16x256xf32, #tpu.memory_space<vmem>>, vector<1x1xf32>
    %177 = vector.broadcast %176 : vector<1x1xf32> to vector<8x1xf32>
    %178 = arith.addf %175, %177 : vector<8x1xf32>
    %cst_79 = arith.constant 0.000000e+00 : f32
    %179 = vector.broadcast %cst_79 : f32 to vector<8x1xf32>
    %180 = arith.subf %179, %178 : vector<8x1xf32>
    %181 = math.exp %180 : vector<8x1xf32>
    %cst_80 = arith.constant 1.000000e+00 : f32
    %182 = vector.broadcast %cst_80 : f32 to vector<8x1xf32>
    %183 = arith.addf %182, %181 : vector<8x1xf32>
    %cst_81 = arith.constant 1.000000e+00 : f32
    %184 = vector.broadcast %cst_81 : f32 to vector<8x1xf32>
    %185 = arith.divf %184, %183 : vector<8x1xf32>
    %c0_82 = arith.constant 0 : index
    %c0_83 = arith.constant 0 : index
    %186 = vector.load %arg5[%c0_82, %c0_83] : memref<8x1xf32, #tpu.memory_space<vmem>>, vector<8x1xf32>
    tpu.vector_store %arg5[%c0_82, %c0_83], %185 {strides = array<i32>} : memref<8x1xf32, #tpu.memory_space<vmem>>, vector<8x1xf32>,
    return
  }
  func.func @transform_0(%arg0: i32) -> (i32, i32, i32) {
    %c0_i32 = arith.constant 0 : i32
    %c0_i32_0 = arith.constant 0 : i32
    %c0_i32_1 = arith.constant 0 : i32
    return %c0_i32, %arg0, %c0_i32_0 : i32, i32, i32
  }
  func.func @transform_1(%arg0: i32) -> (i32, i32, i32) {
    %c0_i32 = arith.constant 0 : i32
    %c0_i32_0 = arith.constant 0 : i32
    %c0_i32_1 = arith.constant 0 : i32
    %c0_i32_2 = arith.constant 0 : i32
    return %c0_i32, %c0_i32_0, %c0_i32_1 : i32, i32, i32
  }
  func.func @transform_2(%arg0: i32) -> (i32, i32, i32) {
    %c0_i32 = arith.constant 0 : i32
    %c0_i32_0 = arith.constant 0 : i32
    %c0_i32_1 = arith.constant 0 : i32
    %c0_i32_2 = arith.constant 0 : i32
    return %c0_i32, %c0_i32_0, %c0_i32_1 : i32, i32, i32
  }
  func.func @transform_3(%arg0: i32) -> (i32, i32) {
    %c0_i32 = arith.constant 0 : i32
    %c0_i32_0 = arith.constant 0 : i32
    %c0_i32_1 = arith.constant 0 : i32
    return %c0_i32, %c0_i32_0 : i32, i32
  }
  func.func @transform_4(%arg0: i32) -> (i32, i32) {
    %c0_i32 = arith.constant 0 : i32
    %c0_i32_0 = arith.constant 0 : i32
    return %arg0, %c0_i32 : i32, i32
  }
}

</mosaic_0001>

<bundles_post_ra>
// kernel: discriminator_forward.1
= control target key start
LH: loop header
LB: loop body
LE: loop exit
PB: predicated region body
PF: predicated region fallthrough
CT: control target
= control target key end

     0   :  { %9 = vsyncpa [#allocation4], 0  ;;  %s6947_s0 = inlined_call_operand.vmem [shape: f32[32,16,32], index: 0, kind: input, shape index: {}]   ;;  %s6948_s1 = inlined_call_operand.hbm [shape: bf16[3,32,256], index: 1, kind: input, shape index: {}]   ;;  %s6949_s2 = inlined_call_operand.hbm [shape: bf16[9,256,256], index: 2, kind: input, shape index: {}]   ;;  %s6950_s3 = inlined_call_operand.hbm [shape: f32[16,256], index: 3, kind: input, shape index: {}]   ;;  %s6951_s4 = inlined_call_operand.vmem [shape: f32[16,1], index: 4, kind: output, shape index: {}]  }
   0x1   :  { %10 = vsyncpa [#allocation6], 0  ;;  %s5850_s15 = smov 0   ;;  %s5852_s16 = smov 0  }
   0x2   :  { %s5854_s17 = smov 0  }
   0x3 LB: > { %s5866_s18 = sadd.s32 4294967295, %s5815_s17   ;;  %s5869_s19 = sadd.s32 1, %s5815_s17   ;;  %s5815_s17 = sphi %s5854_s17, %s6957_s17   ;;  %s5811_s16 = sphi %s5852_s16, %s6956_s16   ;;  %s5807_s15 = sphi %s5850_s15, %s6955_s15  }
   0x4   : > { %s20_s20 = ssub.s32 %s5815_s17, %s5869_s19  ;;  %s23_s21 = sadd.s32 1, %s5811_s16 }
   0x5   : > { %p21_p0 = scmp.eq.s32.totalorder %s20_s20, 0  ;;  %p30_p1 = scmp.ne.s32.totalorder %s5811_s16, %s5807_s15 }
   0x6   : > { %p31_p2 = scmp.eq.s32.totalorder %s5815_s17, 0  ;;  %p4068_p3 = scmp.ge.s32.totalorder %s5815_s17, 1 }
   0x7   : > { %s5879_s22 = scalar_select %p21_p0, %s5811_s16, %s23_s21  }
   0x8   : > { %p5881_p4 = por %p31_p2, %p30_p1  ;;  %p136_p5 = scmp.lt.s32.totalorder %s5815_s17, 3 }
   0x9   : > { %p5653_p6 = scmp.eq.s32.totalorder %s5866_s18, 0  ;;  %s161_s27 = sshll.u32 %s6949_s2, 4  ;;  %s162_s27 = int_to_ptr.hbm [resolvable:$true] %s161_s27 }
   0xa   : > { %p5887_p7 = pnand %p4068_p3, %p136_p5  ;;  %s147_s30 = sshll.u32 %s6948_s1, 4  ;;  %s148_s30 = int_to_ptr.hbm [resolvable:$true] %s147_s30 }
   0xb   : > { %s5817_s6 = smov [#allocation5]   ;;  %s5818_s8 = smov 128  }
   0xc   : > { %p5643_p8 = pneg %p5887_p7  ;;  %s163_s7 = sshll.u32 %s5817_s6, 4  ;;  %s164_s7 = int_to_ptr.vmem [resolvable:$true] %s163_s7 }
   0xd   : > { %s5819_s9 = smov 8   ;;  %s5820_s10 = smov [#allocation3]  }
   0xe   : > { %p5901_p9 = pnand %p5653_p6, %p5643_p8  ;;  %s149_s11 = sshll.u32 %s5820_s10, 4  ;;  %s150_s11 = int_to_ptr.vmem [resolvable:$true] %s149_s11 }
   0xf   : > { %s175_s14 = sshll.u32 %s6950_s3, 4  ;;  %s5821_s20 = smov [#allocation7]   ;;  %s176_s14 = int_to_ptr.hbm [resolvable:$true] %s175_s14 }
  0x10   : > { %5649 = dma.hbm_to_vmem [thread:$0]  (!%p5901_p9), %s162_s27, 36864, %s164_s7, [#allocation6], %s5818_s8, %s5818_s8, %s5819_s9  }
  0x11   : > { %5646 = dma.hbm_to_vmem [thread:$0]  (!%p5901_p9), %s148_s30, 1536, %s150_s11, [#allocation4], %s5818_s8, %s5818_s8, %s5819_s9  }
  0x12   : > { %s177_s21 = sshll.u32 %s5821_s20, 4  ;;  %s5822_s25 = smov 256   ;;  %s178_s21 = int_to_ptr.vmem [resolvable:$true] %s177_s21 }
  0x13   : > { %s5823_s26 = smov 16   ;;  %p4072_p10 = scmp.ge.s32.totalorder %s5815_s17, 2 }
  0x14   : > { %5652 = dma.hbm_to_vmem [thread:$0]  (!%p5901_p9), %s176_s14, 512, %s178_s21, [#allocation6], %s5822_s25, %s5822_s25, %s5823_s26  }
  0x15   : > { %187 = sbr.rel (%p4072_p10) target bundleno = 62 (0x3e), region = 28 }
  0x1a   : > { %190 = sbr.rel (!%p5881_p4) target bundleno = 62 (0x3e), region = 32  ;;  %s192_s27 = sand.u32 (%p5881_p4), 1, %s5811_s16  }
  0x1b   : > { %s4074_s28 = sshll.u32 (%p5881_p4), %s5815_s17, 3  ;;  %s4073_s29 = sshll.u32 (%p5881_p4), %s192_s27, 8 }
  0x1c   : > { %s5922_s7 = scalar_lea.vmem (%p5881_p4), %s6947_s0, %s4074_s28  ;;  %s5927_s17 = scalar_lea.vmem (%p5881_p4), [#allocation2], %s4073_s29 }
  0x1d   : > { %v287_v0 = vld [vmem:[%s5922_s7] sm:$0xff] (%p5881_p4)  ;;  %v289_v1 = vld [vmem:[%s5922_s7 + $0x10] sm:$0xff] (%p5881_p4) }
  0x1e   : > { %v291_v2 = vld [vmem:[%s5922_s7 + $0x20] sm:$0xff] (%p5881_p4)  ;;  %288 = vst [vmem:[%s5927_s17] sm:$0xff] (%p5881_p4), %v287_v0  ;;  %v293_v3 = vld [vmem:[%s5922_s7 + $0x30] sm:$0xff] (%p5881_p4) }
  0x1f   : > { %290 = vst [vmem:[%s5927_s17 + $0x8] sm:$0xff] %v289_v1  ;;  %v295_v4 = vld [vmem:[%s5922_s7 + $0x40] sm:$0xff]  ;;  %v297_v5 = vld [vmem:[%s5922_s7 + $0x50] sm:$0xff] }
  0x20   : > { %292 = vst [vmem:[%s5927_s17 + $0x10] sm:$0xff] %v291_v2  ;;  %v299_v6 = vld [vmem:[%s5922_s7 + $0x60] sm:$0xff]  ;;  %v301_v7 = vld [vmem:[%s5922_s7 + $0x70] sm:$0xff] }
  0x21   : > { %294 = vst [vmem:[%s5927_s17 + $0x18] sm:$0xff] %v293_v3  ;;  %v303_v8 = vld [vmem:[%s5922_s7 + $0x80] sm:$0xff]  ;;  %v305_v9 = vld [vmem:[%s5922_s7 + $0x90] sm:$0xff] }
  0x22   : > { %296 = vst [vmem:[%s5927_s17 + $0x20] sm:$0xff] %v295_v4  ;;  %v307_v10 = vld [vmem:[%s5922_s7 + $0xa0] sm:$0xff]  ;;  %v309_v11 = vld [vmem:[%s5922_s7 + $0xb0] sm:$0xff] }
  0x23   : > { %298 = vst [vmem:[%s5927_s17 + $0x28] sm:$0xff] %v297_v5  ;;  %v311_v12 = vld [vmem:[%s5922_s7 + $0xc0] sm:$0xff]  ;;  %v313_v13 = vld [vmem:[%s5922_s7 + $0xd0] sm:$0xff] }
  0x24   : > { %300 = vst [vmem:[%s5927_s17 + $0x30] sm:$0xff] %v299_v6  ;;  %v315_v14 = vld [vmem:[%s5922_s7 + $0xe0] sm:$0xff]  ;;  %v317_v15 = vld [vmem:[%s5922_s7 + $0xf0] sm:$0xff] }
  0x25   : > { %302 = vst [vmem:[%s5927_s17 + $0x38] sm:$0xff] %v301_v7  ;;  %v319_v16 = vld [vmem:[%s5922_s7 + $0x100] sm:$0xff]  ;;  %v321_v17 = vld [vmem:[%s5922_s7 + $0x110] sm:$0xff] }
  0x26   : > { %304 = vst [vmem:[%s5927_s17 + $0x40] sm:$0xff] %v303_v8  ;;  %v323_v18 = vld [vmem:[%s5922_s7 + $0x120] sm:$0xff]  ;;  %v325_v19 = vld [vmem:[%s5922_s7 + $0x130] sm:$0xff] }
  0x27   : > { %306 = vst [vmem:[%s5927_s17 + $0x48] sm:$0xff] %v305_v9  ;;  %v327_v20 = vld [vmem:[%s5922_s7 + $0x140] sm:$0xff]  ;;  %v329_v21 = vld [vmem:[%s5922_s7 + $0x150] sm:$0xff] }
  0x28   : > { %308 = vst [vmem:[%s5927_s17 + $0x50] sm:$0xff] %v307_v10  ;;  %v331_v22 = vld [vmem:[%s5922_s7 + $0x160] sm:$0xff]  ;;  %v333_v23 = vld [vmem:[%s5922_s7 + $0x170] sm:$0xff] }
  0x29   : > { %310 = vst [vmem:[%s5927_s17 + $0x58] sm:$0xff] %v309_v11  ;;  %v335_v24 = vld [vmem:[%s5922_s7 + $0x180] sm:$0xff]  ;;  %v337_v25 = vld [vmem:[%s5922_s7 + $0x190] sm:$0xff] }
  0x2a   : > { %312 = vst [vmem:[%s5927_s17 + $0x60] sm:$0xff] %v311_v12  ;;  %v339_v26 = vld [vmem:[%s5922_s7 + $0x1a0] sm:$0xff]  ;;  %v341_v27 = vld [vmem:[%s5922_s7 + $0x1b0] sm:$0xff] }
  0x2b   : > { %314 = vst [vmem:[%s5927_s17 + $0x68] sm:$0xff] %v313_v13  ;;  %v343_v28 = vld [vmem:[%s5922_s7 + $0x1c0] sm:$0xff]  ;;  %v345_v29 = vld [vmem:[%s5922_s7 + $0x1d0] sm:$0xff] }
  0x2c   : > { %316 = vst [vmem:[%s5927_s17 + $0x70] sm:$0xff] %v315_v14  ;;  %v347_v30 = vld [vmem:[%s5922_s7 + $0x1e0] sm:$0xff]  ;;  %v349_v31 = vld [vmem:[%s5922_s7 + $0x1f0] sm:$0xff] }
  0x2d   : > { %318 = vst [vmem:[%s5927_s17 + $0x78] sm:$0xff] %v317_v15 }
  0x2e   : > { %320 = vst [vmem:[%s5927_s17 + $0x80] sm:$0xff] %v319_v16 }
  0x2f   : > { %322 = vst [vmem:[%s5927_s17 + $0x88] sm:$0xff] %v321_v17 }
  0x30   : > { %324 = vst [vmem:[%s5927_s17 + $0x90] sm:$0xff] %v323_v18 }
  0x31   : > { %326 = vst [vmem:[%s5927_s17 + $0x98] sm:$0xff] %v325_v19 }
  0x32   : > { %328 = vst [vmem:[%s5927_s17 + $0xa0] sm:$0xff] %v327_v20 }
  0x33   : > { %330 = vst [vmem:[%s5927_s17 + $0xa8] sm:$0xff] %v329_v21 }
  0x34   : > { %332 = vst [vmem:[%s5927_s17 + $0xb0] sm:$0xff] %v331_v22 }
  0x35   : > { %334 = vst [vmem:[%s5927_s17 + $0xb8] sm:$0xff] %v333_v23 }
  0x36   : > { %336 = vst [vmem:[%s5927_s17 + $0xc0] sm:$0xff] %v335_v24 }
  0x37   : > { %338 = vst [vmem:[%s5927_s17 + $0xc8] sm:$0xff] %v337_v25 }
  0x38   : > { %340 = vst [vmem:[%s5927_s17 + $0xd0] sm:$0xff] %v339_v26 }
  0x39   : > { %342 = vst [vmem:[%s5927_s17 + $0xd8] sm:$0xff] %v341_v27 }
  0x3a   : > { %344 = vst [vmem:[%s5927_s17 + $0xe0] sm:$0xff] %v343_v28 }
  0x3b   : > { %346 = vst [vmem:[%s5927_s17 + $0xe8] sm:$0xff] %v345_v29 }
  0x3c   : > { %348 = vst [vmem:[%s5927_s17 + $0xf0] sm:$0xff] %v347_v30 }
  0x3d   : > { %350 = vst [vmem:[%s5927_s17 + $0xf8] sm:$0xff] %v349_v31 }
  0x3e PF: > { %359 = sbr.rel (%p5887_p7) target bundleno = 1350 (0x546), region = 70  ;;  %s362_s23 = sand.u32 (!%p5887_p7), 1, %s5807_s15  }
  0x3f   : > { %s4076_s5 = sshll.u32 (!%p5887_p7), %s362_s23, 8 }
  0x40   : > { %s5993_s8 = scalar_lea.vmem (!%p5887_p7), [#allocation2], %s4076_s5 }
  0x43   : > { %5798 = dma.done.wait (%p5653_p6), [#allocation4], 1536  }
  0x44   : > { %5800 = vsyncadd (%p5653_p6), [#allocation4], 4294965760 }
  0x45   : > { %5802 = dma.done.wait (%p5653_p6), [#allocation6], 37376  }
  0x46   : > { %5804 = vsyncadd (%p5653_p6), [#allocation6], 4294929920  ;;  %v4091_v32 = vld [vmem:[#allocation3 + $0x30] sm:$0xf]  ;;  %v5338_v33 = vld [vmem:[#allocation3 + $0x34] sm:$0xf0] }
  0x47   : > { %v5337_v34 = vld [vmem:[#allocation3 + $0x34] sm:$0xf]  ;;  %v4092_v35 = vor.u32 %v5338_v33, %v4091_v32  ;;  %v4093_v36 = vld [vmem:[#allocation3 + $0x38] sm:$0xf0]  ;;  %v4123_v37 = vld [vmem:[#allocation3 + $0x10] sm:$0xf] }
  0x48   : > { %v5334_v38 = vld [vmem:[#allocation3 + $0x14] sm:$0xf0]  ;;  %v4096_v39 = vor.u32 %v5337_v34, %v4093_v36  ;;  %v5333_v41 = vld [vmem:[#allocation3 + $0x14] sm:$0xf]  ;;  %v4125_v42 = vld [vmem:[#allocation3 + $0x18] sm:$0xf0] }
  0x49   : > { %v4124_v40 = vor.u32 %v5334_v38, %v4123_v37  ;;  %v4083_v43 = vld [vmem:[#allocation3 + $0x20] sm:$0xf]  ;;  %524 = vmatpush.bf16.msra.mxu0 %v4092_v35  ;;  %v4128_v44 = vor.u32 %v5333_v41, %v4125_v42  ;;  %v5336_v45 = vld [vmem:[#allocation3 + $0x24] sm:$0xf0]  ;;  %v5335_v46 = vld [vmem:[#allocation3 + $0x24] sm:$0xf] }
  0x4a   : > { %v4085_v47 = vld [vmem:[#allocation3 + $0x28] sm:$0xf0]  ;;  %573 = vmatpush.bf16.msra.mxu1 %v4096_v39  ;;  %v4084_v48 = vor.u32 %v5336_v45, %v4083_v43  ;;  %v4115_v50 = vld [vmem:[#allocation3] sm:$0xf]  ;;  %v5332_v51 = vld [vmem:[#allocation3 + $0x4] sm:$0xf0] }
  0x4b   : > { %666 = vmatpush.bf16.msra.mxu2 %v4124_v40  ;;  %v4088_v49 = vor.u32 %v5335_v46, %v4085_v47  ;;  %v5331_v52 = vld [vmem:[#allocation3 + $0x4] sm:$0xf]  ;;  %715 = vmatpush.bf16.msra.mxu3 %v4128_v44  ;;  %v4116_v53 = vor.u32 %v5332_v51, %v4115_v50  ;;  %v4117_v54 = vld [vmem:[#allocation3 + $0x8] sm:$0xf0]  ;;  %v408_v56 = vld [vmem:[%s5993_s8 + $0x10] sm:$0xff]  ;;  %vm493_vm0 = vcmask 261120  }
  0x4c   : > { %v406_v55 = vld [vmem:[%s5993_s8] sm:$0xff]  ;;  %v4120_v57 = vor.u32 %v5331_v52, %v4117_v54  ;;  %v407_v59 = vld [vmem:[%s5993_s8 + $0x8] sm:$0xff]  ;;  %v4155_v60 = vld [vmem:[#allocation3 + $0x50] sm:$0xf]  ;;  %v5824_v62 = vmov 0.0   ;;  %p401_p11 = scmp.lt.s32.totalorder %s5866_s18, 1 }
  0x4d   : > { %v465_v58 = vpack.c.bf16 %v408_v56, %v406_v55  ;;  %v5342_v61 = vld [vmem:[#allocation3 + $0x54] sm:$0xf0]  ;;  %525 = vmatpush.bf16.msra.mxu0 %v4084_v48  ;;  %v457_v63 = vpack.c.bf16 %v407_v59, %v5824_v62  ;;  %v5341_v1 = vld [vmem:[#allocation3 + $0x54] sm:$0xf]  ;;  %v4157_v2 = vld [vmem:[#allocation3 + $0x58] sm:$0xf0] }
  0x4e   : > { %v4156_v0 = vor.u32 %v5342_v61, %v4155_v60  ;;  %574 = vmatpush.bf16.msra.mxu1 %v4088_v49  ;;  %v4160_v3 = vor.u32 %v5341_v1, %v4157_v2  ;;  %v409_v4 = vld [vmem:[%s5993_s8 + $0x18] sm:$0xff]  ;;  %v410_v6 = vld [vmem:[%s5993_s8 + $0x20] sm:$0xff]  ;;  %v412_v7 = vld [vmem:[%s5993_s8 + $0x30] sm:$0xff]  ;;  %s6959_s18 = smov (!%p401_p11, %s5866_s18), 1 }
  0x4f   : > { %667 = vmatpush.bf16.msra.mxu2 %v4116_v53  ;;  %716 = vmatpush.bf16.msra.mxu3 %v4120_v57  ;;  %v6008_v5 = vpack.c.bf16 %v409_v4, %v407_v59  ;;  %v6017_v8 = vld [vmem:[%s5993_s8 + $0x28] sm:$0xff]  ;;  %v466_v9 = vpack.c.bf16 %v412_v7, %v410_v6  ;;  %v414_v11 = vld [vmem:[%s5993_s8 + $0x40] sm:$0xff]  ;;  %v416_v12 = vld [vmem:[%s5993_s8 + $0x50] sm:$0xff]  ;;  %s4080_s15 = sshll.u32 %s6959_s18, 3 }
  0x50   : > { %4097 = vmatmul.msk.bf16.vlgmr.msra.gmra.mxu0 %vm493_vm0, %v465_v58  ;;  %v458_v10 = vpack.c.bf16 %v6017_v8, %v409_v4  ;;  %v6027_v13 = vld [vmem:[%s5993_s8 + $0x38] sm:$0xff]  ;;  %v6030_v14 = vld [vmem:[%s5993_s8 + $0x48] sm:$0xff]  ;;  %v467_v15 = vpack.c.bf16 %v416_v12, %v414_v11  ;;  %v4147_v17 = vld [vmem:[#allocation3 + $0x40] sm:$0xf]  ;;  %s404_s10 = scalar_lea.vmem %s6951_s4, %s4080_s15 }
  0x51   : > { %816 = vmatpush.bf16.msrb.mxu0 %v4156_v0  ;;  %4105 = vmatmul.msk.bf16.vlgmr.msra.gmra.mxu1 %vm493_vm0, %v465_v58  ;;  %v459_v16 = vpack.c.bf16 %v6030_v14, %v6027_v13  ;;  %v5340_v18 = vld [vmem:[#allocation3 + $0x44] sm:$0xf0]  ;;  %v5339_v19 = vld [vmem:[#allocation3 + $0x44] sm:$0xf]  ;;  %v4149_v21 = vld [vmem:[#allocation3 + $0x48] sm:$0xf0]  ;;  %v759_v60 = vpack.c.bf16 %v6027_v13, %v6017_v8 }
  0x52   : > { %865 = vmatpush.bf16.msrb.mxu1 %v4160_v3  ;;  %4129 = vmatmul.msk.bf16.vlgmr.msra.gmra.mxu2 %vm493_vm0, %v457_v63  ;;  %v4148_v20 = vor.u32 %v5340_v18, %v4147_v17  ;;  %v4152_v22 = vor.u32 %v5339_v19, %v4149_v21  ;;  %v418_v23 = vld [vmem:[%s5993_s8 + $0x60] sm:$0xff]  ;;  %v420_v24 = vld [vmem:[%s5993_s8 + $0x70] sm:$0xff]  ;;  %v6041_v25 = vld [vmem:[%s5993_s8 + $0x58] sm:$0xff] }
  0x53   : > { %4137 = vmatmul.msk.bf16.vlgmr.msra.gmra.mxu3 %vm493_vm0, %v457_v63  ;;  %v6044_v26 = vld [vmem:[%s5993_s8 + $0x68] sm:$0xff]  ;;  %v468_v27 = vpack.c.bf16 %v420_v24, %v418_v23  ;;  %v425_v30 = vld [vmem:[%s5993_s8 + $0x98] sm:$0xff]  ;;  %v422_v32 = vld [vmem:[%s5993_s8 + $0x80] sm:$0xff]  ;;  %v760_v2 = vpack.c.bf16 %v6041_v25, %v6030_v14 }
  0x54   : > { %v460_v28 = vpack.c.bf16 %v6044_v26, %v6041_v25  ;;  %v423_v29 = vld [vmem:[%s5993_s8 + $0x88] sm:$0xff]  ;;  %v424_v33 = vld [vmem:[%s5993_s8 + $0x90] sm:$0xff]  ;;  %v421_v34 = vld [vmem:[%s5993_s8 + $0x78] sm:$0xff] }
  0x55   : > { %817 = vmatpush.bf16.msrb.mxu0 %v4148_v20  ;;  %v6053_v31 = vpack.c.bf16 %v425_v30, %v423_v29  ;;  %v469_v35 = vpack.c.bf16 %v424_v33, %v422_v32  ;;  %v461_v36 = vpack.c.bf16 %v423_v29, %v421_v34  ;;  %v427_v37 = vld [vmem:[%s5993_s8 + $0xa8] sm:$0xff]  ;;  %v429_v38 = vld [vmem:[%s5993_s8 + $0xb8] sm:$0xff]  ;;  %v426_v40 = vld [vmem:[%s5993_s8 + $0xa0] sm:$0xff]  ;;  %v761_v7 = vpack.c.bf16 %v421_v34, %v6044_v26 }
  0x56   : > { %866 = vmatpush.bf16.msrb.mxu1 %v4152_v22  ;;  %v6064_v39 = vpack.c.bf16 %v429_v38, %v427_v37  ;;  %v428_v41 = vld [vmem:[%s5993_s8 + $0xb0] sm:$0xff]  ;;  %v462_v43 = vpack.c.bf16 %v427_v37, %v425_v30  ;;  %v431_v44 = vld [vmem:[%s5993_s8 + $0xc8] sm:$0xff]  ;;  %v433_v45 = vld [vmem:[%s5993_s8 + $0xd8] sm:$0xff] }
  0x57   : > { %v470_v42 = vpack.c.bf16 %v428_v41, %v426_v40  ;;  %v6074_v46 = vpack.c.bf16 %v433_v45, %v431_v44  ;;  %v430_v47 = vld [vmem:[%s5993_s8 + $0xc0] sm:$0xff]  ;;  %v432_v48 = vld [vmem:[%s5993_s8 + $0xd0] sm:$0xff]  ;;  %v463_v50 = vpack.c.bf16 %v431_v44, %v429_v38  ;;  %v6086_v53 = vld [vmem:[%s5993_s8 + $0xe8] sm:$0xff] }
  0x58   : > { %v471_v49 = vpack.c.bf16 %v432_v48, %v430_v47  ;;  %v434_v51 = vld [vmem:[%s5993_s8 + $0xe0] sm:$0xff]  ;;  %v436_v52 = vld [vmem:[%s5993_s8 + $0xf0] sm:$0xff]  ;;  %v464_v55 = vpack.c.bf16 %v6086_v53, %v433_v45  ;;  %v5390_v11 = vld [vmem:[#allocation5 + $0x174] sm:$0xf0] }
  0x59   : > { %v472_v54 = vpack.c.bf16 %v436_v52, %v434_v51  ;;  %v4299_v12 = vld [vmem:[#allocation5 + $0x1f0] sm:$0xf]  ;;  %v5406_v14 = vld [vmem:[#allocation5 + $0x1f4] sm:$0xf0]  ;;  %v4227_v20 = vld [vmem:[#allocation5 + $0x160] sm:$0xf] }
  0x5a   : > { %v5388_v21 = vld [vmem:[#allocation5 + $0x164] sm:$0xf0]  ;;  %v4291_v22 = vld [vmem:[#allocation5 + $0x1e0] sm:$0xf]  ;;  %v4219_v30 = vld [vmem:[#allocation5 + $0x150] sm:$0xf] }
  0x5b   : > { %v4228_v23 = vor.u32 %v5388_v21, %v4227_v20  ;;  %v5404_v24 = vld [vmem:[#allocation5 + $0x1e4] sm:$0xf0]  ;;  %v5386_v32 = vld [vmem:[#allocation5 + $0x154] sm:$0xf0]  ;;  %v4283_v33 = vld [vmem:[#allocation5 + $0x1d0] sm:$0xf] }
  0x5c   : > { %v4292_v25 = vor.u32 %v5404_v24, %v4291_v22  ;;  %v4220_v34 = vor.u32 %v5386_v32, %v4219_v30  ;;  %v5358_v37 = vld [vmem:[#allocation5 + $0x74] sm:$0xf0]  ;;  %v4427_v38 = vld [vmem:[#allocation5 + $0xf0] sm:$0xf]  ;;  %v4355_v45 = vld [vmem:[#allocation5 + $0x60] sm:$0xf] }
  0x5d   : > { %v5374_v41 = vld [vmem:[#allocation5 + $0xf4] sm:$0xf0]  ;;  %v5356_v47 = vld [vmem:[#allocation5 + $0x64] sm:$0xf0]  ;;  %v4419_v48 = vld [vmem:[#allocation5 + $0xe0] sm:$0xf] }
  0x5e   : > { %v4347_v51 = vld [vmem:[#allocation5 + $0x50] sm:$0xf]  ;;  %v5354_v52 = vld [vmem:[#allocation5 + $0x54] sm:$0xf0]  ;;  %v5400_v21 = vld [vmem:[#allocation5 + $0x1c4] sm:$0xf0] }
  0x5f   : > { %v5352_v24 = vld [vmem:[#allocation5 + $0x44] sm:$0xf0]  ;;  %v4403_v30 = vld [vmem:[#allocation5 + $0xc0] sm:$0xf] }
  0x60   : > { %4098 = vmatmul.msk.bf16.gmra.mxu0 %vm493_vm0, %v466_v9  ;;  %v5368_v32 = vld [vmem:[#allocation5 + $0xc4] sm:$0xf0] }
  0x61   : > { %4106 = vmatmul.msk.bf16.gmra.mxu1 %vm493_vm0, %v466_v9 }
  0x62   : > { %4130 = vmatmul.msk.bf16.gmra.mxu2 %vm493_vm0, %v458_v10 }
  0x63   : > { %4138 = vmatmul.msk.bf16.gmra.mxu3 %vm493_vm0, %v458_v10  ;;  %v4235_v10 = vld [vmem:[#allocation5 + $0x170] sm:$0xf] }
  0x64   : > { %v4236_v13 = vor.u32 %v5390_v11, %v4235_v10 }
  0x66   : > { %1427 = vmatpush.bf16.msrb.mxu2 %v4236_v13  ;;  %v4211_v13 = vld [vmem:[#allocation5 + $0x140] sm:$0xf] }
  0x6a   : > { %1428 = vmatpush.bf16.msrb.mxu2 %v4228_v23  ;;  %v4339_v23 = vld [vmem:[#allocation5 + $0x40] sm:$0xf] }
  0x6e   : > { %1429 = vmatpush.bf16.msrb.mxu2 %v4220_v34  ;;  %v4331_v34 = vld [vmem:[#allocation5 + $0x30] sm:$0xf] }
  0x70   : > { %4099 = vmatmul.msk.bf16.gmra.mxu0 %vm493_vm0, %v467_v15 }
  0x71   : > { %4107 = vmatmul.msk.bf16.gmra.mxu1 %vm493_vm0, %v467_v15  ;;  %v4300_v15 = vor.u32 %v5406_v14, %v4299_v12  ;;  %v5384_v14 = vld [vmem:[#allocation5 + $0x144] sm:$0xf0] }
  0x72   : > { %4131 = vmatmul.msk.bf16.gmra.mxu2 %vm493_vm0, %v459_v16  ;;  %v4212_v20 = vor.u32 %v5384_v14, %v4211_v13  ;;  %v5398_v13 = vld [vmem:[#allocation5 + $0x1b4] sm:$0xf0]  ;;  %v4315_v14 = vld [vmem:[#allocation5 + $0x10] sm:$0xf] }
  0x73   : > { %4139 = vmatmul.msk.bf16.gmra.mxu3 %vm493_vm0, %v459_v16 }
  0x74   : > { %1456 = vmatpush.bf16.msrb.mxu3 %v4300_v15  ;;  %v4275_v15 = vld [vmem:[#allocation5 + $0x1c0] sm:$0xf]  ;;  %1430 = vmatpush.bf16.msrb.mxu2 %v4212_v20 }
  0x75   : > { %v4276_v22 = vor.u32 %v5400_v21, %v4275_v15  ;;  %v5346_v15 = vld [vmem:[#allocation5 + $0x14] sm:$0xf0] }
  0x78   : > { %1457 = vmatpush.bf16.msrb.mxu3 %v4292_v25  ;;  %v4340_v25 = vor.u32 %v5352_v24, %v4339_v23  ;;  %v4379_v23 = vld [vmem:[#allocation5 + $0x90] sm:$0xf]  ;;  %v5362_v24 = vld [vmem:[#allocation5 + $0x94] sm:$0xf0] }
  0x80   : > { %4100 = vmatmul.msk.bf16.gmra.mxu0 %vm493_vm0, %v468_v27 }
  0x81   : > { %4108 = vmatmul.msk.bf16.gmra.mxu1 %vm493_vm0, %v468_v27 }
  0x82   : > { %4132 = vmatmul.msk.bf16.gmra.mxu2 %vm493_vm0, %v460_v28 }
  0x83   : > { %4140 = vmatmul.msk.bf16.gmra.mxu3 %vm493_vm0, %v460_v28 }
  0x90   : > { %4101 = vmatmul.msk.bf16.gmra.mxu0 %vm493_vm0, %v469_v35 }
  0x91   : > { %4109 = vmatmul.msk.bf16.gmra.mxu1 %vm493_vm0, %v469_v35  ;;  %v5402_v35 = vld [vmem:[#allocation5 + $0x1d4] sm:$0xf0] }
  0x92   : > { %4133 = vmatmul.msk.bf16.gmra.mxu2 %vm493_vm0, %v461_v36 }
  0x93   : > { %4141 = vmatmul.msk.bf16.gmra.mxu3 %vm493_vm0, %v461_v36  ;;  %v4284_v36 = vor.u32 %v5402_v35, %v4283_v33  ;;  %v4404_v33 = vor.u32 %v5368_v32, %v4403_v30  ;;  %v5350_v35 = vld [vmem:[#allocation5 + $0x34] sm:$0xf0]  ;;  %v4380_v30 = vor.u32 %v5362_v24, %v4379_v23  ;;  %v4195_v32 = vld [vmem:[#allocation5 + $0x120] sm:$0xf]  ;;  %v5392_v23 = vld [vmem:[#allocation5 + $0x184] sm:$0xf0] }
  0x95   : > { %1458 = vmatpush.bf16.msrb.mxu3 %v4284_v36  ;;  %v4395_v36 = vld [vmem:[#allocation5 + $0xb0] sm:$0xf] }
  0x99   : > { %1459 = vmatpush.bf16.msrb.mxu3 %v4276_v22  ;;  %v4316_v22 = vor.u32 %v5346_v15, %v4315_v14  ;;  %v5376_v15 = vld [vmem:[#allocation5 + $0x104] sm:$0xf0] }
  0xa0   : > { %4102 = vmatmul.msk.bf16.gmra.mxu0 %vm493_vm0, %v470_v42 }
  0xa1   : > { %4110 = vmatmul.msk.bf16.gmra.mxu1 %vm493_vm0, %v470_v42 }
  0xa2   : > { %4134 = vmatmul.msk.bf16.gmra.mxu2 %vm493_vm0, %v462_v43 }
  0xa3   : > { %4142 = vmatmul.msk.bf16.gmra.mxu3 %vm493_vm0, %v462_v43  ;;  %v4428_v43 = vor.u32 %v5374_v41, %v4427_v38 }
  0xa5   : > { %1732 = vmatpush.bf16.msra.mxu1 %v4428_v43 }
  0xb0   : > { %4103 = vmatmul.msk.bf16.gmra.mxu0 %vm493_vm0, %v471_v49 }
  0xb1   : > { %4111 = vmatmul.msk.bf16.gmra.mxu1 %vm493_vm0, %v471_v49  ;;  %v4356_v49 = vor.u32 %v5356_v47, %v4355_v45  ;;  %v4323_v45 = vld [vmem:[#allocation5 + $0x20] sm:$0xf]  ;;  %v5348_v47 = vld [vmem:[#allocation5 + $0x24] sm:$0xf0] }
  0xb2   : > { %4135 = vmatmul.msk.bf16.gmra.mxu2 %vm493_vm0, %v463_v50 }
  0xb3   : > { %4143 = vmatmul.msk.bf16.gmra.mxu3 %vm493_vm0, %v463_v50  ;;  %v5372_v50 = vld [vmem:[#allocation5 + $0xe4] sm:$0xf0] }
  0xc0   : > { %4104 = vmatmul.msk.bf16.gmra.mxu0 %vm493_vm0, %v472_v54 }
  0xc1   : > { %4112 = vmatmul.msk.bf16.gmra.mxu1 %vm493_vm0, %v472_v54  ;;  %v4411_v54 = vld [vmem:[#allocation5 + $0xd0] sm:$0xf] }
  0xc2   : > { %4136 = vmatmul.msk.bf16.gmra.mxu2 %vm493_vm0, %v464_v55 }
  0xc3   : > { %4144 = vmatmul.msk.bf16.gmra.mxu3 %vm493_vm0, %v464_v55 }
  0xcd   : > { %v6093_v56 = vpop.f32.mrf.mxu0 }
  0xce   : > { %v6095_v57 = vpop.f32.mrf.mxu1 }
  0xd0   : > { %4161 = vmatmul.msk.bf16.vlgmr.msrb.gmra.mxu0 %vm493_vm0, %v6008_v5 }
  0xd1   : > { %4169 = vmatmul.msk.bf16.vlgmr.msrb.gmra.mxu1 %vm493_vm0, %v6008_v5 }
  0xd5   : > { %v6101_v58 = vpop.f32.mrf.mxu0  ;;  %v6164_v55 = vpop.f32.mrf.mxu2 }
  0xd6   : > { %v6103_v59 = vpop.f32.mrf.mxu1 }
  0xdd   : > { %v6107_v61 = vpop.f32.mrf.mxu0  ;;  %v6178_v41 = vpop.f32.mrf.mxu2 }
  0xde   : > { %v6109_v63 = vpop.f32.mrf.mxu1 }
  0xe0   : > { %4162 = vmatmul.msk.bf16.gmra.mxu0 %vm493_vm0, %v759_v60 }
  0xe1   : > { %4170 = vmatmul.msk.bf16.gmra.mxu1 %vm493_vm0, %v759_v60  ;;  %v4348_v60 = vor.u32 %v5354_v52, %v4347_v51  ;;  %v4203_v52 = vld [vmem:[#allocation5 + $0x130] sm:$0xf] }
  0xe5   : > { %v6113_v0 = vpop.f32.mrf.mxu0 }
  0xe6   : > { %v6115_v1 = vpop.f32.mrf.mxu1 }
  0xed   : > { %v6119_v3 = vpop.f32.mrf.mxu0 }
  0xee   : > { %v6121_v4 = vpop.f32.mrf.mxu1 }
  0xf0   : > { %4163 = vmatmul.msk.bf16.gmra.mxu0 %vm493_vm0, %v760_v2 }
  0xf1   : > { %4171 = vmatmul.msk.bf16.gmra.mxu1 %vm493_vm0, %v760_v2  ;;  %v5370_v2 = vld [vmem:[#allocation5 + $0xd4] sm:$0xf0] }
  0xf2   : > { %v4412_v11 = vor.u32 %v5370_v2, %v4411_v54  ;;  %v5382_v54 = vld [vmem:[#allocation5 + $0x134] sm:$0xf0] }
  0xf5   : > { %v6125_v5 = vpop.f32.mrf.mxu0 }
  0xf6   : > { %v6127_v6 = vpop.f32.mrf.mxu1 }
  0xfd   : > { %v6130_v8 = vpop.f32.mrf.mxu0 }
  0xfe   : > { %v6132_v9 = vpop.f32.mrf.mxu1 }
 0x100   : > { %4164 = vmatmul.msk.bf16.gmra.mxu0 %vm493_vm0, %v761_v7 }
 0x101   : > { %4172 = vmatmul.msk.bf16.gmra.mxu1 %vm493_vm0, %v761_v7  ;;  %v6166_v7 = vpop.f32.mrf.mxu3 }
 0x105   : > { %v6136_v16 = vpop.f32.mrf.mxu0 }
 0x106   : > { %v6138_v17 = vpop.f32.mrf.mxu1 }
 0x109   : > { %v6182_v43 = vpop.f32.mrf.mxu3 }
 0x10d   : > { %v6140_v18 = vpop.f32.mrf.mxu0 }
 0x10e   : > { %v6142_v19 = vpop.f32.mrf.mxu1 }
 0x110   : > { %4165 = vmatmul.msk.bf16.gmra.mxu0 %vm493_vm0, %v6053_v31 }
 0x111   : > { %4173 = vmatmul.msk.bf16.gmra.mxu1 %vm493_vm0, %v6053_v31  ;;  %v4363_v31 = vld [vmem:[#allocation5 + $0x70] sm:$0xf] }
 0x112   : > { %v4364_v40 = vor.u32 %v5358_v37, %v4363_v31  ;;  %v4332_v31 = vor.u32 %v5350_v35, %v4331_v34  ;;  %v5366_v37 = vld [vmem:[#allocation5 + $0xb4] sm:$0xf0]  ;;  %v674_v34 = vpop.f32.mrf.mxu2 }
 0x114   : > { %1703 = vmatpush.bf16.msra.mxu0 %v4364_v40  ;;  %v4396_v40 = vor.u32 %v5366_v37, %v4395_v36  ;;  %v5396_v36 = vld [vmem:[#allocation5 + $0x1a4] sm:$0xf0] }
 0x115   : > { %v6148_v26 = vpop.f32.mrf.mxu0  ;;  %v5344_v37 = vld [vmem:[#allocation5 + $0x4] sm:$0xf0] }
 0x116   : > { %v6150_v27 = vpop.f32.mrf.mxu1 }
 0x118   : > { %1704 = vmatpush.bf16.msra.mxu0 %v4356_v49  ;;  %v4387_v49 = vld [vmem:[#allocation5 + $0xa0] sm:$0xf] }
 0x11c   : > { %1705 = vmatpush.bf16.msra.mxu0 %v4348_v60  ;;  %v4267_v60 = vld [vmem:[#allocation5 + $0x1b0] sm:$0xf] }
 0x11d   : > { %v6152_v28 = vpop.f32.mrf.mxu0  ;;  %v4268_v21 = vor.u32 %v5398_v13, %v4267_v60  ;;  %v5394_v60 = vld [vmem:[#allocation5 + $0x194] sm:$0xf0] }
 0x11e   : > { %v6154_v29 = vpop.f32.mrf.mxu1 }
 0x11f   : > { %1460 = vmatpush.bf16.msrb.mxu3 %v4268_v21  ;;  %v4243_v21 = vld [vmem:[#allocation5 + $0x180] sm:$0xf] }
 0x120   : > { %4166 = vmatmul.msk.bf16.gmra.mxu0 %vm493_vm0, %v6064_v39  ;;  %v4244_v24 = vor.u32 %v5392_v23, %v4243_v21 }
 0x121   : > { %4174 = vmatmul.msk.bf16.gmra.mxu1 %vm493_vm0, %v6064_v39  ;;  %v4420_v39 = vor.u32 %v5372_v50, %v4419_v48  ;;  %1706 = vmatpush.bf16.msra.mxu0 %v4340_v25  ;;  %v4324_v48 = vor.u32 %v5348_v47, %v4323_v45  ;;  %v5364_v50 = vld [vmem:[#allocation5 + $0xa4] sm:$0xf0] }
 0x122   : > { %v4388_v51 = vor.u32 %v5364_v50, %v4387_v49  ;;  %v5360_v49 = vld [vmem:[#allocation5 + $0x84] sm:$0xf0] }
 0x123   : > { %1733 = vmatpush.bf16.msra.mxu1 %v4420_v39  ;;  %v437_v39 = vld [vmem:[%s5993_s8 + $0xf8] sm:$0xff] }
 0x124   : > { %v765_v2 = vpack.c.bf16 %v437_v39, %v6086_v53  ;;  %v4259_v53 = vld [vmem:[#allocation5 + $0x1a0] sm:$0xf]  ;;  %v4187_v39 = vld [vmem:[#allocation5 + $0x110] sm:$0xf] }
 0x125   : > { %v6160_v42 = vpop.f32.mrf.mxu0  ;;  %1707 = vmatpush.bf16.msra.mxu0 %v4332_v31  ;;  %v4307_v31 = vld [vmem:[#allocation5] sm:$0xf]  ;;  %v4260_v45 = vor.u32 %v5396_v36, %v4259_v53  ;;  %v670_v36 = vadd.f32 %v6164_v55, %v6093_v56 }
 0x126   : > { %v6162_v44 = vpop.f32.mrf.mxu1  ;;  %v4308_v47 = vor.u32 %v5344_v37, %v4307_v31  ;;  %v719_v31 = vadd.f32 %v6166_v7, %v6095_v57  ;;  %v672_v37 = vadd.f32 %v6178_v41, %v6101_v58  ;;  %v454_v58 = vld [vmem:[#allocation7 + $0x1] ss:$8 sm:$0x3] }
 0x127   : > { %1734 = vmatpush.bf16.msra.mxu1 %v4412_v11  ;;  %v4204_v11 = vor.u32 %v5382_v54, %v4203_v52  ;;  %1461 = vmatpush.bf16.msrb.mxu3 %v4260_v45  ;;  %v4251_v52 = vld [vmem:[#allocation5 + $0x190] sm:$0xf] }
 0x128   : > { %v4252_v13 = vor.u32 %v5394_v60, %v4251_v52  ;;  %v456_v60 = vld [vmem:[#allocation7 + $0x2] ss:$8 sm:$0x3] }
 0x129   : > { %1708 = vmatpush.bf16.msra.mxu0 %v4324_v48  ;;  %1431 = vmatpush.bf16.msrb.mxu2 %v4204_v11  ;;  %v4371_v48 = vld [vmem:[#allocation5 + $0x80] sm:$0xf] }
 0x12a   : > { %v4372_v50 = vor.u32 %v5360_v49, %v4371_v48  ;;  %v721_v49 = vadd.f32 %v6182_v43, %v6103_v59  ;;  %v675_v59 = vadd.f32 %v674_v34, %v6107_v61 }
 0x12b   : > { %1735 = vmatpush.bf16.msra.mxu1 %v4404_v33  ;;  %v5380_v33 = vld [vmem:[#allocation5 + $0x124] sm:$0xf0]  ;;  %1462 = vmatpush.bf16.msrb.mxu3 %v4252_v13 }
 0x12c   : > { %v4196_v35 = vor.u32 %v5380_v33, %v4195_v32 }
 0x12d   : > { %v6168_v10 = vpop.f32.mrf.mxu0  ;;  %1709 = vmatpush.bf16.msra.mxu0 %v4316_v22 }
 0x12e   : > { %v6170_v12 = vpop.f32.mrf.mxu1  ;;  %1432 = vmatpush.bf16.msrb.mxu2 %v4196_v35  ;;  %v452_v35 = vld [vmem:[#allocation7] ss:$8 sm:$0x3] }
 0x12f   : > { %1736 = vmatpush.bf16.msra.mxu1 %v4396_v40  ;;  %v723_v40 = vpop.f32.mrf.mxu3  ;;  %1463 = vmatpush.bf16.msrb.mxu3 %v4244_v24  ;;  %v6208_v48 = vperm.slane %v452_v35, 0  ;;  %v6224_v24 = vperm.slane %v456_v60, 0 }
 0x130   : > { %4167 = vmatmul.msk.bf16.gmra.mxu0 %vm493_vm0, %v6074_v46 }
 0x131   : > { %4175 = vmatmul.msk.bf16.gmra.mxu1 %vm493_vm0, %v6074_v46  ;;  %1710 = vmatpush.bf16.msra.mxu0 %v4308_v47 }
 0x133   : > { %1737 = vmatpush.bf16.msra.mxu1 %v4388_v51  ;;  %v5378_v51 = vld [vmem:[#allocation5 + $0x114] sm:$0xf0] }
 0x134   : > { %v4188_v54 = vor.u32 %v5378_v51, %v4187_v39  ;;  %v6214_v51 = vperm.slane %v452_v35, 1 }
 0x135   : > { %v6176_v38 = vpop.f32.mrf.mxu0 }
 0x136   : > { %v6180_v46 = vpop.f32.mrf.mxu1  ;;  %1433 = vmatpush.bf16.msrb.mxu2 %v4188_v54 }
 0x137   : > { %1738 = vmatpush.bf16.msra.mxu1 %v4380_v30  ;;  %v6196_v30 = vpop.f32.mrf.mxu2  ;;  %v6198_v32 = vpop.f32.mrf.mxu3 }
 0x13b   : > { %1739 = vmatpush.bf16.msra.mxu1 %v4372_v50 }
 0x13d   : > { %v6186_v20 = vpop.f32.mrf.mxu0 }
 0x13e   : > { %v6188_v25 = vpop.f32.mrf.mxu1 }
 0x13f   : > { %v6206_v45 = vpop.f32.mrf.mxu2  ;;  %v6212_v50 = vpop.f32.mrf.mxu3 }
 0x140   : > { %4168 = vmatmul.msk.bf16.gmra.mxu0 %vm493_vm0, %v765_v2 }
 0x141   : > { %4176 = vmatmul.msk.bf16.gmra.mxu1 %vm493_vm0, %v765_v2  ;;  %v4179_v2 = vld [vmem:[#allocation5 + $0x100] sm:$0xf] }
 0x142   : > { %v4180_v22 = vor.u32 %v5376_v15, %v4179_v2  ;;  %v724_v2 = vadd.f32 %v723_v40, %v6109_v63  ;;  %v6222_v15 = vperm.slane %v454_v58, 0  ;;  %v6232_v40 = vperm.slane %v456_v60, 1 }
 0x144   : > { %1434 = vmatpush.bf16.msrb.mxu2 %v4180_v22 }
 0x145   : > { %v6192_v11 = vpop.f32.mrf.mxu0 }
 0x146   : > { %v6194_v14 = vpop.f32.mrf.mxu1 }
 0x147   : > { %v6229_v34 = vpop.f32.mrf.mxu2 }
 0x14d   : > { %v819_v33 = vpop.f32.mrf.mxu0 }
 0x14e   : > { %v868_v53 = vpop.f32.mrf.mxu1  ;;  %v908_v47 = vadd.f32 %v819_v33, %v670_v36  ;;  %v6226_v33 = vperm.slane %v454_v58, 1 }
 0x14f   : > { %v909_v39 = vadd.f32 %v868_v53, %v719_v31 }
 0x150   : > { %v945_v7 = vadd.f32 %v6208_v48, %v908_v47  ;;  %v730_v47 = vpop.f32.mrf.mxu3 }
 0x151   : > { %v946_v54 = vadd.f32 %v6214_v51, %v909_v39 }
 0x152   : > { %v1009_v22 = vmul.f32 0.2, %v945_v7  ;;  %vm977_vm3 = vcmp.ge.f32.partialorder %v945_v7, 0.0 }
 0x153   : > { %v1010_v53 = vmul.f32 0.2, %v946_v54  ;;  %vm978_vm4 = vcmp.ge.f32.partialorder %v946_v54, 0.0 }
 0x155   : > { %v821_v56 = vpop.f32.mrf.mxu0 }
 0x156   : > { %v910_v55 = vadd.f32 %v821_v56, %v672_v37  ;;  %v870_v52 = vpop.f32.mrf.mxu1  ;;  %v1041_v56 = vsel %vm977_vm3, %v945_v7, %v1009_v22 }
 0x157   : > { %v911_v57 = vadd.f32 %v870_v52, %v721_v49  ;;  %v1078_v7 = vmul.f32 %v6222_v15, %v1041_v56 }
 0x158   : > { %v947_v41 = vadd.f32 %v6208_v48, %v910_v55 }
 0x159   : > { %v948_v13 = vadd.f32 %v6214_v51, %v911_v57  ;;  %v1042_v57 = vsel %vm978_vm4, %v946_v54, %v1010_v53 }
 0x15a   : > { %vm979_vm1 = vcmp.ge.f32.partialorder %v947_v41, 0.0  ;;  %v1011_v43 = vmul.f32 0.2, %v947_v41 }
 0x15b   : > { %vm980_vm2 = vcmp.ge.f32.partialorder %v948_v13, 0.0  ;;  %v1012_v21 = vmul.f32 0.2, %v948_v13 }
 0x15c   : > { %v1043_v23 = vsel %vm979_vm1, %v947_v41, %v1011_v43  ;;  %v677_v43 = vadd.f32 %v6196_v30, %v6113_v0  ;;  %v684_v30 = vpop.f32.mrf.mxu2 }
 0x15d   : > { %v1080_v35 = vmul.f32 %v6222_v15, %v1043_v23  ;;  %v1044_v36 = vsel %vm980_vm2, %v948_v13, %v1012_v21  ;;  %v824_v61 = vpop.f32.mrf.mxu0  ;;  %v726_v21 = vadd.f32 %v6198_v32, %v6115_v1  ;;  %v733_v32 = vpop.f32.mrf.mxu3 }
 0x15e   : > { %v1081_v63 = vmul.f32 %v6226_v33, %v1044_v36  ;;  %v912_v31 = vadd.f32 %v824_v61, %v675_v59  ;;  %v873_v37 = vpop.f32.mrf.mxu1 }
 0x15f   : > { %v1117_v49 = vadd.f32 %v6224_v24, %v1080_v35  ;;  %v913_v39 = vadd.f32 %v873_v37, %v724_v2  ;;  %v1079_v2 = vmul.f32 %v6226_v33, %v1042_v57 }
 0x160   : > { %v1118_v55 = vadd.f32 %v6232_v40, %v1081_v63  ;;  %v949_v52 = vadd.f32 %v6208_v48, %v912_v31  ;;  %v1115_v31 = vadd.f32 %v6224_v24, %v1078_v7 }
 0x161   : > { %v950_v58 = vadd.f32 %v6214_v51, %v913_v39  ;;  %v6239_v41 = vpack.c.bf16 %v1117_v49, %v5824_v62  ;;  %v1116_v39 = vadd.f32 %v6232_v40, %v1079_v2 }
 0x162   : > { %vm981_vm5 = vcmp.ge.f32.partialorder %v949_v52, 0.0  ;;  %v1013_v60 = vmul.f32 0.2, %v949_v52  ;;  %v6242_v13 = vpack.c.bf16 %v1118_v55, %v5824_v62 }
 0x163   : > { %vm982_vm6 = vcmp.ge.f32.partialorder %v950_v58, 0.0  ;;  %v1014_v59 = vmul.f32 0.2, %v950_v58  ;;  %1711 = vmatmul.bf16.vlgmr.msra.gmra.mxu0 %v6239_v41 }
 0x164   : > { %v1045_v54 = vsel %vm981_vm5, %v949_v52, %v1013_v60  ;;  %1740 = vmatmul.bf16.vlgmr.msra.gmra.mxu1 %v6242_v13 }
 0x165   : > { %v1046_v22 = vsel %vm982_vm6, %v950_v58, %v1014_v59  ;;  %v826_v23 = vpop.f32.mrf.mxu0  ;;  %v1082_v53 = vmul.f32 %v6222_v15, %v1045_v54 }
 0x166   : > { %v914_v35 = vadd.f32 %v826_v23, %v677_v43  ;;  %v875_v36 = vpop.f32.mrf.mxu1  ;;  %v1083_v61 = vmul.f32 %v6226_v33, %v1046_v22 }
 0x167   : > { %v915_v63 = vadd.f32 %v875_v36, %v726_v21  ;;  %v1119_v0 = vadd.f32 %v6224_v24, %v1082_v53  ;;  %v729_v36 = vadd.f32 %v6212_v50, %v6121_v4 }
 0x168   : > { %v951_v37 = vadd.f32 %v6208_v48, %v914_v35  ;;  %v1120_v1 = vadd.f32 %v6232_v40, %v1083_v61  ;;  %v680_v35 = vadd.f32 %v6206_v45, %v6119_v3  ;;  %v686_v61 = vpop.f32.mrf.mxu2 }
 0x169   : > { %v952_v56 = vadd.f32 %v6214_v51, %v915_v63  ;;  %v6260_v52 = vpack.c.bf16 %v1119_v0, %v1115_v31  ;;  %v735_v31 = vpop.f32.mrf.mxu3  ;;  %v682_v0 = vadd.f32 %v6229_v34, %v6125_v5  ;;  %v685_v5 = vadd.f32 %v684_v30, %v6130_v8 }
 0x16a   : > { %vm983_vm7 = vcmp.ge.f32.partialorder %v951_v37, 0.0  ;;  %v1015_v57 = vmul.f32 0.2, %v951_v37  ;;  %v6262_v58 = vpack.c.bf16 %v1120_v1, %v1116_v39  ;;  %v731_v1 = vadd.f32 %v730_v47, %v6127_v6 }
 0x16b   : > { %vm984_vm8 = vcmp.ge.f32.partialorder %v952_v56, 0.0  ;;  %v1016_v60 = vmul.f32 0.2, %v952_v56  ;;  %1435 = vmatmul.bf16.vlgmr.msrb.gmra.mxu2 %v6260_v52 }
 0x16c   : > { %v1047_v59 = vsel %vm983_vm7, %v951_v37, %v1015_v57  ;;  %1464 = vmatmul.bf16.vlgmr.msrb.gmra.mxu3 %v6262_v58 }
 0x16d   : > { %v1048_v7 = vsel %vm984_vm8, %v952_v56, %v1016_v60  ;;  %v829_v43 = vpop.f32.mrf.mxu0  ;;  %v1084_v54 = vmul.f32 %v6222_v15, %v1047_v59 }
 0x16e   : > { %v878_v2 = vpop.f32.mrf.mxu1  ;;  %v1085_v21 = vmul.f32 %v6226_v33, %v1048_v7  ;;  %v916_v37 = vadd.f32 %v829_v43, %v680_v35  ;;  %v734_v43 = vadd.f32 %v733_v32, %v6132_v9 }
 0x16f   : > { %v1121_v22 = vadd.f32 %v6224_v24, %v1084_v54  ;;  %v917_v39 = vadd.f32 %v878_v2, %v729_v36  ;;  %v5389_v36 = vld [vmem:[#allocation5 + $0x174] sm:$0xf] }
 0x170   : > { %v1122_v23 = vadd.f32 %v6232_v40, %v1085_v21  ;;  %v953_v3 = vadd.f32 %v6208_v48, %v916_v37  ;;  %v6286_v59 = vpop.f32.mrf.mxu2  ;;  %v5405_v37 = vld [vmem:[#allocation5 + $0x1f4] sm:$0xf] }
 0x171   : > { %v6270_v53 = vpack.c.bf16 %v1121_v22, %v1117_v49  ;;  %v954_v45 = vadd.f32 %v6214_v51, %v917_v39  ;;  %v6289_v54 = vpop.f32.mrf.mxu3 }
 0x172   : > { %v6276_v63 = vpack.c.bf16 %v1122_v23, %v1118_v55  ;;  %vm985_vm11 = vcmp.ge.f32.partialorder %v953_v3, 0.0  ;;  %v1017_v6 = vmul.f32 0.2, %v953_v3 }
 0x173   : > { %v1018_v47 = vmul.f32 0.2, %v954_v45  ;;  %vm986_vm12 = vcmp.ge.f32.partialorder %v954_v45, 0.0 }
 0x175   : > { %v831_v56 = vpop.f32.mrf.mxu0 }
 0x176   : > { %v918_v49 = vadd.f32 %v831_v56, %v682_v0  ;;  %v880_v57 = vpop.f32.mrf.mxu1  ;;  %v4237_v0 = vld [vmem:[#allocation5 + $0x178] sm:$0xf0] }
 0x177   : > { %v919_v60 = vadd.f32 %v880_v57, %v731_v1  ;;  %v4240_v1 = vor.u32 %v5389_v36, %v4237_v0  ;;  %v4301_v56 = vld [vmem:[#allocation5 + $0x1f8] sm:$0xf0] }
 0x178   : > { %v955_v4 = vadd.f32 %v6208_v48, %v918_v49  ;;  %v4304_v9 = vor.u32 %v5405_v37, %v4301_v56 }
 0x179   : > { %v956_v50 = vadd.f32 %v6214_v51, %v919_v60  ;;  %1485 = vmatpush.bf16.msra.mxu2 %v4240_v1 }
 0x17a   : > { %vm987_vm9 = vcmp.ge.f32.partialorder %v955_v4, 0.0  ;;  %v1019_v55 = vmul.f32 0.2, %v955_v4  ;;  %1514 = vmatpush.bf16.msra.mxu3 %v4304_v9 }
 0x17b   : > { %vm988_vm10 = vcmp.ge.f32.partialorder %v956_v50, 0.0  ;;  %v1020_v34 = vmul.f32 0.2, %v956_v50 }
 0x17c   : > { %v1051_v7 = vsel %vm987_vm9, %v955_v4, %v1019_v55  ;;  %v1049_v4 = vsel %vm985_vm11, %v953_v3, %v1017_v6  ;;  %v5387_v3 = vld [vmem:[#allocation5 + $0x164] sm:$0xf]  ;;  %v687_v6 = vadd.f32 %v686_v61, %v6136_v16 }
 0x17d   : > { %v1052_v2 = vsel %vm988_vm10, %v956_v50, %v1020_v34  ;;  %v834_v21 = vpop.f32.mrf.mxu0  ;;  %v1088_v35 = vmul.f32 %v6222_v15, %v1051_v7 }
 0x17e   : > { %v920_v8 = vadd.f32 %v834_v21, %v685_v5  ;;  %v883_v30 = vpop.f32.mrf.mxu1  ;;  %v1089_v39 = vmul.f32 %v6226_v33, %v1052_v2  ;;  %v1050_v5 = vsel %vm986_vm12, %v954_v45, %v1018_v47  ;;  %v1086_v2 = vmul.f32 %v6222_v15, %v1049_v4  ;;  %v4229_v47 = vld [vmem:[#allocation5 + $0x168] sm:$0xf0] }
 0x17f   : > { %v921_v49 = vadd.f32 %v883_v30, %v734_v43  ;;  %v6294_v57 = vadd.f32 %v6224_v24, %v1088_v35  ;;  %v736_v21 = vadd.f32 %v735_v31, %v6138_v17  ;;  %v1087_v45 = vmul.f32 %v6226_v33, %v1050_v5  ;;  %v5403_v35 = vld [vmem:[#allocation5 + $0x1e4] sm:$0xf]  ;;  %v740_v17 = vpop.f32.mrf.mxu3 }
 0x180   : > { %v957_v32 = vadd.f32 %v6208_v48, %v920_v8  ;;  %v6298_v60 = vadd.f32 %v6232_v40, %v1089_v39  ;;  %v4232_v8 = vor.u32 %v5387_v3, %v4229_v47  ;;  %v691_v39 = vpop.f32.mrf.mxu2  ;;  %v1123_v31 = vadd.f32 %v6224_v24, %v1086_v2  ;;  %v4221_v47 = vld [vmem:[#allocation5 + $0x158] sm:$0xf0] }
 0x181   : > { %v958_v50 = vadd.f32 %v6214_v51, %v921_v49  ;;  %v6303_v55 = vpack.c.bf16 %v6294_v57, %v1121_v22 }
 0x182   : > { %vm989_vm13 = vcmp.ge.f32.partialorder %v957_v32, 0.0  ;;  %v1021_v34 = vmul.f32 0.2, %v957_v32  ;;  %v6306_v7 = vpack.c.bf16 %v6298_v60, %v1122_v23  ;;  %v4293_v23 = vld [vmem:[#allocation5 + $0x1e8] sm:$0xf0]  ;;  %1486 = vmatpush.bf16.msra.mxu2 %v4232_v8  ;;  %v690_v8 = vadd.f32 %v6286_v59, %v6140_v18 }
 0x183   : > { %vm990_vm14 = vcmp.ge.f32.partialorder %v958_v50, 0.0  ;;  %v1022_v43 = vmul.f32 0.2, %v958_v50  ;;  %1716 = vmatmul.bf16.gmra.mxu0 %v6303_v55  ;;  %v4296_v30 = vor.u32 %v5403_v35, %v4293_v23  ;;  %v5401_v35 = vld [vmem:[#allocation5 + $0x1d4] sm:$0xf] }
 0x184   : > { %1745 = vmatmul.bf16.gmra.mxu1 %v6306_v7  ;;  %v1053_v22 = vsel %vm989_vm13, %v957_v32, %v1021_v34  ;;  %v1124_v32 = vadd.f32 %v6232_v40, %v1087_v45  ;;  %v5385_v45 = vld [vmem:[#allocation5 + $0x154] sm:$0xf] }
 0x185   : > { %v836_v36 = vpop.f32.mrf.mxu0  ;;  %v1090_v0 = vmul.f32 %v6222_v15, %v1053_v22  ;;  %v1054_v37 = vsel %vm990_vm14, %v958_v50, %v1022_v43  ;;  %1515 = vmatpush.bf16.msra.mxu3 %v4296_v30 }
 0x186   : > { %v922_v1 = vadd.f32 %v836_v36, %v687_v6  ;;  %v885_v56 = vpop.f32.mrf.mxu1  ;;  %v1091_v16 = vmul.f32 %v6226_v33, %v1054_v37  ;;  %v4285_v37 = vld [vmem:[#allocation5 + $0x1d8] sm:$0xf0] }
 0x187   : > { %v923_v61 = vadd.f32 %v885_v56, %v736_v21  ;;  %v1127_v49 = vadd.f32 %v6224_v24, %v1090_v0  ;;  %v4224_v0 = vor.u32 %v5385_v45, %v4221_v47  ;;  %v739_v56 = vadd.f32 %v6289_v54, %v6142_v19  ;;  %v4213_v54 = vld [vmem:[#allocation5 + $0x148] sm:$0xf0]  ;;  %v4555_v45 = vld [vmem:[#allocation5 + $0x2f0] sm:$0xf] }
 0x188   : > { %v959_v9 = vadd.f32 %v6208_v48, %v922_v1  ;;  %v1128_v4 = vadd.f32 %v6232_v40, %v1091_v16  ;;  %v4288_v1 = vor.u32 %v5401_v35, %v4285_v37  ;;  %v694_v16 = vpop.f32.mrf.mxu2  ;;  %v692_v19 = vadd.f32 %v691_v39, %v6148_v26 }
 0x189   : > { %v960_v50 = vadd.f32 %v6214_v51, %v923_v61  ;;  %v6322_v5 = vpack.c.bf16 %v1127_v49, %v1123_v31  ;;  %1487 = vmatpush.bf16.msra.mxu2 %v4224_v0  ;;  %v743_v31 = vpop.f32.mrf.mxu3  ;;  %v4483_v0 = vld [vmem:[#allocation5 + $0x260] sm:$0xf] }
 0x18a   : > { %vm991_vm15 = vcmp.ge.f32.partialorder %v959_v9, 0.0  ;;  %v1023_v34 = vmul.f32 0.2, %v959_v9  ;;  %v6324_v43 = vpack.c.bf16 %v1128_v4, %v1124_v32  ;;  %1516 = vmatpush.bf16.msra.mxu3 %v4288_v1  ;;  %v5383_v32 = vld [vmem:[#allocation5 + $0x144] sm:$0xf] }
 0x18b   : > { %vm992_vm0 = vcmp.ge.f32.partialorder %v960_v50, 0.0  ;;  %v1024_v2 = vmul.f32 0.2, %v960_v50  ;;  %1440 = vmatmul.bf16.gmra.mxu2 %v6322_v5  ;;  %v5399_v4 = vld [vmem:[#allocation5 + $0x1c4] sm:$0xf] }
 0x18c   : > { %v1055_v3 = vsel %vm991_vm15, %v959_v9, %v1023_v34  ;;  %1469 = vmatmul.bf16.gmra.mxu3 %v6324_v43  ;;  %v741_v34 = vadd.f32 %v740_v17, %v6150_v27  ;;  %v5420_v27 = vld [vmem:[#allocation5 + $0x264] sm:$0xf0]  ;;  %v4547_v17 = vld [vmem:[#allocation5 + $0x2e0] sm:$0xf] }
 0x18d   : > { %v1056_v6 = vsel %vm992_vm0, %v960_v50, %v1024_v2  ;;  %v839_v21 = vpop.f32.mrf.mxu0  ;;  %v1092_v22 = vmul.f32 %v6222_v15, %v1055_v3  ;;  %v4277_v50 = vld [vmem:[#allocation5 + $0x1c8] sm:$0xf0]  ;;  %v5436_v1 = vld [vmem:[#allocation5 + $0x2e4] sm:$0xf0] }
 0x18e   : > { %v888_v23 = vpop.f32.mrf.mxu1  ;;  %v1093_v36 = vmul.f32 %v6226_v33, %v1056_v6  ;;  %v924_v49 = vadd.f32 %v839_v21, %v690_v8  ;;  %v4216_v6 = vor.u32 %v5383_v32, %v4213_v54  ;;  %v4280_v21 = vor.u32 %v5399_v4, %v4277_v50 }
 0x18f   : > { %v6333_v30 = vadd.f32 %v6224_v24, %v1092_v22  ;;  %v925_v18 = vadd.f32 %v888_v23, %v739_v56  ;;  %v5422_v22 = vld [vmem:[#allocation5 + $0x274] sm:$0xf0]  ;;  %v4484_v8 = vor.u32 %v5420_v27, %v4483_v0 }
 0x190   : > { %v6338_v61 = vadd.f32 %v6232_v40, %v1093_v36  ;;  %v961_v2 = vadd.f32 %v6208_v48, %v924_v49  ;;  %v5438_v36 = vld [vmem:[#allocation5 + $0x2f4] sm:$0xf0]  ;;  %1488 = vmatpush.bf16.msra.mxu2 %v4216_v6  ;;  %1517 = vmatpush.bf16.msra.mxu3 %v4280_v21  ;;  %v6354_v32 = vpop.f32.mrf.mxu2  ;;  %v744_v6 = vadd.f32 %v743_v31, %v6154_v29  ;;  %v4269_v31 = vld [vmem:[#allocation5 + $0x1b8] sm:$0xf0] }
 0x191   : > { %v6342_v9 = vpack.c.bf16 %v6333_v30, %v6294_v57  ;;  %v4491_v57 = vld [vmem:[#allocation5 + $0x270] sm:$0xf]  ;;  %v962_v47 = vadd.f32 %v6214_v51, %v925_v18  ;;  %v4556_v39 = vor.u32 %v5438_v36, %v4555_v45  ;;  %v4548_v18 = vor.u32 %v5436_v1, %v4547_v17  ;;  %v6356_v4 = vpop.f32.mrf.mxu3  ;;  %v5434_v45 = vld [vmem:[#allocation5 + $0x2d4] sm:$0xf0]  ;;  %v5381_v36 = vld [vmem:[#allocation5 + $0x134] sm:$0xf] }
 0x192   : > { %v6346_v59 = vpack.c.bf16 %v6338_v61, %v6298_v60  ;;  %v4492_v23 = vor.u32 %v5422_v22, %v4491_v57  ;;  %v1025_v56 = vmul.f32 0.2, %v961_v2  ;;  %vm993_vm1 = vcmp.ge.f32.partialorder %v961_v2, 0.0  ;;  %v5418_v57 = vld [vmem:[#allocation5 + $0x254] sm:$0xf0] }
 0x193   : > { %2016 = vmatpush.bf16.msrb.mxu1 %v4556_v39  ;;  %vm994_vm3 = vcmp.ge.f32.partialorder %v962_v47, 0.0  ;;  %v4539_v22 = vld [vmem:[#allocation5 + $0x2d0] sm:$0xf]  ;;  %v5397_v39 = vld [vmem:[#allocation5 + $0x1b4] sm:$0xf] }
 0x194   : > { %1987 = vmatpush.bf16.msrb.mxu0 %v4492_v23  ;;  %v4540_v27 = vor.u32 %v5434_v45, %v4539_v22  ;;  %v1057_v29 = vsel %vm993_vm1, %v961_v2, %v1025_v56  ;;  %v5432_v56 = vld [vmem:[#allocation5 + $0x2c4] sm:$0xf0] }
 0x195   : > { %v841_v3 = vpop.f32.mrf.mxu0 }
 0x196   : > { %v926_v60 = vadd.f32 %v841_v3, %v692_v19  ;;  %v890_v35 = vpop.f32.mrf.mxu1  ;;  %v1026_v19 = vmul.f32 0.2, %v962_v47  ;;  %v695_v3 = vadd.f32 %v694_v16, %v6152_v28 }
 0x197   : > { %v927_v26 = vadd.f32 %v890_v35, %v741_v34  ;;  %v4475_v34 = vld [vmem:[#allocation5 + $0x250] sm:$0xf]  ;;  %2017 = vmatpush.bf16.msrb.mxu1 %v4548_v18  ;;  %v4272_v18 = vor.u32 %v5397_v39, %v4269_v31  ;;  %v5395_v39 = vld [vmem:[#allocation5 + $0x1a4] sm:$0xf]  ;;  %v5414_v31 = vld [vmem:[#allocation5 + $0x234] sm:$0xf0] }
 0x198   : > { %v963_v37 = vadd.f32 %v6208_v48, %v926_v60  ;;  %1988 = vmatpush.bf16.msrb.mxu0 %v4484_v8  ;;  %v4476_v0 = vor.u32 %v5418_v57, %v4475_v34 }
 0x199   : > { %v964_v49 = vadd.f32 %v6214_v51, %v927_v26  ;;  %v4205_v26 = vld [vmem:[#allocation5 + $0x138] sm:$0xf0]  ;;  %1518 = vmatpush.bf16.msra.mxu3 %v4272_v18 }
 0x19a   : > { %vm995_vm2 = vcmp.ge.f32.partialorder %v963_v37, 0.0  ;;  %v1027_v54 = vmul.f32 0.2, %v963_v37  ;;  %v4208_v16 = vor.u32 %v5381_v36, %v4205_v26  ;;  %v4197_v26 = vld [vmem:[#allocation5 + $0x128] sm:$0xf0] }
 0x19b   : > { %vm996_vm4 = vcmp.ge.f32.partialorder %v964_v49, 0.0  ;;  %v1028_v50 = vmul.f32 0.2, %v964_v49  ;;  %2018 = vmatpush.bf16.msrb.mxu1 %v4540_v27 }
 0x19c   : > { %v1059_v21 = vsel %vm995_vm2, %v963_v37, %v1027_v54  ;;  %v4467_v54 = vld [vmem:[#allocation5 + $0x240] sm:$0xf]  ;;  %1489 = vmatpush.bf16.msra.mxu2 %v4208_v16  ;;  %1989 = vmatpush.bf16.msrb.mxu0 %v4476_v0  ;;  %v4261_v0 = vld [vmem:[#allocation5 + $0x1a8] sm:$0xf0]  ;;  %v4459_v16 = vld [vmem:[#allocation5 + $0x230] sm:$0xf] }
 0x19d   : > { %v1060_v60 = vsel %vm996_vm4, %v964_v49, %v1028_v50  ;;  %v844_v35 = vpop.f32.mrf.mxu0  ;;  %v1096_v23 = vmul.f32 %v6222_v15, %v1059_v21  ;;  %v1058_v49 = vsel %vm994_vm3, %v962_v47, %v1026_v19  ;;  %v5416_v50 = vld [vmem:[#allocation5 + $0x244] sm:$0xf0]  ;;  %v4531_v21 = vld [vmem:[#allocation5 + $0x2c0] sm:$0xf] }
 0x19e   : > { %v928_v17 = vadd.f32 %v844_v35, %v695_v3  ;;  %v893_v1 = vpop.f32.mrf.mxu1  ;;  %v1097_v28 = vmul.f32 %v6226_v33, %v1060_v60  ;;  %v4468_v2 = vor.u32 %v5416_v50, %v4467_v54  ;;  %v4532_v47 = vor.u32 %v5432_v56, %v4531_v21  ;;  %v5379_v35 = vld [vmem:[#allocation5 + $0x124] sm:$0xf]  ;;  %v5430_v50 = vld [vmem:[#allocation5 + $0x2b4] sm:$0xf0]  ;;  %v4451_v56 = vld [vmem:[#allocation5 + $0x220] sm:$0xf] }
 0x19f   : > { %v929_v37 = vadd.f32 %v893_v1, %v744_v6  ;;  %v6364_v8 = vadd.f32 %v6224_v24, %v1096_v23  ;;  %v1094_v60 = vmul.f32 %v6222_v15, %v1057_v29  ;;  %v6382_v23 = vpop.f32.mrf.mxu2  ;;  %v1095_v36 = vmul.f32 %v6226_v33, %v1058_v49 }
 0x1a0   : > { %v965_v34 = vadd.f32 %v6208_v48, %v928_v17  ;;  %v6369_v3 = vadd.f32 %v6232_v40, %v1097_v28  ;;  %1990 = vmatpush.bf16.msrb.mxu0 %v4468_v2  ;;  %2019 = vmatpush.bf16.msrb.mxu1 %v4532_v47  ;;  %v4200_v28 = vor.u32 %v5379_v35, %v4197_v26  ;;  %v4515_v47 = vld [vmem:[#allocation5 + $0x2a0] sm:$0xf] }
 0x1a1   : > { %v966_v6 = vadd.f32 %v6214_v51, %v929_v37  ;;  %v6374_v57 = vpack.c.bf16 %v6364_v8, %v6333_v30  ;;  %v4264_v29 = vor.u32 %v5395_v39, %v4261_v0  ;;  %v4523_v37 = vld [vmem:[#allocation5 + $0x2b0] sm:$0xf]  ;;  %v4460_v54 = vor.u32 %v5414_v31, %v4459_v16  ;;  %v5377_v31 = vld [vmem:[#allocation5 + $0x114] sm:$0xf] }
 0x1a2   : > { %vm997_vm5 = vcmp.ge.f32.partialorder %v965_v34, 0.0  ;;  %v1029_v19 = vmul.f32 0.2, %v965_v34  ;;  %v6378_v22 = vpack.c.bf16 %v6369_v3, %v6338_v61  ;;  %v6386_v61 = vpop.f32.mrf.mxu3  ;;  %v1131_v21 = vadd.f32 %v6224_v24, %v1094_v60  ;;  %1490 = vmatpush.bf16.msra.mxu2 %v4200_v28  ;;  %v4507_v16 = vld [vmem:[#allocation5 + $0x290] sm:$0xf] }
 0x1a3   : > { %vm998_vm6 = vcmp.ge.f32.partialorder %v966_v6, 0.0  ;;  %v1030_v45 = vmul.f32 0.2, %v966_v6  ;;  %1721 = vmatmul.bf16.gmra.mxu0 %v6374_v57  ;;  %1519 = vmatpush.bf16.msra.mxu3 %v4264_v29  ;;  %v4524_v2 = vor.u32 %v5430_v50, %v4523_v37  ;;  %v697_v26 = vadd.f32 %v6354_v32, %v6160_v42  ;;  %v5410_v29 = vld [vmem:[#allocation5 + $0x214] sm:$0xf0] }
 0x1a4   : > { %1750 = vmatmul.bf16.gmra.mxu1 %v6378_v22  ;;  %v1061_v30 = vsel %vm997_vm5, %v965_v34, %v1029_v19  ;;  %v1132_v19 = vadd.f32 %v6232_v40, %v1095_v36  ;;  %1991 = vmatpush.bf16.msrb.mxu0 %v4460_v54  ;;  %v746_v0 = vadd.f32 %v6356_v4, %v6162_v44  ;;  %v4443_v36 = vld [vmem:[#allocation5 + $0x210] sm:$0xf]  ;;  %v5426_v42 = vld [vmem:[#allocation5 + $0x294] sm:$0xf0]  ;;  %v4189_v37 = vld [vmem:[#allocation5 + $0x118] sm:$0xf0] }
 0x1a5   : > { %v846_v27 = vpop.f32.mrf.mxu0  ;;  %v1098_v17 = vmul.f32 %v6222_v15, %v1061_v30  ;;  %v1062_v1 = vsel %vm998_vm6, %v966_v6, %v1030_v45  ;;  %v5412_v6 = vld [vmem:[#allocation5 + $0x224] sm:$0xf0]  ;;  %2020 = vmatpush.bf16.msrb.mxu1 %v4524_v2  ;;  %v4444_v54 = vor.u32 %v5410_v29, %v4443_v36  ;;  %v4508_v44 = vor.u32 %v5426_v42, %v4507_v16  ;;  %v4245_v36 = vld [vmem:[#allocation5 + $0x188] sm:$0xf0] }
 0x1a6   : > { %v895_v18 = vpop.f32.mrf.mxu1  ;;  %v1099_v49 = vmul.f32 %v6226_v33, %v1062_v1  ;;  %v4452_v35 = vor.u32 %v5412_v6, %v4451_v56  ;;  %v5428_v30 = vld [vmem:[#allocation5 + $0x2a4] sm:$0xf0]  ;;  %v930_v1 = vadd.f32 %v846_v27, %v697_v26  ;;  %v4192_v50 = vor.u32 %v5377_v31, %v4189_v37  ;;  %v4253_v27 = vld [vmem:[#allocation5 + $0x198] sm:$0xf0] }
 0x1a7   : > { %v1135_v34 = vadd.f32 %v6224_v24, %v1098_v17  ;;  %v4516_v60 = vor.u32 %v5428_v30, %v4515_v47  ;;  %v931_v28 = vadd.f32 %v895_v18, %v746_v0  ;;  %v701_v2 = vpop.f32.mrf.mxu2  ;;  %v4499_v47 = vld [vmem:[#allocation5 + $0x280] sm:$0xf]  ;;  %v5391_v0 = vld [vmem:[#allocation5 + $0x184] sm:$0xf]  ;;  %v749_v42 = vadd.f32 %v6386_v61, %v6170_v12 }
 0x1a8   : > { %v1136_v45 = vadd.f32 %v6232_v40, %v1099_v49  ;;  %1992 = vmatpush.bf16.msrb.mxu0 %v4452_v35  ;;  %v5393_v49 = vld [vmem:[#allocation5 + $0x194] sm:$0xf]  ;;  %v967_v56 = vadd.f32 %v6208_v48, %v930_v1  ;;  %v700_v35 = vadd.f32 %v6382_v23, %v6168_v10  ;;  %1491 = vmatpush.bf16.msra.mxu2 %v4192_v50 }
 0x1a9   : > { %v6397_v39 = vpack.c.bf16 %v1135_v34, %v1131_v21  ;;  %2021 = vmatpush.bf16.msrb.mxu1 %v4516_v60  ;;  %v4435_v21 = vld [vmem:[#allocation5 + $0x200] sm:$0xf]  ;;  %v5408_v34 = vld [vmem:[#allocation5 + $0x204] sm:$0xf0]  ;;  %v4256_v6 = vor.u32 %v5393_v49, %v4253_v27  ;;  %v968_v30 = vadd.f32 %v6214_v51, %v931_v28  ;;  %v4181_v60 = vld [vmem:[#allocation5 + $0x108] sm:$0xf0]  ;;  %v4248_v1 = vor.u32 %v5391_v0, %v4245_v36 }
 0x1aa   : > { %v6401_v17 = vpack.c.bf16 %v1136_v45, %v1132_v19  ;;  %v750_v18 = vpop.f32.mrf.mxu3  ;;  %v5424_v19 = vld [vmem:[#allocation5 + $0x284] sm:$0xf0]  ;;  %v5375_v45 = vld [vmem:[#allocation5 + $0x104] sm:$0xf]  ;;  %v4436_v26 = vor.u32 %v5408_v34, %v4435_v21  ;;  %v1031_v31 = vmul.f32 0.2, %v967_v56  ;;  %v702_v10 = vadd.f32 %v701_v2, %v6176_v38 }
 0x1ab   : > { %1445 = vmatmul.bf16.gmra.mxu2 %v6397_v39  ;;  %1520 = vmatpush.bf16.msra.mxu3 %v4256_v6  ;;  %v4500_v29 = vor.u32 %v5424_v19, %v4499_v47  ;;  %v4184_v16 = vor.u32 %v5375_v45, %v4181_v60  ;;  %vm999_vm7 = vcmp.ge.f32.partialorder %v967_v56, 0.0  ;;  %v751_v23 = vadd.f32 %v750_v18, %v6180_v46  ;;  %v5373_v60 = vld [vmem:[#allocation5 + $0xf4] sm:$0xf] }
 0x1ac   : > { %1474 = vmatmul.bf16.gmra.mxu3 %v6401_v17  ;;  %1993 = vmatpush.bf16.msrb.mxu0 %v4444_v54  ;;  %v1032_v28 = vmul.f32 0.2, %v968_v30  ;;  %vm1000_vm8 = vcmp.ge.f32.partialorder %v968_v30, 0.0  ;;  %v1063_v27 = vsel %vm999_vm7, %v967_v56, %v1031_v31 }
 0x1ad   : > { %v849_v32 = vpop.f32.mrf.mxu0  ;;  %2022 = vmatpush.bf16.msrb.mxu1 %v4508_v44  ;;  %1492 = vmatpush.bf16.msra.mxu2 %v4184_v16  ;;  %v1100_v18 = vmul.f32 %v6222_v15, %v1063_v27 }
 0x1ae   : > { %v898_v4 = vpop.f32.mrf.mxu1  ;;  %v932_v37 = vadd.f32 %v849_v32, %v700_v35  ;;  %v1064_v34 = vsel %vm1000_vm8, %v968_v30, %v1032_v28  ;;  %v5357_v30 = vld [vmem:[#allocation5 + $0x74] sm:$0xf] }
 0x1af   : > { %v933_v49 = vadd.f32 %v898_v4, %v749_v42  ;;  %1521 = vmatpush.bf16.msra.mxu3 %v4248_v1  ;;  %v704_v38 = vpop.f32.mrf.mxu2  ;;  %v1101_v35 = vmul.f32 %v6226_v33, %v1064_v34  ;;  %v4429_v42 = vld [vmem:[#allocation5 + $0xf8] sm:$0xf0]  ;;  %v5371_v34 = vld [vmem:[#allocation5 + $0xe4] sm:$0xf] }
 0x1b0   : > { %1994 = vmatpush.bf16.msrb.mxu0 %v4436_v26  ;;  %v969_v12 = vadd.f32 %v6208_v48, %v932_v37  ;;  %v705_v47 = vadd.f32 %v704_v38, %v6186_v20  ;;  %v4365_v26 = vld [vmem:[#allocation5 + $0x78] sm:$0xf0]  ;;  %v5355_v38 = vld [vmem:[#allocation5 + $0x64] sm:$0xf] }
 0x1b1   : > { %2023 = vmatpush.bf16.msrb.mxu1 %v4500_v29  ;;  %v970_v2 = vadd.f32 %v6214_v51, %v933_v49  ;;  %v4368_v1 = vor.u32 %v5357_v30, %v4365_v26 }
 0x1b2   : > { %v753_v21 = vpop.f32.mrf.mxu3  ;;  %vm1001_vm10 = vcmp.ge.f32.partialorder %v969_v12, 0.0  ;;  %v1033_v6 = vmul.f32 0.2, %v969_v12 }
 0x1b3   : > { %v754_v19 = vadd.f32 %v753_v21, %v6188_v25  ;;  %v1034_v0 = vmul.f32 0.2, %v970_v2  ;;  %vm1002_vm12 = vcmp.ge.f32.partialorder %v970_v2, 0.0  ;;  %1761 = vmatpush.bf16.msrb.mxu2 %v4368_v1  ;;  %v4357_v21 = vld [vmem:[#allocation5 + $0x68] sm:$0xf0] }
 0x1b4   : > { %v5353_v1 = vld [vmem:[#allocation5 + $0x54] sm:$0xf] }
 0x1b5   : > { %v851_v54 = vpop.f32.mrf.mxu0 }
 0x1b6   : > { %v934_v44 = vadd.f32 %v851_v54, %v702_v10  ;;  %v900_v50 = vpop.f32.mrf.mxu1  ;;  %v4432_v10 = vor.u32 %v5373_v60, %v4429_v42  ;;  %v6431_v54 = vadd.f32 %v6232_v40, %v1101_v35  ;;  %v4349_v42 = vld [vmem:[#allocation5 + $0x58] sm:$0xf0] }
 0x1b7   : > { %v935_v61 = vadd.f32 %v900_v50, %v751_v23  ;;  %v6424_v23 = vadd.f32 %v6224_v24, %v1100_v18  ;;  %v1065_v50 = vsel %vm1001_vm10, %v969_v12, %v1033_v6  ;;  %v4360_v18 = vor.u32 %v5355_v38, %v4357_v21  ;;  %v4421_v12 = vld [vmem:[#allocation5 + $0xe8] sm:$0xf0]  ;;  %v5349_v21 = vld [vmem:[#allocation5 + $0x34] sm:$0xf] }
 0x1b8   : > { %v971_v32 = vadd.f32 %v6208_v48, %v934_v44  ;;  %1790 = vmatpush.bf16.msrb.mxu3 %v4432_v10 }
 0x1b9   : > { %v972_v46 = vadd.f32 %v6214_v51, %v935_v61  ;;  %1762 = vmatpush.bf16.msrb.mxu2 %v4360_v18 }
 0x1ba   : > { %vm1003_vm9 = vcmp.ge.f32.partialorder %v971_v32, 0.0  ;;  %v1035_v4 = vmul.f32 0.2, %v971_v32 }
 0x1bb   : > { %vm1004_vm11 = vcmp.ge.f32.partialorder %v972_v46, 0.0  ;;  %v1036_v56 = vmul.f32 0.2, %v972_v46 }
 0x1bc   : > { %v1067_v45 = vsel %vm1003_vm9, %v971_v32, %v1035_v4  ;;  %v1066_v32 = vsel %vm1002_vm12, %v970_v2, %v1034_v0 }
 0x1bd   : > { %v1068_v36 = vsel %vm1004_vm11, %v972_v46, %v1036_v56  ;;  %v854_v29 = vpop.f32.mrf.mxu0  ;;  %v1104_v16 = vmul.f32 %v6222_v15, %v1067_v45  ;;  %v1102_v56 = vmul.f32 %v6222_v15, %v1065_v50  ;;  %v5367_v50 = vld [vmem:[#allocation5 + $0xc4] sm:$0xf] }
 0x1be   : > { %v936_v31 = vadd.f32 %v854_v29, %v705_v47  ;;  %v903_v37 = vpop.f32.mrf.mxu1  ;;  %v1105_v20 = vmul.f32 %v6226_v33, %v1068_v36  ;;  %v4424_v47 = vor.u32 %v5371_v34, %v4421_v12  ;;  %v4333_v34 = vld [vmem:[#allocation5 + $0x38] sm:$0xf0] }
 0x1bf   : > { %v937_v25 = vadd.f32 %v903_v37, %v754_v19  ;;  %v6427_v28 = vadd.f32 %v6224_v24, %v1104_v16  ;;  %v1103_v19 = vmul.f32 %v6226_v33, %v1066_v32  ;;  %v1139_v26 = vadd.f32 %v6224_v24, %v1102_v56  ;;  %v4405_v32 = vld [vmem:[#allocation5 + $0xc8] sm:$0xf0]  ;;  %v4397_v12 = vld [vmem:[#allocation5 + $0xb8] sm:$0xf0]  ;;  %v5347_v56 = vld [vmem:[#allocation5 + $0x24] sm:$0xf] }
 0x1c0   : > { %v973_v49 = vadd.f32 %v6208_v48, %v936_v31  ;;  %v6434_v44 = vadd.f32 %v6232_v40, %v1105_v20  ;;  %1791 = vmatpush.bf16.msrb.mxu3 %v4424_v47  ;;  %v5369_v31 = vld [vmem:[#allocation5 + $0xd4] sm:$0xf]  ;;  %v4352_v37 = vor.u32 %v5353_v1, %v4349_v42  ;;  %v4413_v20 = vld [vmem:[#allocation5 + $0xd8] sm:$0xf0]  ;;  %v4408_v38 = vor.u32 %v5367_v50, %v4405_v32  ;;  %v4325_v47 = vld [vmem:[#allocation5 + $0x28] sm:$0xf0] }
 0x1c1   : > { %v974_v27 = vadd.f32 %v6214_v51, %v937_v25  ;;  %v6440_v61 = vpack.c.bf16 %v6427_v28, %v6424_v23  ;;  %v1140_v0 = vadd.f32 %v6232_v40, %v1103_v19  ;;  %v4416_v10 = vor.u32 %v5369_v31, %v4413_v20  ;;  %v5351_v25 = vld [vmem:[#allocation5 + $0x44] sm:$0xf]  ;;  %v5345_v42 = vld [vmem:[#allocation5 + $0x14] sm:$0xf]  ;;  %v4317_v31 = vld [vmem:[#allocation5 + $0x18] sm:$0xf0] }
 0x1c2   : > { %vm1005_vm13 = vcmp.ge.f32.partialorder %v973_v49, 0.0  ;;  %v1037_v46 = vmul.f32 0.2, %v973_v49  ;;  %v6445_v4 = vpack.c.bf16 %v6434_v44, %v6431_v54  ;;  %1763 = vmatpush.bf16.msrb.mxu2 %v4352_v37  ;;  %v4336_v18 = vor.u32 %v5349_v21, %v4333_v34  ;;  %v5361_v37 = vld [vmem:[#allocation5 + $0x94] sm:$0xf] }
 0x1c3   : > { %vm1006_vm14 = vcmp.ge.f32.partialorder %v974_v27, 0.0  ;;  %v1038_v6 = vmul.f32 0.2, %v974_v27  ;;  %1726 = vmatmul.bf16.gmra.mxu0 %v6440_v61  ;;  %v4328_v19 = vor.u32 %v5347_v56, %v4325_v47  ;;  %v5343_v21 = vld [vmem:[#allocation5 + $0x4] sm:$0xf] }
 0x1c4   : > { %1755 = vmatmul.bf16.gmra.mxu1 %v6445_v4  ;;  %v1069_v2 = vsel %vm1005_vm13, %v973_v49, %v1037_v46  ;;  %1792 = vmatpush.bf16.msrb.mxu3 %v4416_v10  ;;  %v4341_v49 = vld [vmem:[#allocation5 + $0x48] sm:$0xf0]  ;;  %v5365_v46 = vld [vmem:[#allocation5 + $0xb4] sm:$0xf]  ;;  %v4320_v10 = vor.u32 %v5345_v42, %v4317_v31  ;;  %v4541_v31 = vld [vmem:[#allocation5 + $0x2d8] sm:$0xf0] }
 0x1c5   : > { %v1106_v45 = vmul.f32 %v6222_v15, %v1069_v2  ;;  %v1070_v35 = vsel %vm1006_vm14, %v974_v27, %v1038_v6  ;;  %v4344_v27 = vor.u32 %v5351_v25, %v4341_v49  ;;  %v4400_v6 = vor.u32 %v5365_v46, %v4397_v12  ;;  %v5363_v2 = vld [vmem:[#allocation5 + $0xa4] sm:$0xf]  ;;  %v4381_v25 = vld [vmem:[#allocation5 + $0x98] sm:$0xf0]  ;;  %v4309_v34 = vld [vmem:[#allocation5 + $0x8] sm:$0xf0] }
 0x1c6   : > { %v1107_v30 = vmul.f32 %v6226_v33, %v1070_v35  ;;  %v4384_v50 = vor.u32 %v5361_v37, %v4381_v25  ;;  %v5359_v46 = vld [vmem:[#allocation5 + $0x84] sm:$0xf]  ;;  %v4312_v12 = vor.u32 %v5343_v21, %v4309_v34  ;;  %v5429_v21 = vld [vmem:[#allocation5 + $0x2b4] sm:$0xf] }
 0x1c7   : > { %v1143_v60 = vadd.f32 %v6224_v24, %v1106_v45  ;;  %1764 = vmatpush.bf16.msrb.mxu2 %v4344_v27  ;;  %v4389_v45 = vld [vmem:[#allocation5 + $0xa8] sm:$0xf0]  ;;  %v5415_v37 = vld [vmem:[#allocation5 + $0x244] sm:$0xf] }
 0x1c8   : > { %v1144_v36 = vadd.f32 %v6232_v40, %v1107_v30  ;;  %1793 = vmatpush.bf16.msrb.mxu3 %v4408_v38  ;;  %v4392_v35 = vor.u32 %v5363_v2, %v4389_v45  ;;  %v706_v30 = vpop.f32.mrf.mxu2  ;;  %v5421_v2 = vld [vmem:[#allocation5 + $0x274] sm:$0xf] }
 0x1c9   : > { %v6457_v29 = vpack.c.bf16 %v1143_v60, %v1139_v26  ;;  %v707_v26 = vadd.f32 %v706_v30, %v6192_v11  ;;  %v905_v60 = vpop.f32.mrf.mxu1  ;;  %v5437_v45 = vld [vmem:[#allocation5 + $0x2f4] sm:$0xf] }
 0x1ca   : > { %v6459_v16 = vpack.c.bf16 %v1144_v36, %v1140_v0 }
 0x1cb   : > { %1450 = vmatmul.bf16.gmra.mxu2 %v6457_v29 }
 0x1cc   : > { %1479 = vmatmul.bf16.gmra.mxu3 %v6459_v16  ;;  %1765 = vmatpush.bf16.msrb.mxu2 %v4336_v18 }
 0x1cd   : > { %1794 = vmatpush.bf16.msrb.mxu3 %v4400_v6  ;;  %v4373_v6 = vld [vmem:[#allocation5 + $0x88] sm:$0xf0] }
 0x1d0   : > { %1766 = vmatpush.bf16.msrb.mxu2 %v4328_v19  ;;  %v4493_v19 = vld [vmem:[#allocation5 + $0x278] sm:$0xf0] }
 0x1d1   : > { %1795 = vmatpush.bf16.msrb.mxu3 %v4392_v35  ;;  %v4496_v30 = vor.u32 %v5421_v2, %v4493_v19 }
 0x1d3   : > { %1995 = vmatmul.bf16.vlgmr.msrb.gmra.mxu0 %v6270_v53 }
 0x1d4   : > { %2024 = vmatmul.bf16.vlgmr.msrb.gmra.mxu1 %v6276_v63  ;;  %1767 = vmatpush.bf16.msrb.mxu2 %v4320_v10  ;;  %v5431_v10 = vld [vmem:[#allocation5 + $0x2c4] sm:$0xf] }
 0x1d5   : > { %1796 = vmatpush.bf16.msrb.mxu3 %v4384_v50 }
 0x1d8   : > { %1768 = vmatpush.bf16.msrb.mxu2 %v4312_v12 }
 0x1db   : > { %1493 = vmatmul.bf16.vlgmr.msra.gmra.mxu2 %v6260_v52  ;;  %v755_v52 = vpop.f32.mrf.mxu3 }
 0x1dc   : > { %1522 = vmatmul.bf16.vlgmr.msra.gmra.mxu3 %v6262_v58  ;;  %v856_v58 = vpop.f32.mrf.mxu0  ;;  %v756_v0 = vadd.f32 %v755_v52, %v6194_v14  ;;  %v4557_v52 = vld [vmem:[#allocation5 + $0x2f8] sm:$0xf0]  ;;  %2045 = vmatpush.bf16.msra.mxu2 %v4496_v30  ;;  %v5425_v30 = vld [vmem:[#allocation5 + $0x294] sm:$0xf] }
 0x1dd   : > { %v938_v36 = vadd.f32 %v856_v58, %v707_v26  ;;  %v4560_v26 = vor.u32 %v5437_v45, %v4557_v52  ;;  %v5409_v45 = vld [vmem:[#allocation5 + $0x214] sm:$0xf] }
 0x1de   : > { %v939_v1 = vadd.f32 %v905_v60, %v756_v0  ;;  %v4485_v60 = vld [vmem:[#allocation5 + $0x268] sm:$0xf0] }
 0x1df   : > { %v975_v20 = vadd.f32 %v6208_v48, %v938_v36  ;;  %v6481_v48 = vpack.c.bf16 %v6431_v54, %v6369_v3  ;;  %v4549_v36 = vld [vmem:[#allocation5 + $0x2e8] sm:$0xf0] }
 0x1e0   : > { %v976_v11 = vadd.f32 %v6214_v51, %v939_v1  ;;  %v5433_v1 = vld [vmem:[#allocation5 + $0x2d4] sm:$0xf] }
 0x1e1   : > { %v1039_v32 = vmul.f32 0.2, %v975_v20  ;;  %vm1007_vm15 = vcmp.ge.f32.partialorder %v975_v20, 0.0  ;;  %v1741_v18 = vpop.f32.mrf.mxu1 }
 0x1e2   : > { %v1040_v51 = vmul.f32 0.2, %v976_v11  ;;  %vm1008_vm0 = vcmp.ge.f32.partialorder %v976_v11, 0.0 }
 0x1e3   : > { %2000 = vmatmul.bf16.gmra.mxu0 %v6342_v9  ;;  %v1071_v56 = vsel %vm1007_vm15, %v975_v20, %v1039_v32  ;;  %v4469_v20 = vld [vmem:[#allocation5 + $0x248] sm:$0xf0] }
 0x1e4   : > { %2029 = vmatmul.bf16.gmra.mxu1 %v6346_v59  ;;  %v1712_v38 = vpop.f32.mrf.mxu0  ;;  %v1072_v3 = vsel %vm1008_vm0, %v976_v11, %v1040_v51  ;;  %v1108_v54 = vmul.f32 %v6222_v15, %v1071_v56  ;;  %v4472_v25 = vor.u32 %v5415_v37, %v4469_v20  ;;  %v4437_v37 = vld [vmem:[#allocation5 + $0x208] sm:$0xf0]  ;;  %v5423_v20 = vld [vmem:[#allocation5 + $0x284] sm:$0xf] }
 0x1e5   : > { %v1109_v47 = vmul.f32 %v6226_v33, %v1072_v3  ;;  %v5419_v33 = vld [vmem:[#allocation5 + $0x264] sm:$0xf]  ;;  %v4517_v3 = vld [vmem:[#allocation5 + $0x2a8] sm:$0xf0] }
 0x1e6   : > { %v1145_v35 = vadd.f32 %v6224_v24, %v1108_v54  ;;  %v4488_v0 = vor.u32 %v5419_v33, %v4485_v60 }
 0x1e7   : > { %v1146_v58 = vadd.f32 %v6232_v40, %v1109_v47  ;;  %v5417_v40 = vld [vmem:[#allocation5 + $0x254] sm:$0xf] }
 0x1e8   : > { %v6494_v15 = vpack.c.bf16 %v1145_v35, %v6427_v28  ;;  %2046 = vmatpush.bf16.msra.mxu2 %v4488_v0  ;;  %v4477_v28 = vld [vmem:[#allocation5 + $0x258] sm:$0xf0] }
 0x1e9   : > { %v4480_v42 = vor.u32 %v5417_v40, %v4477_v28  ;;  %v4445_v35 = vld [vmem:[#allocation5 + $0x218] sm:$0xf0]  ;;  %v5486_v40 = vld [vmem:[#allocation5 + $0x474] sm:$0xf0] }
 0x1ea   : > { %v4448_v52 = vor.u32 %v5409_v45, %v4445_v35  ;;  %v4579_v45 = vld [vmem:[#allocation5 + $0x420] sm:$0xf]  ;;  %v5476_v35 = vld [vmem:[#allocation5 + $0x424] sm:$0xf0] }
 0x1eb   : > { %1498 = vmatmul.bf16.gmra.mxu2 %v6322_v5  ;;  %v6477_v5 = vpack.c.bf16 %v6424_v23, %v6364_v8  ;;  %v4376_v8 = vor.u32 %v5359_v46, %v4373_v6  ;;  %v5411_v6 = vld [vmem:[#allocation5 + $0x224] sm:$0xf] }
 0x1ec   : > { %1527 = vmatmul.bf16.gmra.mxu3 %v6324_v43  ;;  %2047 = vmatpush.bf16.msra.mxu2 %v4480_v42  ;;  %v6503_v50 = vpop.f32.mrf.mxu0 }
 0x1ed   : > { %1797 = vmatpush.bf16.msrb.mxu3 %v4376_v8  ;;  %v5427_v8 = vld [vmem:[#allocation5 + $0x2a4] sm:$0xf] }
 0x1ee   : > { %v1436_v49 = vpop.f32.mrf.mxu2  ;;  %v4520_v54 = vor.u32 %v5427_v8, %v4517_v3  ;;  %v4587_v8 = vld [vmem:[#allocation5 + $0x430] sm:$0xf] }
 0x1ef   : > { %v1465_v27 = vpop.f32.mrf.mxu3 }
 0x1f0   : > { %v1466_v14 = vadd.f32 %v1465_v27, %v1436_v49  ;;  %v4533_v49 = vld [vmem:[#allocation5 + $0x2c8] sm:$0xf0]  ;;  %v6507_v27 = vpop.f32.mrf.mxu1  ;;  %2048 = vmatpush.bf16.msra.mxu2 %v4472_v25 }
 0x1f1   : > { %2074 = vmatpush.bf16.msra.mxu3 %v4560_v26 }
 0x1f2   : > { %v1713_v43 = vadd.f32 %v1712_v38, %v1466_v14  ;;  %v5413_v38 = vld [vmem:[#allocation5 + $0x234] sm:$0xf] }
 0x1f3   : > { %2005 = vmatmul.bf16.gmra.mxu0 %v6477_v5 }
 0x1f4   : > { %2034 = vmatmul.bf16.gmra.mxu1 %v6481_v48  ;;  %v6485_v23 = vadd.f32 %v1741_v18, %v1713_v43  ;;  %v4461_v43 = vld [vmem:[#allocation5 + $0x238] sm:$0xf0] }
 0x1f5   : > { %v4464_v51 = vor.u32 %v5413_v38, %v4461_v43  ;;  %v4525_v18 = vld [vmem:[#allocation5 + $0x2b8] sm:$0xf0]  ;;  %v5482_v38 = vld [vmem:[#allocation5 + $0x454] sm:$0xf0] }
 0x1f6   : > { %v6505_v11 = vpop.f32.mrf.mxu2  ;;  %v4528_v12 = vor.u32 %v5429_v21, %v4525_v18  ;;  %v4595_v18 = vld [vmem:[#allocation5 + $0x440] sm:$0xf] }
 0x1f7   : > { %2049 = vmatpush.bf16.msra.mxu2 %v4464_v51 }
 0x1fb   : > { %1503 = vmatmul.bf16.gmra.mxu2 %v6397_v39  ;;  %v5435_v39 = vld [vmem:[#allocation5 + $0x2e4] sm:$0xf] }
 0x1fc   : > { %1532 = vmatmul.bf16.gmra.mxu3 %v6401_v17  ;;  %v6497_v17 = vpack.c.bf16 %v1146_v58, %v6434_v44  ;;  %v4552_v24 = vor.u32 %v5435_v39, %v4549_v36  ;;  %v4544_v44 = vor.u32 %v5433_v1, %v4541_v31  ;;  %v4509_v58 = vld [vmem:[#allocation5 + $0x298] sm:$0xf0] }
 0x1fd   : > { %v4512_v60 = vor.u32 %v5425_v30, %v4509_v58  ;;  %v4580_v30 = vor.u32 %v5476_v35, %v4579_v45  ;;  %v4571_v58 = vld [vmem:[#allocation5 + $0x410] sm:$0xf]  ;;  %v5454_v35 = vld [vmem:[#allocation5 + $0x374] sm:$0xf0] }
 0x1fe   : > { %2075 = vmatpush.bf16.msra.mxu3 %v4552_v24  ;;  %v4619_v24 = vld [vmem:[#allocation5 + $0x470] sm:$0xf] }
 0x1ff   : > { %v4620_v28 = vor.u32 %v5486_v40, %v4619_v24 }
 0x200   : > { %v6512_v14 = vpop.f32.mrf.mxu0 }
 0x201   : > { %v6517_v34 = vpop.f32.mrf.mxu1  ;;  %2503 = vmatpush.bf16.msra.mxu0 %v4620_v28 }
 0x202   : > { %2076 = vmatpush.bf16.msra.mxu3 %v4544_v44  ;;  %v5407_v44 = vld [vmem:[#allocation5 + $0x204] sm:$0xf] }
 0x203   : > { %2010 = vmatmul.bf16.gmra.mxu0 %v6494_v15  ;;  %v4440_v25 = vor.u32 %v5407_v44, %v4437_v37 }
 0x204   : > { %2039 = vmatmul.bf16.gmra.mxu1 %v6497_v17 }
 0x209   : > { %v6525_v2 = vpop.f32.mrf.mxu1 }
 0x20b   : > { %1508 = vmatmul.bf16.gmra.mxu2 %v6457_v29  ;;  %v4536_v29 = vor.u32 %v5431_v10, %v4533_v49  ;;  %v4501_v49 = vld [vmem:[#allocation5 + $0x288] sm:$0xf0] }
 0x20c   : > { %1537 = vmatmul.bf16.gmra.mxu3 %v6459_v16  ;;  %v6509_v16 = vpop.f32.mrf.mxu3  ;;  %v4504_v21 = vor.u32 %v5423_v20, %v4501_v49 }
 0x20d   : > { %2077 = vmatpush.bf16.msra.mxu3 %v4536_v29  ;;  %v4603_v29 = vld [vmem:[#allocation5 + $0x450] sm:$0xf] }
 0x20e   : > { %v6514_v32 = vpop.f32.mrf.mxu2  ;;  %v4604_v51 = vor.u32 %v5482_v38, %v4603_v29  ;;  %v5485_v29 = vld [vmem:[#allocation5 + $0x474] sm:$0xf]  ;;  %v4621_v38 = vld [vmem:[#allocation5 + $0x478] sm:$0xf0] }
 0x211   : > { %2078 = vmatpush.bf16.msra.mxu3 %v4528_v12  ;;  %v5480_v12 = vld [vmem:[#allocation5 + $0x444] sm:$0xf0] }
 0x214   : > { %v6519_v46 = vpop.f32.mrf.mxu3 }
 0x215   : > { %2079 = vmatpush.bf16.msra.mxu3 %v4520_v54 }
 0x216   : > { %v6523_v47 = vpop.f32.mrf.mxu2 }
 0x219   : > { %2080 = vmatpush.bf16.msra.mxu3 %v4512_v60 }
 0x21b   : > { %1769 = vmatmul.bf16.vlgmr.msrb.gmra.mxu2 %v6239_v41  ;;  %v4453_v41 = vld [vmem:[#allocation5 + $0x228] sm:$0xf0] }
 0x21c   : > { %1798 = vmatmul.bf16.vlgmr.msrb.gmra.mxu3 %v6242_v13  ;;  %v4456_v56 = vor.u32 %v5411_v6, %v4453_v41  ;;  %v6521_v13 = vpop.f32.mrf.mxu0  ;;  %v6527_v19 = vpop.f32.mrf.mxu3  ;;  %v4596_v6 = vor.u32 %v5480_v12, %v4595_v18 }
 0x21d   : > { %2081 = vmatpush.bf16.msra.mxu3 %v4504_v21  ;;  %v4624_v21 = vor.u32 %v5485_v29, %v4621_v38  ;;  %v5479_v29 = vld [vmem:[#allocation5 + $0x444] sm:$0xf]  ;;  %v4597_v38 = vld [vmem:[#allocation5 + $0x448] sm:$0xf0] }
 0x21e   : > { %2050 = vmatpush.bf16.msra.mxu2 %v4456_v56  ;;  %v5478_v56 = vld [vmem:[#allocation5 + $0x434] sm:$0xf0] }
 0x21f   : > { %v4588_v54 = vor.u32 %v5478_v56, %v4587_v8 }
 0x221   : > { %v1751_v39 = vpop.f32.mrf.mxu1 }
 0x222   : > { %2051 = vmatpush.bf16.msra.mxu2 %v4448_v52 }
 0x224   : > { %v1722_v26 = vpop.f32.mrf.mxu0 }
 0x226   : > { %2052 = vmatpush.bf16.msra.mxu2 %v4440_v25 }
 0x229   : > { %v6535_v43 = vpop.f32.mrf.mxu1 }
 0x22a   : > { %2541 = vmatpush.bf16.msrb.mxu2 %v4624_v21 }
 0x22b   : > { %1774 = vmatmul.bf16.gmra.mxu2 %v6303_v55  ;;  %v4611_v55 = vld [vmem:[#allocation5 + $0x460] sm:$0xf] }
 0x22c   : > { %1803 = vmatmul.bf16.gmra.mxu3 %v6306_v7  ;;  %v5484_v7 = vld [vmem:[#allocation5 + $0x464] sm:$0xf0]  ;;  %v6533_v10 = vpop.f32.mrf.mxu0 }
 0x22d   : > { %v4612_v31 = vor.u32 %v5484_v7, %v4611_v55 }
 0x22e   : > { %v1446_v33 = vpop.f32.mrf.mxu2 }
 0x22f   : > { %v1475_v0 = vpop.f32.mrf.mxu3  ;;  %2504 = vmatpush.bf16.msra.mxu0 %v4612_v31  ;;  %v6557_v31 = vld [vmem:[#allocation7 + $0x3] ss:$8 sm:$0x3] }
 0x230   : > { %v1476_v36 = vadd.f32 %v1475_v0, %v1446_v33  ;;  %v5472_v0 = vld [vmem:[#allocation5 + $0x404] sm:$0xf0]  ;;  %v6569_v49 = vperm.slane %v6557_v31, 0 }
 0x232   : > { %v1723_v1 = vadd.f32 %v1722_v26, %v1476_v36  ;;  %v5474_v26 = vld [vmem:[#allocation5 + $0x414] sm:$0xf0] }
 0x233   : > { %2505 = vmatpush.bf16.msra.mxu0 %v4604_v51  ;;  %v4572_v60 = vor.u32 %v5474_v26, %v4571_v58 }
 0x234   : > { %v6531_v42 = vadd.f32 %v1751_v39, %v1723_v1  ;;  %v4563_v39 = vld [vmem:[#allocation5 + $0x400] sm:$0xf] }
 0x235   : > { %v4564_v36 = vor.u32 %v5472_v0, %v4563_v39  ;;  %v4605_v39 = vld [vmem:[#allocation5 + $0x458] sm:$0xf0] }
 0x237   : > { %2506 = vmatpush.bf16.msra.mxu0 %v4596_v6  ;;  %v6545_v52 = vpop.f32.mrf.mxu3  ;;  %v4613_v6 = vld [vmem:[#allocation5 + $0x468] sm:$0xf0] }
 0x23b   : > { %1779 = vmatmul.bf16.gmra.mxu2 %v6374_v57  ;;  %2507 = vmatpush.bf16.msra.mxu0 %v4588_v54  ;;  %v6543_v57 = vpop.f32.mrf.mxu2  ;;  %v4747_v54 = vld [vmem:[#allocation5 + $0x370] sm:$0xf] }
 0x23c   : > { %1808 = vmatmul.bf16.gmra.mxu3 %v6378_v22  ;;  %v4748_v26 = vor.u32 %v5454_v35, %v4747_v54  ;;  %v5477_v35 = vld [vmem:[#allocation5 + $0x434] sm:$0xf] }
 0x23f   : > { %2508 = vmatpush.bf16.msra.mxu0 %v4580_v30 }
 0x240   : > { %v6539_v41 = vpop.f32.mrf.mxu0 }
 0x241   : > { %v6541_v3 = vpop.f32.mrf.mxu1 }
 0x243   : > { %2509 = vmatpush.bf16.msra.mxu0 %v4572_v60  ;;  %v5481_v60 = vld [vmem:[#allocation5 + $0x454] sm:$0xf] }
 0x247   : > { %2510 = vmatpush.bf16.msra.mxu0 %v4564_v36  ;;  %v4608_v36 = vor.u32 %v5481_v60, %v4605_v39  ;;  %v5448_v60 = vld [vmem:[#allocation5 + $0x344] sm:$0xf0] }
 0x248   : > { %v6547_v22 = vpop.f32.mrf.mxu0 }
 0x249   : > { %v6549_v33 = vpop.f32.mrf.mxu1 }
 0x24b   : > { %1784 = vmatmul.bf16.gmra.mxu2 %v6440_v61  ;;  %2739 = vmatpush.bf16.msrb.mxu0 %v4748_v26  ;;  %v4723_v26 = vld [vmem:[#allocation5 + $0x340] sm:$0xf] }
 0x24c   : > { %1813 = vmatmul.bf16.gmra.mxu3 %v6445_v4  ;;  %v1471_v4 = vadd.f32 %v6519_v46, %v6514_v32  ;;  %v5483_v46 = vld [vmem:[#allocation5 + $0x464] sm:$0xf] }
 0x24d   : > { %v4616_v56 = vor.u32 %v5483_v46, %v4613_v6  ;;  %v5450_v6 = vld [vmem:[#allocation5 + $0x354] sm:$0xf0] }
 0x24e   : > { %v6553_v24 = vpop.f32.mrf.mxu2  ;;  %v1718_v51 = vadd.f32 %v6512_v14, %v1471_v4  ;;  %v6580_v14 = vld [vmem:[#allocation7 + $0x4] ss:$8 sm:$0x3] }
 0x24f   : > { %v6555_v40 = vpop.f32.mrf.mxu3  ;;  %2542 = vmatpush.bf16.msrb.mxu2 %v4616_v56 }
 0x250   : > { %v1996_v28 = vpop.f32.mrf.mxu0 }
 0x251   : > { %v2025_v1 = vpop.f32.mrf.mxu1 }
 0x252   : > { %v2026_v55 = vadd.f32 %v2025_v1, %v1996_v28  ;;  %v4739_v28 = vld [vmem:[#allocation5 + $0x360] sm:$0xf]  ;;  %v5452_v1 = vld [vmem:[#allocation5 + $0x364] sm:$0xf0] }
 0x253   : > { %2543 = vmatpush.bf16.msrb.mxu2 %v4608_v36 }
 0x254   : > { %v2103_v25 = vadd.f32 %v2026_v55, %v6485_v23  ;;  %v4740_v55 = vor.u32 %v5452_v1, %v4739_v28 }
 0x256   : > { %v1453_v7 = vpop.f32.mrf.mxu2  ;;  %v2124_v18 = vadd.f32 %v6569_v49, %v2103_v25  ;;  %2740 = vmatpush.bf16.msrb.mxu0 %v4740_v55  ;;  %v5475_v55 = vld [vmem:[#allocation5 + $0x424] sm:$0xf] }
 0x257   : > { %v1482_v44 = vpop.f32.mrf.mxu3 }
 0x258   : > { %v6559_v37 = vadd.f32 %v1482_v44, %v1453_v7  ;;  %v6561_v61 = vpop.f32.mrf.mxu0  ;;  %v2156_v30 = vmul.f32 0.2, %v2124_v18  ;;  %vm2140_vm1 = vcmp.ge.f32.partialorder %v2124_v18, 0.0 }
 0x259   : > { %v6565_v20 = vpop.f32.mrf.mxu1 }
 0x25a   : > { %v2172_v7 = vsel %vm2140_vm1, %v2124_v18, %v2156_v30 }
 0x25b   : > { %2053 = vmatmul.bf16.vlgmr.msra.gmra.mxu2 %v6270_v53  ;;  %v1747_v53 = vadd.f32 %v6517_v34, %v1718_v51  ;;  %v6583_v34 = vperm.slane %v6580_v14, 0 }
 0x25c   : > { %2082 = vmatmul.bf16.vlgmr.msra.gmra.mxu3 %v6276_v63  ;;  %v1473_v63 = vadd.f32 %v6527_v19, %v6523_v47  ;;  %v6586_v19 = vld [vmem:[#allocation7 + $0x5] ss:$8 sm:$0x3] }
 0x25d   : > { %v6595_v46 = vperm.slane %v6586_v19, 0 }
 0x25e   : > { %v1494_v12 = vpop.f32.mrf.mxu2  ;;  %v1720_v47 = vadd.f32 %v6521_v13, %v1473_v63  ;;  %v2193_v13 = vmul.f32 %v6583_v34, %v2172_v7  ;;  %v4589_v63 = vld [vmem:[#allocation5 + $0x438] sm:$0xf0] }
 0x25f   : > { %v1523_v32 = vpop.f32.mrf.mxu3 }
 0x260   : > { %v6575_v23 = vadd.f32 %v1523_v32, %v1494_v12  ;;  %v2001_v8 = vpop.f32.mrf.mxu0  ;;  %v4600_v12 = vor.u32 %v5479_v29, %v4597_v38  ;;  %v4731_v32 = vld [vmem:[#allocation5 + $0x350] sm:$0xf]  ;;  %v1749_v56 = vadd.f32 %v6525_v2, %v1720_v47  ;;  %v2214_v39 = vadd.f32 %v6595_v46, %v2193_v13  ;;  %v4581_v47 = vld [vmem:[#allocation5 + $0x428] sm:$0xf0] }
 0x261   : > { %v2030_v45 = vpop.f32.mrf.mxu1  ;;  %v4584_v29 = vor.u32 %v5475_v55, %v4581_v47  ;;  %v4715_v38 = vld [vmem:[#allocation5 + $0x330] sm:$0xf]  ;;  %v1478_v13 = vadd.f32 %v6545_v52, %v6543_v57 }
 0x262   : > { %v2031_v58 = vadd.f32 %v2030_v45, %v2001_v8  ;;  %2544 = vmatpush.bf16.msrb.mxu2 %v4600_v12  ;;  %v5473_v12 = vld [vmem:[#allocation5 + $0x414] sm:$0xf] }
 0x264   : > { %v2107_v0 = vadd.f32 %v2031_v58, %v1747_v53  ;;  %v4732_v53 = vor.u32 %v5450_v6, %v4731_v32  ;;  %v4592_v58 = vor.u32 %v5477_v35, %v4589_v63  ;;  %v4573_v32 = vld [vmem:[#allocation5 + $0x418] sm:$0xf0] }
 0x265   : > { %v4576_v6 = vor.u32 %v5473_v12, %v4573_v32 }
 0x266   : > { %v2128_v44 = vadd.f32 %v6569_v49, %v2107_v0  ;;  %v6589_v4 = vpop.f32.mrf.mxu2  ;;  %2741 = vmatpush.bf16.msrb.mxu0 %v4732_v53  ;;  %v4724_v0 = vor.u32 %v5448_v60, %v4723_v26  ;;  %2545 = vmatpush.bf16.msrb.mxu2 %v4592_v58  ;;  %v5471_v26 = vld [vmem:[#allocation5 + $0x404] sm:$0xf]  ;;  %v4565_v60 = vld [vmem:[#allocation5 + $0x408] sm:$0xf0] }
 0x267   : > { %v6591_v25 = vpop.f32.mrf.mxu3 }
 0x268   : > { %vm2144_vm2 = vcmp.ge.f32.partialorder %v2128_v44, 0.0  ;;  %v2160_v21 = vmul.f32 0.2, %v2128_v44  ;;  %v2003_v51 = vpop.f32.mrf.mxu0 }
 0x269   : > { %v2032_v18 = vpop.f32.mrf.mxu1 }
 0x26a   : > { %v2176_v8 = vsel %vm2144_vm2, %v2128_v44, %v2160_v21  ;;  %v2033_v54 = vadd.f32 %v2032_v18, %v2003_v51  ;;  %2742 = vmatpush.bf16.msrb.mxu0 %v4724_v0  ;;  %v5446_v51 = vld [vmem:[#allocation5 + $0x334] sm:$0xf0]  ;;  %2546 = vmatpush.bf16.msrb.mxu2 %v4584_v29  ;;  %v4699_v0 = vld [vmem:[#allocation5 + $0x310] sm:$0xf]  ;;  %v4749_v29 = vld [vmem:[#allocation5 + $0x378] sm:$0xf0] }
 0x26b   : > { %v2197_v45 = vmul.f32 %v6583_v34, %v2176_v8  ;;  %2058 = vmatmul.bf16.gmra.mxu2 %v6342_v9  ;;  %v4716_v18 = vor.u32 %v5446_v51, %v4715_v38  ;;  %v4707_v8 = vld [vmem:[#allocation5 + $0x320] sm:$0xf] }
 0x26c   : > { %v2109_v30 = vadd.f32 %v2033_v54, %v1749_v56  ;;  %2087 = vmatmul.bf16.gmra.mxu3 %v6346_v59  ;;  %v5444_v56 = vld [vmem:[#allocation5 + $0x324] sm:$0xf0]  ;;  %v4691_v38 = vld [vmem:[#allocation5 + $0x300] sm:$0xf] }
 0x26d   : > { %v2218_v2 = vadd.f32 %v6595_v46, %v2197_v45  ;;  %v4708_v35 = vor.u32 %v5444_v56, %v4707_v8 }
 0x26e   : > { %v2130_v36 = vadd.f32 %v6569_v49, %v2109_v30  ;;  %v1499_v28 = vpop.f32.mrf.mxu2  ;;  %2743 = vmatpush.bf16.msrb.mxu0 %v4716_v18  ;;  %v1725_v30 = vadd.f32 %v6533_v10, %v1478_v13  ;;  %2547 = vmatpush.bf16.msrb.mxu2 %v4576_v6  ;;  %v5451_v13 = vld [vmem:[#allocation5 + $0x364] sm:$0xf]  ;;  %v4741_v18 = vld [vmem:[#allocation5 + $0x368] sm:$0xf0] }
 0x26f   : > { %v1528_v1 = vpop.f32.mrf.mxu3  ;;  %v6604_v9 = vpack.c.bf16 %v2218_v2, %v2214_v39  ;;  %v4568_v2 = vor.u32 %v5471_v26, %v4565_v60  ;;  %v4744_v56 = vor.u32 %v5451_v13, %v4741_v18  ;;  %v5445_v13 = vld [vmem:[#allocation5 + $0x334] sm:$0xf]  ;;  %v4717_v18 = vld [vmem:[#allocation5 + $0x338] sm:$0xf0] }
 0x270   : > { %vm2146_vm3 = vcmp.ge.f32.partialorder %v2130_v36, 0.0  ;;  %v2162_v59 = vmul.f32 0.2, %v2130_v36  ;;  %v6606_v7 = vadd.f32 %v1528_v1, %v1499_v28  ;;  %v2006_v44 = vpop.f32.mrf.mxu0  ;;  %v5442_v1 = vld [vmem:[#allocation5 + $0x314] sm:$0xf0]  ;;  %v1754_v10 = vadd.f32 %v6535_v43, %v1725_v30 }
 0x271   : > { %v2035_v21 = vpop.f32.mrf.mxu1  ;;  %2511 = vmatmul.bf16.vlgmr.msra.gmra.mxu0 %v6604_v9  ;;  %v4700_v47 = vor.u32 %v5442_v1, %v4699_v0  ;;  %v4733_v30 = vld [vmem:[#allocation5 + $0x358] sm:$0xf0] }
 0x272   : > { %v2178_v54 = vsel %vm2146_vm3, %v2130_v36, %v2162_v59  ;;  %v2036_v53 = vadd.f32 %v2035_v21, %v2006_v44  ;;  %2744 = vmatpush.bf16.msrb.mxu0 %v4708_v35  ;;  %v1481_v36 = vadd.f32 %v6555_v40, %v6553_v24  ;;  %2548 = vmatpush.bf16.msrb.mxu2 %v4568_v2  ;;  %v5453_v44 = vld [vmem:[#allocation5 + $0x374] sm:$0xf]  ;;  %v5440_v40 = vld [vmem:[#allocation5 + $0x304] sm:$0xf0]  ;;  %v5518_v35 = vld [vmem:[#allocation5 + $0x574] sm:$0xf0] }
 0x273   : > { %v2199_v45 = vmul.f32 %v6583_v34, %v2178_v54  ;;  %v4752_v24 = vor.u32 %v5453_v44, %v4749_v29  ;;  %v4692_v51 = vor.u32 %v5440_v40, %v4691_v38  ;;  %v4875_v54 = vld [vmem:[#allocation5 + $0x570] sm:$0xf]  ;;  %v5516_v2 = vld [vmem:[#allocation5 + $0x564] sm:$0xf0]  ;;  %v5447_v29 = vld [vmem:[#allocation5 + $0x344] sm:$0xf] }
 0x274   : > { %v2111_v57 = vadd.f32 %v2036_v53, %v6531_v42  ;;  %v1468_v42 = vadd.f32 %v6509_v16, %v6505_v11  ;;  %v1728_v43 = vadd.f32 %v6539_v41, %v1481_v36  ;;  %v2028_v41 = vadd.f32 %v6565_v20, %v6561_v61 }
 0x275   : > { %v6614_v63 = vadd.f32 %v6595_v46, %v2199_v45  ;;  %v4876_v26 = vor.u32 %v5518_v35, %v4875_v54  ;;  %v1730_v20 = vadd.f32 %v6547_v22, %v6559_v37 }
 0x276   : > { %v6617_v58 = vpop.f32.mrf.mxu2  ;;  %v2132_v59 = vadd.f32 %v6569_v49, %v2111_v57  ;;  %2745 = vmatpush.bf16.msrb.mxu0 %v4700_v47  ;;  %2777 = vmatpush.bf16.msra.mxu2 %v4752_v24  ;;  %v1715_v11 = vadd.f32 %v6503_v50, %v1468_v42  ;;  %v1757_v53 = vadd.f32 %v6541_v3, %v1728_v43  ;;  %v5449_v50 = vld [vmem:[#allocation5 + $0x354] sm:$0xf]  ;;  %v4859_v24 = vld [vmem:[#allocation5 + $0x550] sm:$0xf] }
 0x277   : > { %v6620_v52 = vpop.f32.mrf.mxu3  ;;  %v4736_v60 = vor.u32 %v5449_v50, %v4733_v30  ;;  %v1759_v40 = vadd.f32 %v6549_v33, %v1730_v20  ;;  %v4720_v33 = vor.u32 %v5445_v13, %v4717_v18  ;;  %v5508_v20 = vld [vmem:[#allocation5 + $0x524] sm:$0xf0] }
 0x278   : > { %v2008_v39 = vpop.f32.mrf.mxu0  ;;  %v2164_v16 = vmul.f32 0.2, %v2132_v59  ;;  %vm2148_vm5 = vcmp.ge.f32.partialorder %v2132_v59, 0.0  ;;  %v5504_v18 = vld [vmem:[#allocation5 + $0x504] sm:$0xf0] }
 0x279   : > { %v2037_v28 = vpop.f32.mrf.mxu1 }
 0x27a   : > { %v2038_v55 = vadd.f32 %v2037_v28, %v2008_v39  ;;  %2746 = vmatpush.bf16.msrb.mxu0 %v4692_v51  ;;  %2778 = vmatpush.bf16.msra.mxu2 %v4744_v56  ;;  %v4867_v39 = vld [vmem:[#allocation5 + $0x560] sm:$0xf]  ;;  %v1744_v28 = vadd.f32 %v6507_v27, %v1715_v11  ;;  %v2180_v42 = vsel %vm2148_vm5, %v2132_v59, %v2164_v16  ;;  %v4725_v27 = vld [vmem:[#allocation5 + $0x348] sm:$0xf0]  ;;  %v5514_v51 = vld [vmem:[#allocation5 + $0x554] sm:$0xf0] }
 0x27b   : > { %2063 = vmatmul.bf16.gmra.mxu2 %v6477_v5  ;;  %v4868_v3 = vor.u32 %v5516_v2, %v4867_v39  ;;  %v2201_v59 = vmul.f32 %v6583_v34, %v2180_v42  ;;  %v4860_v16 = vor.u32 %v5514_v51, %v4859_v24  ;;  %v5512_v56 = vld [vmem:[#allocation5 + $0x544] sm:$0xf0]  ;;  %v4843_v2 = vld [vmem:[#allocation5 + $0x530] sm:$0xf]  ;;  %v5439_v24 = vld [vmem:[#allocation5 + $0x304] sm:$0xf] }
 0x27c   : > { %v2113_v21 = vadd.f32 %v2038_v55, %v1754_v10  ;;  %2092 = vmatmul.bf16.gmra.mxu3 %v6481_v48  ;;  %v2105_v10 = vadd.f32 %v2028_v41, %v1744_v28  ;;  %v4827_v51 = vld [vmem:[#allocation5 + $0x510] sm:$0xf] }
 0x27d   : > { %v2222_v54 = vadd.f32 %v6595_v46, %v2201_v59 }
 0x27e   : > { %v2134_v12 = vadd.f32 %v6569_v49, %v2113_v21  ;;  %v1504_v32 = vpop.f32.mrf.mxu2  ;;  %2979 = vmatpush.bf16.msra.mxu0 %v4876_v26  ;;  %2779 = vmatpush.bf16.msra.mxu2 %v4736_v60  ;;  %v4728_v21 = vor.u32 %v5447_v29, %v4725_v27  ;;  %v4709_v26 = vld [vmem:[#allocation5 + $0x328] sm:$0xf0] }
 0x27f   : > { %v1533_v5 = vpop.f32.mrf.mxu3 }
 0x280   : > { %vm2150_vm4 = vcmp.ge.f32.partialorder %v2134_v12, 0.0  ;;  %v2166_v6 = vmul.f32 0.2, %v2134_v12  ;;  %v6633_v8 = vadd.f32 %v1533_v5, %v1504_v32  ;;  %v2011_v48 = vpop.f32.mrf.mxu0 }
 0x281   : > { %v2040_v45 = vpop.f32.mrf.mxu1 }
 0x282   : > { %v2041_v57 = vadd.f32 %v2040_v45, %v2011_v48  ;;  %v2182_v0 = vsel %vm2150_vm4, %v2134_v12, %v2166_v6  ;;  %2980 = vmatpush.bf16.msra.mxu0 %v4868_v3  ;;  %v2126_v12 = vadd.f32 %v6569_v49, %v2105_v10  ;;  %2780 = vmatpush.bf16.msra.mxu2 %v4728_v21  ;;  %v4851_v6 = vld [vmem:[#allocation5 + $0x540] sm:$0xf] }
 0x283   : > { %v2203_v36 = vmul.f32 %v6583_v34, %v2182_v0  ;;  %v5510_v0 = vld [vmem:[#allocation5 + $0x534] sm:$0xf0]  ;;  %v4835_v3 = vld [vmem:[#allocation5 + $0x520] sm:$0xf] }
 0x284   : > { %v2115_v61 = vadd.f32 %v2041_v57, %v1757_v53  ;;  %v4852_v53 = vor.u32 %v5512_v56, %v4851_v6  ;;  %vm2142_vm7 = vcmp.ge.f32.partialorder %v2126_v12, 0.0  ;;  %v2158_v35 = vmul.f32 0.2, %v2126_v12  ;;  %v5443_v57 = vld [vmem:[#allocation5 + $0x324] sm:$0xf] }
 0x285   : > { %v6644_v1 = vadd.f32 %v6595_v46, %v2203_v36  ;;  %v4712_v39 = vor.u32 %v5443_v57, %v4709_v26  ;;  %v5441_v36 = vld [vmem:[#allocation5 + $0x314] sm:$0xf]  ;;  %v4844_v28 = vor.u32 %v5510_v0, %v4843_v2  ;;  %v4836_v29 = vor.u32 %v5508_v20, %v4835_v3  ;;  %v5511_v26 = vld [vmem:[#allocation5 + $0x544] sm:$0xf]  ;;  %v4845_v0 = vld [vmem:[#allocation5 + $0x538] sm:$0xf0] }
 0x286   : > { %v2136_v55 = vadd.f32 %v6569_v49, %v2115_v61  ;;  %v6647_v47 = vpop.f32.mrf.mxu2  ;;  %2981 = vmatpush.bf16.msra.mxu0 %v4860_v16  ;;  %2781 = vmatpush.bf16.msra.mxu2 %v4720_v33  ;;  %v2174_v42 = vsel %vm2142_vm7, %v2126_v12, %v2158_v35  ;;  %v5506_v12 = vld [vmem:[#allocation5 + $0x514] sm:$0xf0]  ;;  %v5517_v16 = vld [vmem:[#allocation5 + $0x574] sm:$0xf]  ;;  %v1526_v35 = vadd.f32 %v6591_v25, %v6589_v4  ;;  %v5507_v25 = vld [vmem:[#allocation5 + $0x524] sm:$0xf] }
 0x287   : > { %v6649_v44 = vpop.f32.mrf.mxu3  ;;  %v6653_v38 = vpack.c.bf16 %v6644_v1, %v6614_v63  ;;  %v5509_v2 = vld [vmem:[#allocation5 + $0x534] sm:$0xf] }
 0x288   : > { %vm2152_vm6 = vcmp.ge.f32.partialorder %v2136_v55, 0.0  ;;  %v2168_v22 = vmul.f32 0.2, %v2136_v55  ;;  %v2013_v37 = vpop.f32.mrf.mxu0 }
 0x289   : > { %v2042_v43 = vpop.f32.mrf.mxu1 }
 0x28a   : > { %v2043_v32 = vadd.f32 %v2042_v43, %v2013_v37  ;;  %v2184_v11 = vsel %vm2152_vm6, %v2136_v55, %v2168_v22  ;;  %2982 = vmatpush.bf16.msra.mxu0 %v4852_v53  ;;  %2782 = vmatpush.bf16.msra.mxu2 %v4712_v39  ;;  %v2195_v37 = vmul.f32 %v6583_v34, %v2174_v42  ;;  %v5513_v53 = vld [vmem:[#allocation5 + $0x554] sm:$0xf]  ;;  %v4683_v42 = vld [vmem:[#allocation5 + $0x4f0] sm:$0xf] }
 0x28b   : > { %2068 = vmatmul.bf16.gmra.mxu2 %v6494_v15  ;;  %v2205_v5 = vmul.f32 %v6583_v34, %v2184_v11 }
 0x28c   : > { %v2117_v48 = vadd.f32 %v2043_v32, %v1759_v40  ;;  %2097 = vmatmul.bf16.gmra.mxu3 %v6497_v17  ;;  %v4693_v40 = vld [vmem:[#allocation5 + $0x308] sm:$0xf0]  ;;  %v4828_v32 = vor.u32 %v5506_v12, %v4827_v51  ;;  %v6681_v11 = vadd.f32 %v6595_v46, %v2195_v37  ;;  %v4829_v37 = vld [vmem:[#allocation5 + $0x518] sm:$0xf0] }
 0x28d   : > { %v2226_v41 = vadd.f32 %v6595_v46, %v2205_v5  ;;  %v4696_v59 = vor.u32 %v5439_v24, %v4693_v40  ;;  %v4819_v5 = vld [vmem:[#allocation5 + $0x500] sm:$0xf] }
 0x28e   : > { %v2138_v45 = vadd.f32 %v6569_v49, %v2117_v48  ;;  %v1509_v15 = vpop.f32.mrf.mxu2  ;;  %v4701_v49 = vld [vmem:[#allocation5 + $0x318] sm:$0xf0]  ;;  %2983 = vmatpush.bf16.msra.mxu0 %v4844_v28  ;;  %v4820_v6 = vor.u32 %v5504_v18, %v4819_v5  ;;  %v2335_v56 = vpack.c.bf16 %v6681_v11, %v5824_v62  ;;  %v5499_v5 = vld [vmem:[#allocation5 + $0x4e4] sm:$0xf] }
 0x28f   : > { %v1538_v50 = vpop.f32.mrf.mxu3  ;;  %v6664_v30 = vpack.c.bf16 %v2226_v41, %v2222_v54  ;;  %v4704_v61 = vor.u32 %v5441_v36, %v4701_v49  ;;  %v5515_v54 = vld [vmem:[#allocation5 + $0x564] sm:$0xf]  ;;  %v4848_v36 = vor.u32 %v5509_v2, %v4845_v0 }
 0x290   : > { %vm2154_vm8 = vcmp.ge.f32.partialorder %v2138_v45, 0.0  ;;  %v2170_v17 = vmul.f32 0.2, %v2138_v45  ;;  %v6666_v60 = vadd.f32 %v1538_v50, %v1509_v15 }
 0x291   : > { %2516 = vmatmul.bf16.gmra.mxu0 %v6664_v30  ;;  %2783 = vmatpush.bf16.msra.mxu2 %v4704_v61  ;;  %v4837_v61 = vld [vmem:[#allocation5 + $0x528] sm:$0xf0] }
 0x292   : > { %v2186_v10 = vsel %vm2154_vm8, %v2138_v45, %v2170_v17  ;;  %2984 = vmatpush.bf16.msra.mxu0 %v4836_v29  ;;  %v4861_v45 = vld [vmem:[#allocation5 + $0x558] sm:$0xf0]  ;;  %v4853_v17 = vld [vmem:[#allocation5 + $0x548] sm:$0xf0]  ;;  %v4840_v3 = vor.u32 %v5507_v25, %v4837_v61 }
 0x293   : > { %v2207_v55 = vmul.f32 %v6583_v34, %v2186_v10  ;;  %v4877_v34 = vld [vmem:[#allocation5 + $0x578] sm:$0xf0]  ;;  %v4864_v15 = vor.u32 %v5513_v53, %v4861_v45  ;;  %v4856_v39 = vor.u32 %v5511_v26, %v4853_v17  ;;  %v5501_v10 = vld [vmem:[#allocation5 + $0x4f4] sm:$0xf]  ;;  %v5495_v17 = vld [vmem:[#allocation5 + $0x4c4] sm:$0xf] }
 0x294   : > { %v4880_v13 = vor.u32 %v5517_v16, %v4877_v34  ;;  %v4821_v16 = vld [vmem:[#allocation5 + $0x508] sm:$0xf0]  ;;  %v5497_v53 = vld [vmem:[#allocation5 + $0x4d4] sm:$0xf]  ;;  %v4669_v45 = vld [vmem:[#allocation5 + $0x4d8] sm:$0xf0] }
 0x295   : > { %v2228_v27 = vadd.f32 %v6595_v46, %v2207_v55  ;;  %2784 = vmatpush.bf16.msra.mxu2 %v4696_v59  ;;  %v4869_v46 = vld [vmem:[#allocation5 + $0x568] sm:$0xf0]  ;;  %v4685_v55 = vld [vmem:[#allocation5 + $0x4f8] sm:$0xf0] }
 0x296   : > { %v6672_v22 = vpop.f32.mrf.mxu2  ;;  %2985 = vmatpush.bf16.msra.mxu0 %v4828_v32  ;;  %v4872_v41 = vor.u32 %v5515_v54, %v4869_v46  ;;  %v4688_v29 = vor.u32 %v5501_v10, %v4685_v55  ;;  %v5503_v32 = vld [vmem:[#allocation5 + $0x504] sm:$0xf] }
 0x297   : > { %v6675_v21 = vpop.f32.mrf.mxu3  ;;  %v6678_v43 = vpack.c.bf16 %v2228_v27, %v6644_v1  ;;  %v5505_v27 = vld [vmem:[#allocation5 + $0x514] sm:$0xf]  ;;  %v4824_v34 = vor.u32 %v5503_v32, %v4821_v16  ;;  %v4637_v16 = vld [vmem:[#allocation5 + $0x498] sm:$0xf0] }
 0x298   : > { %v4832_v40 = vor.u32 %v5505_v27, %v4829_v37  ;;  %2560 = vmatpush.bf16.msrb.mxu3 %v4688_v29  ;;  %v5491_v29 = vld [vmem:[#allocation5 + $0x4a4] sm:$0xf]  ;;  %v4645_v27 = vld [vmem:[#allocation5 + $0x4a8] sm:$0xf0] }
 0x299   : > { %v4648_v37 = vor.u32 %v5491_v29, %v4645_v27 }
 0x29a   : > { %2986 = vmatpush.bf16.msra.mxu0 %v4820_v6  ;;  %v4675_v6 = vld [vmem:[#allocation5 + $0x4e0] sm:$0xf] }
 0x29b   : > { %2549 = vmatmul.bf16.vlgmr.msrb.gmra.mxu2 %v6604_v9 }
 0x29c   : > { %3017 = vmatpush.bf16.msrb.mxu2 %v4880_v13  ;;  %v4677_v13 = vld [vmem:[#allocation5 + $0x4e8] sm:$0xf0] }
 0x29d   : > { %v4680_v18 = vor.u32 %v5499_v5, %v4677_v13  ;;  %v4627_v5 = vld [vmem:[#allocation5 + $0x480] sm:$0xf]  ;;  %v5488_v13 = vld [vmem:[#allocation5 + $0x484] sm:$0xf0] }
 0x29e   : > { %v1770_v1 = vpop.f32.mrf.mxu2 }
 0x29f   : > { %v1771_v48 = vadd.f32 %v1770_v1, %v6575_v23  ;;  %v1799_v33 = vpop.f32.mrf.mxu3  ;;  %v5500_v1 = vld [vmem:[#allocation5 + $0x4e4] sm:$0xf0]  ;;  %2561 = vmatpush.bf16.msrb.mxu3 %v4680_v18  ;;  %v5487_v18 = vld [vmem:[#allocation5 + $0x484] sm:$0xf] }
 0x2a0   : > { %3018 = vmatpush.bf16.msrb.mxu2 %v4872_v41 }
 0x2a1   : > { %v6687_v9 = vadd.f32 %v1799_v33, %v1771_v48  ;;  %2747 = vmatmul.bf16.vlgmr.msrb.gmra.mxu0 %v2335_v56  ;;  %v4676_v48 = vor.u32 %v5500_v1, %v4675_v6  ;;  %v4628_v6 = vor.u32 %v5488_v13, %v4627_v5  ;;  %v4629_v1 = vld [vmem:[#allocation5 + $0x488] sm:$0xf0] }
 0x2a4   : > { %3019 = vmatpush.bf16.msrb.mxu2 %v4864_v15 }
 0x2a6   : > { %v1772_v50 = vpop.f32.mrf.mxu2 }
 0x2a7   : > { %v6691_v23 = vadd.f32 %v1772_v50, %v1526_v35  ;;  %v6693_v57 = vpop.f32.mrf.mxu3  ;;  %v4672_v35 = vor.u32 %v5497_v53, %v4669_v45  ;;  %v5498_v50 = vld [vmem:[#allocation5 + $0x4d4] sm:$0xf0] }
 0x2a8   : > { %3020 = vmatpush.bf16.msrb.mxu2 %v4856_v39  ;;  %v5496_v39 = vld [vmem:[#allocation5 + $0x4c4] sm:$0xf0] }
 0x2a9   : > { %2562 = vmatpush.bf16.msrb.mxu3 %v4672_v35  ;;  %v6726_v35 = vperm.slane %v6557_v31, 1 }
 0x2ab   : > { %2554 = vmatmul.bf16.gmra.mxu2 %v6664_v30  ;;  %v5502_v30 = vld [vmem:[#allocation5 + $0x4f4] sm:$0xf0] }
 0x2ac   : > { %3021 = vmatpush.bf16.msrb.mxu2 %v4848_v36  ;;  %v4684_v24 = vor.u32 %v5502_v30, %v4683_v42  ;;  %v5493_v36 = vld [vmem:[#allocation5 + $0x4b4] sm:$0xf]  ;;  %v5492_v42 = vld [vmem:[#allocation5 + $0x4a4] sm:$0xf0] }
 0x2ae   : > { %v1775_v49 = vpop.f32.mrf.mxu2  ;;  %2522 = vmatpush.bf16.msra.mxu1 %v4684_v24 }
 0x2af   : > { %v1776_v28 = vadd.f32 %v1775_v49, %v6606_v7  ;;  %v1804_v4 = vpop.f32.mrf.mxu3  ;;  %v1531_v7 = vadd.f32 %v6620_v52, %v6617_v58  ;;  %v2815_v52 = vpack.c.bf16 %v6614_v63, %v6681_v11  ;;  %v4661_v63 = vld [vmem:[#allocation5 + $0x4c8] sm:$0xf0]  ;;  %v4659_v11 = vld [vmem:[#allocation5 + $0x4c0] sm:$0xf]  ;;  %v4653_v49 = vld [vmem:[#allocation5 + $0x4b8] sm:$0xf0] }
 0x2b0   : > { %3022 = vmatpush.bf16.msrb.mxu2 %v4840_v3  ;;  %v4660_v2 = vor.u32 %v5496_v39, %v4659_v11  ;;  %v4656_v61 = vor.u32 %v5493_v36, %v4653_v49  ;;  %v5494_v3 = vld [vmem:[#allocation5 + $0x4b4] sm:$0xf0]  ;;  %v5469_v11 = vld [vmem:[#allocation5 + $0x3f4] sm:$0xf]  ;;  %v4813_v39 = vld [vmem:[#allocation5 + $0x3f8] sm:$0xf0] }
 0x2b1   : > { %v6697_v20 = vadd.f32 %v1804_v4, %v1776_v28  ;;  %2752 = vmatmul.bf16.gmra.mxu0 %v6653_v38  ;;  %v4651_v28 = vld [vmem:[#allocation5 + $0x4b0] sm:$0xf]  ;;  %v4816_v49 = vor.u32 %v5469_v11, %v4813_v39 }
 0x2b2   : > { %2523 = vmatpush.bf16.msra.mxu1 %v4676_v48  ;;  %v4652_v10 = vor.u32 %v5494_v3, %v4651_v28  ;;  %v4632_v48 = vor.u32 %v5487_v18, %v4629_v1  ;;  %v5468_v3 = vld [vmem:[#allocation5 + $0x3e4] sm:$0xf0]  ;;  %v5463_v1 = vld [vmem:[#allocation5 + $0x3c4] sm:$0xf]  ;;  %v4779_v39 = vld [vmem:[#allocation5 + $0x3b0] sm:$0xf] }
 0x2b4   : > { %3023 = vmatpush.bf16.msrb.mxu2 %v4832_v40  ;;  %v5490_v40 = vld [vmem:[#allocation5 + $0x494] sm:$0xf0] }
 0x2b6   : > { %v1777_v59 = vpop.f32.mrf.mxu2 }
 0x2b7   : > { %v6702_v51 = vadd.f32 %v1777_v59, %v1531_v7  ;;  %v6704_v12 = vpop.f32.mrf.mxu3  ;;  %v5489_v7 = vld [vmem:[#allocation5 + $0x494] sm:$0xf] }
 0x2b8   : > { %3024 = vmatpush.bf16.msrb.mxu2 %v4824_v34  ;;  %v4640_v34 = vor.u32 %v5489_v7, %v4637_v16  ;;  %v4797_v7 = vld [vmem:[#allocation5 + $0x3d8] sm:$0xf0]  ;;  %v5466_v16 = vld [vmem:[#allocation5 + $0x3d4] sm:$0xf0] }
 0x2bb   : > { %2785 = vmatmul.bf16.vlgmr.msra.gmra.mxu2 %v2335_v56  ;;  %v4667_v56 = vld [vmem:[#allocation5 + $0x4d0] sm:$0xf] }
 0x2bc   : > { %v4668_v26 = vor.u32 %v5498_v50, %v4667_v56 }
 0x2be   : > { %v1780_v58 = vpop.f32.mrf.mxu2  ;;  %2524 = vmatpush.bf16.msra.mxu1 %v4668_v26  ;;  %v1802_v26 = vadd.f32 %v6693_v57, %v6691_v23  ;;  %v4805_v57 = vld [vmem:[#allocation5 + $0x3e8] sm:$0xf0] }
 0x2bf   : > { %v1781_v33 = vadd.f32 %v1780_v58, %v6633_v8  ;;  %v1809_v54 = vpop.f32.mrf.mxu3  ;;  %v4664_v8 = vor.u32 %v5495_v17, %v4661_v63 }
 0x2c1   : > { %v6709_v46 = vadd.f32 %v1809_v54, %v1781_v33  ;;  %2987 = vmatmul.bf16.vlgmr.msra.gmra.mxu0 %v2815_v52  ;;  %2563 = vmatpush.bf16.msrb.mxu3 %v4664_v8 }
 0x2c2   : > { %2525 = vmatpush.bf16.msra.mxu1 %v4660_v2  ;;  %v4811_v2 = vld [vmem:[#allocation5 + $0x3f0] sm:$0xf] }
 0x2c5   : > { %2564 = vmatpush.bf16.msrb.mxu3 %v4656_v61 }
 0x2c6   : > { %v6711_v41 = vpop.f32.mrf.mxu2  ;;  %2526 = vmatpush.bf16.msra.mxu1 %v4652_v10 }
 0x2c7   : > { %v6713_v15 = vpop.f32.mrf.mxu3 }
 0x2c9   : > { %2565 = vmatpush.bf16.msrb.mxu3 %v4648_v37  ;;  %v5465_v37 = vld [vmem:[#allocation5 + $0x3d4] sm:$0xf] }
 0x2ca   : > { %v4800_v13 = vor.u32 %v5465_v37, %v4797_v7  ;;  %v4765_v37 = vld [vmem:[#allocation5 + $0x398] sm:$0xf0] }
 0x2cb   : > { %2790 = vmatmul.bf16.gmra.mxu2 %v6653_v38  ;;  %v4643_v38 = vld [vmem:[#allocation5 + $0x4a0] sm:$0xf] }
 0x2cc   : > { %v4644_v30 = vor.u32 %v5492_v42, %v4643_v38 }
 0x2cd   : > { %2566 = vmatpush.bf16.msrb.mxu3 %v4640_v34 }
 0x2ce   : > { %v1785_v0 = vpop.f32.mrf.mxu2  ;;  %2527 = vmatpush.bf16.msra.mxu1 %v4644_v30  ;;  %v6739_v30 = vperm.slane %v6586_v19, 1 }
 0x2cf   : > { %v1786_v4 = vadd.f32 %v1785_v0, %v6666_v60  ;;  %v1814_v25 = vpop.f32.mrf.mxu3  ;;  %v4635_v60 = vld [vmem:[#allocation5 + $0x490] sm:$0xf]  ;;  %v5470_v0 = vld [vmem:[#allocation5 + $0x3f4] sm:$0xf0] }
 0x2d0   : > { %v4636_v32 = vor.u32 %v5490_v40, %v4635_v60  ;;  %v4812_v31 = vor.u32 %v5470_v0, %v4811_v2  ;;  %v5462_v2 = vld [vmem:[#allocation5 + $0x3b4] sm:$0xf0] }
 0x2d1   : > { %v6717_v55 = vadd.f32 %v1814_v25, %v1786_v4  ;;  %2992 = vmatmul.bf16.gmra.mxu0 %v6678_v43  ;;  %2567 = vmatpush.bf16.msrb.mxu3 %v4632_v48  ;;  %v4803_v4 = vld [vmem:[#allocation5 + $0x3e0] sm:$0xf]  ;;  %v6735_v25 = vperm.slane %v6580_v14, 1  ;;  %v1807_v14 = vadd.f32 %v6704_v12, %v6702_v51  ;;  %v4789_v48 = vld [vmem:[#allocation5 + $0x3c8] sm:$0xf0] }
 0x2d2   : > { %2528 = vmatpush.bf16.msra.mxu1 %v4636_v32  ;;  %v4804_v42 = vor.u32 %v5468_v3, %v4803_v4  ;;  %v4795_v32 = vld [vmem:[#allocation5 + $0x3d0] sm:$0xf]  ;;  %v1536_v4 = vadd.f32 %v6649_v44, %v6647_v47  ;;  %v5457_v47 = vld [vmem:[#allocation5 + $0x394] sm:$0xf] }
 0x2d3   : > { %v4796_v19 = vor.u32 %v5466_v16, %v4795_v32  ;;  %v4768_v32 = vor.u32 %v5457_v47, %v4765_v37  ;;  %v4915_v37 = vld [vmem:[#allocation5 + $0x5c0] sm:$0xf] }
 0x2d5   : > { %2796 = vmatpush.bf16.msra.mxu3 %v4816_v49  ;;  %v4773_v49 = vld [vmem:[#allocation5 + $0x3a8] sm:$0xf0] }
 0x2d6   : > { %v6720_v24 = vpop.f32.mrf.mxu2  ;;  %2529 = vmatpush.bf16.msra.mxu1 %v4628_v6 }
 0x2d7   : > { %v6722_v59 = vpop.f32.mrf.mxu3 }
 0x2da   : > { %2758 = vmatpush.bf16.msrb.mxu1 %v4812_v31  ;;  %v4771_v31 = vld [vmem:[#allocation5 + $0x3a0] sm:$0xf] }
 0x2db   : > { %3025 = vmatmul.bf16.vlgmr.msrb.gmra.mxu2 %v2815_v52 }
 0x2de   : > { %v2054_v58 = vpop.f32.mrf.mxu2  ;;  %2759 = vmatpush.bf16.msrb.mxu1 %v4804_v42  ;;  %v1783_v42 = vadd.f32 %v6711_v41, %v1536_v4  ;;  %v4757_v41 = vld [vmem:[#allocation5 + $0x388] sm:$0xf0] }
 0x2df   : > { %v2083_v33 = vpop.f32.mrf.mxu3 }
 0x2e0   : > { %v2084_v54 = vadd.f32 %v2083_v33, %v2054_v58  ;;  %v4787_v58 = vld [vmem:[#allocation5 + $0x3c0] sm:$0xf]  ;;  %v4792_v33 = vor.u32 %v5463_v1, %v4789_v48 }
 0x2e2   : > { %v2104_v56 = vadd.f32 %v2084_v54, %v6687_v9  ;;  %2760 = vmatpush.bf16.msrb.mxu1 %v4796_v19  ;;  %v5464_v54 = vld [vmem:[#allocation5 + $0x3c4] sm:$0xf0] }
 0x2e4   : > { %v2125_v52 = vadd.f32 %v6726_v35, %v2104_v56  ;;  %v4788_v56 = vor.u32 %v5464_v54, %v4787_v58  ;;  %v4939_v54 = vld [vmem:[#allocation5 + $0x5f0] sm:$0xf] }
 0x2e6   : > { %v2056_v53 = vpop.f32.mrf.mxu2  ;;  %v2157_v36 = vmul.f32 0.2, %v2125_v52  ;;  %vm2141_vm9 = vcmp.ge.f32.partialorder %v2125_v52, 0.0  ;;  %2761 = vmatpush.bf16.msrb.mxu1 %v4788_v56 }
 0x2e7   : > { %v2085_v45 = vpop.f32.mrf.mxu3 }
 0x2e8   : > { %v2086_v50 = vadd.f32 %v2085_v45, %v2056_v53  ;;  %v2173_v10 = vsel %vm2141_vm9, %v2125_v52, %v2157_v36  ;;  %v4780_v36 = vor.u32 %v5462_v2, %v4779_v39 }
 0x2e9   : > { %v2194_v60 = vmul.f32 %v6735_v25, %v2173_v10 }
 0x2ea   : > { %v2106_v17 = vadd.f32 %v2086_v50, %v1802_v26  ;;  %2762 = vmatpush.bf16.msrb.mxu1 %v4780_v36 }
 0x2eb   : > { %3030 = vmatmul.bf16.gmra.mxu2 %v6678_v43  ;;  %v5467_v43 = vld [vmem:[#allocation5 + $0x3e4] sm:$0xf]  ;;  %v2215_v51 = vadd.f32 %v6739_v30, %v2194_v60  ;;  %v5458_v60 = vld [vmem:[#allocation5 + $0x394] sm:$0xf0] }
 0x2ec   : > { %v2127_v28 = vadd.f32 %v6726_v35, %v2106_v17  ;;  %v4808_v61 = vor.u32 %v5467_v43, %v4805_v57  ;;  %v5461_v17 = vld [vmem:[#allocation5 + $0x3b4] sm:$0xf]  ;;  %v5460_v43 = vld [vmem:[#allocation5 + $0x3a4] sm:$0xf0] }
 0x2ed   : > { %v4772_v3 = vor.u32 %v5460_v43, %v4771_v31  ;;  %v5529_v43 = vld [vmem:[#allocation5 + $0x5d4] sm:$0xf] }
 0x2ee   : > { %v2059_v63 = vpop.f32.mrf.mxu2  ;;  %v2159_v29 = vmul.f32 0.2, %v2127_v28  ;;  %2797 = vmatpush.bf16.msra.mxu3 %v4808_v61  ;;  %vm2143_vm11 = vcmp.ge.f32.partialorder %v2127_v28, 0.0 }
 0x2ef   : > { %v2088_v8 = vpop.f32.mrf.mxu3  ;;  %2763 = vmatpush.bf16.msrb.mxu1 %v4772_v3  ;;  %v5530_v3 = vld [vmem:[#allocation5 + $0x5d4] sm:$0xf0] }
 0x2f0   : > { %v2089_v9 = vadd.f32 %v2088_v8, %v2059_v63  ;;  %v2175_v53 = vsel %vm2143_vm11, %v2127_v28, %v2159_v29  ;;  %v4781_v8 = vld [vmem:[#allocation5 + $0x3b8] sm:$0xf0] }
 0x2f1   : > { %v2196_v63 = vmul.f32 %v6735_v25, %v2175_v53  ;;  %v4784_v0 = vor.u32 %v5461_v17, %v4781_v8  ;;  %v5534_v53 = vld [vmem:[#allocation5 + $0x5f4] sm:$0xf0]  ;;  %v4931_v17 = vld [vmem:[#allocation5 + $0x5e0] sm:$0xf]  ;;  %v5532_v8 = vld [vmem:[#allocation5 + $0x5e4] sm:$0xf0] }
 0x2f2   : > { %v2108_v23 = vadd.f32 %v2089_v9, %v6697_v20  ;;  %2798 = vmatpush.bf16.msra.mxu3 %v4800_v13  ;;  %v5459_v9 = vld [vmem:[#allocation5 + $0x3a4] sm:$0xf]  ;;  %v5456_v13 = vld [vmem:[#allocation5 + $0x384] sm:$0xf0]  ;;  %v4932_v36 = vor.u32 %v5532_v8, %v4931_v17  ;;  %v5522_v17 = vld [vmem:[#allocation5 + $0x594] sm:$0xf0] }
 0x2f3   : > { %v4776_v61 = vor.u32 %v5459_v9, %v4773_v49  ;;  %v6754_v10 = vadd.f32 %v6739_v30, %v2196_v63 }
 0x2f4   : > { %v2129_v38 = vadd.f32 %v6726_v35, %v2108_v23 }
 0x2f6   : > { %vm2145_vm10 = vcmp.ge.f32.partialorder %v2129_v38, 0.0  ;;  %v2161_v20 = vmul.f32 0.2, %v2129_v38  ;;  %v2061_v27 = vpop.f32.mrf.mxu2  ;;  %2799 = vmatpush.bf16.msra.mxu3 %v4792_v33  ;;  %v4941_v33 = vld [vmem:[#allocation5 + $0x5f8] sm:$0xf0] }
 0x2f7   : > { %v2090_v40 = vpop.f32.mrf.mxu3 }
 0x2f8   : > { %v2177_v34 = vsel %vm2145_vm10, %v2129_v38, %v2161_v20  ;;  %v2091_v5 = vadd.f32 %v2090_v40, %v2061_v27  ;;  %v1812_v40 = vadd.f32 %v6713_v15, %v1783_v42 }
 0x2f9   : > { %v2198_v18 = vmul.f32 %v6735_v25, %v2177_v34  ;;  %v5455_v34 = vld [vmem:[#allocation5 + $0x384] sm:$0xf] }
 0x2fa   : > { %v2110_v6 = vadd.f32 %v2091_v5, %v1807_v14  ;;  %2800 = vmatpush.bf16.msra.mxu3 %v4784_v0  ;;  %v4763_v14 = vld [vmem:[#allocation5 + $0x390] sm:$0xf]  ;;  %v4755_v5 = vld [vmem:[#allocation5 + $0x380] sm:$0xf] }
 0x2fb   : > { %v2219_v12 = vadd.f32 %v6739_v30, %v2198_v18  ;;  %v4764_v16 = vor.u32 %v5458_v60, %v4763_v14  ;;  %v4760_v18 = vor.u32 %v5455_v34, %v4757_v41  ;;  %v5528_v60 = vld [vmem:[#allocation5 + $0x5c4] sm:$0xf0] }
 0x2fc   : > { %v2131_v45 = vadd.f32 %v6726_v35, %v2110_v6  ;;  %v4756_v6 = vor.u32 %v5456_v13, %v4755_v5  ;;  %v4909_v13 = vld [vmem:[#allocation5 + $0x5b8] sm:$0xf0] }
 0x2fd   : > { %v2340_v50 = vpack.c.bf16 %v2219_v12, %v2215_v51  ;;  %2764 = vmatpush.bf16.msrb.mxu1 %v4764_v16  ;;  %v5533_v51 = vld [vmem:[#allocation5 + $0x5f4] sm:$0xf] }
 0x2fe   : > { %vm2147_vm12 = vcmp.ge.f32.partialorder %v2131_v45, 0.0  ;;  %v2163_v26 = vmul.f32 0.2, %v2131_v45  ;;  %v2064_v52 = vpop.f32.mrf.mxu2  ;;  %2801 = vmatpush.bf16.msra.mxu3 %v4776_v61  ;;  %v4944_v56 = vor.u32 %v5533_v51, %v4941_v33  ;;  %v4925_v61 = vld [vmem:[#allocation5 + $0x5d8] sm:$0xf0] }
 0x2ff   : > { %v2093_v11 = vpop.f32.mrf.mxu3  ;;  %2530 = vmatmul.bf16.vlgmr.msra.gmra.mxu1 %v2340_v50  ;;  %2568 = vmatmul.bf16.vlgmr.msrb.gmra.mxu3 %v2340_v50  ;;  %v4940_v50 = vor.u32 %v5534_v53, %v4939_v54 }
 0x300   : > { %v2179_v28 = vsel %vm2147_vm12, %v2131_v45, %v2163_v26  ;;  %v2094_v23 = vadd.f32 %v2093_v11, %v2064_v52  ;;  %v5531_v26 = vld [vmem:[#allocation5 + $0x5e4] sm:$0xf]  ;;  %v4933_v52 = vld [vmem:[#allocation5 + $0x5e8] sm:$0xf0]  ;;  %v1541_v11 = vadd.f32 %v6675_v21, %v6672_v22 }
 0x301   : > { %v2200_v57 = vmul.f32 %v6735_v25, %v2179_v28  ;;  %2765 = vmatpush.bf16.msrb.mxu1 %v4756_v6  ;;  %v4936_v0 = vor.u32 %v5531_v26, %v4933_v52  ;;  %v4891_v26 = vld [vmem:[#allocation5 + $0x590] sm:$0xf] }
 0x302   : > { %v2112_v29 = vadd.f32 %v2094_v23, %v6709_v46  ;;  %2802 = vmatpush.bf16.msra.mxu3 %v4768_v32  ;;  %v1788_v9 = vadd.f32 %v6720_v24, %v1541_v11  ;;  %v4923_v24 = vld [vmem:[#allocation5 + $0x5d0] sm:$0xf]  ;;  %v4885_v11 = vld [vmem:[#allocation5 + $0x588] sm:$0xf0]  ;;  %v4892_v8 = vor.u32 %v5522_v17, %v4891_v26  ;;  %v5053_v17 = vld [vmem:[#allocation5 + $0x7d8] sm:$0xf0] }
 0x303   : > { %v2221_v38 = vadd.f32 %v6739_v30, %v2200_v57  ;;  %v4924_v47 = vor.u32 %v5530_v3, %v4923_v24  ;;  %v4995_v3 = vld [vmem:[#allocation5 + $0x760] sm:$0xf] }
 0x304   : > { %v2133_v46 = vadd.f32 %v6726_v35, %v2112_v29 }
 0x305   : > { %v6760_v20 = vpack.c.bf16 %v2221_v38, %v6754_v10  ;;  %2998 = vmatpush.bf16.msra.mxu1 %v4940_v50  ;;  %v4893_v50 = vld [vmem:[#allocation5 + $0x598] sm:$0xf0] }
 0x306   : > { %v2066_v27 = vpop.f32.mrf.mxu2  ;;  %v2165_v48 = vmul.f32 0.2, %v2133_v46  ;;  %2803 = vmatpush.bf16.msra.mxu3 %v4760_v18  ;;  %vm2149_vm14 = vcmp.ge.f32.partialorder %v2133_v46, 0.0  ;;  %v5526_v18 = vld [vmem:[#allocation5 + $0x5b4] sm:$0xf0] }
 0x307   : > { %v2095_v44 = vpop.f32.mrf.mxu3 }
 0x308   : > { %v2096_v7 = vadd.f32 %v2095_v44, %v2066_v27  ;;  %v2181_v28 = vsel %vm2149_vm14, %v2133_v46, %v2165_v48  ;;  %v4928_v27 = vor.u32 %v5529_v43, %v4925_v61  ;;  %v4917_v44 = vld [vmem:[#allocation5 + $0x5c8] sm:$0xf0]  ;;  %v5525_v46 = vld [vmem:[#allocation5 + $0x5b4] sm:$0xf]  ;;  %v5523_v48 = vld [vmem:[#allocation5 + $0x5a4] sm:$0xf] }
 0x309   : > { %2999 = vmatpush.bf16.msra.mxu1 %v4932_v36  ;;  %v2202_v4 = vmul.f32 %v6735_v25, %v2181_v28  ;;  %v4912_v6 = vor.u32 %v5525_v46, %v4909_v13  ;;  %v6789_v36 = vpop.f32.mrf.mxu0  ;;  %v5581_v43 = vld [vmem:[#allocation5 + $0x774] sm:$0xf]  ;;  %v4989_v46 = vld [vmem:[#allocation5 + $0x758] sm:$0xf0] }
 0x30a   : > { %v2114_v19 = vadd.f32 %v2096_v7, %v1812_v40  ;;  %3036 = vmatpush.bf16.msrb.mxu3 %v4944_v56  ;;  %v4916_v7 = vor.u32 %v5528_v60, %v4915_v37  ;;  %v5521_v56 = vld [vmem:[#allocation5 + $0x594] sm:$0xf] }
 0x30b   : > { %v2223_v32 = vadd.f32 %v6739_v30, %v2202_v4  ;;  %v4896_v52 = vor.u32 %v5521_v56, %v4893_v50  ;;  %v5597_v60 = vld [vmem:[#allocation5 + $0x7f4] sm:$0xf]  ;;  %v5594_v56 = vld [vmem:[#allocation5 + $0x7d4] sm:$0xf0] }
 0x30c   : > { %v2135_v1 = vadd.f32 %v6726_v35, %v2114_v19  ;;  %v4907_v19 = vld [vmem:[#allocation5 + $0x5b0] sm:$0xf] }
 0x30d   : > { %3000 = vmatpush.bf16.msra.mxu1 %v4924_v47  ;;  %v4997_v47 = vld [vmem:[#allocation5 + $0x768] sm:$0xf0] }
 0x30e   : > { %vm2151_vm13 = vcmp.ge.f32.partialorder %v2135_v1, 0.0  ;;  %v2167_v58 = vmul.f32 0.2, %v2135_v1  ;;  %v2069_v15 = vpop.f32.mrf.mxu2  ;;  %3037 = vmatpush.bf16.msrb.mxu3 %v4936_v0 }
 0x30f   : > { %v2098_v12 = vpop.f32.mrf.mxu3 }
 0x310   : > { %v2099_v45 = vadd.f32 %v2098_v12, %v2069_v15  ;;  %v2183_v63 = vsel %vm2151_vm13, %v2135_v1, %v2167_v58  ;;  %v4908_v1 = vor.u32 %v5526_v18, %v4907_v19  ;;  %v4901_v58 = vld [vmem:[#allocation5 + $0x5a8] sm:$0xf0]  ;;  %v4899_v15 = vld [vmem:[#allocation5 + $0x5a0] sm:$0xf]  ;;  %v5524_v12 = vld [vmem:[#allocation5 + $0x5a4] sm:$0xf0] }
 0x311   : > { %v2204_v39 = vmul.f32 %v6735_v25, %v2183_v63  ;;  %3001 = vmatpush.bf16.msra.mxu1 %v4916_v7  ;;  %v4904_v33 = vor.u32 %v5523_v48, %v4901_v58  ;;  %v4900_v54 = vor.u32 %v5524_v12, %v4899_v15  ;;  %v5519_v63 = vld [vmem:[#allocation5 + $0x584] sm:$0xf]  ;;  %v4987_v7 = vld [vmem:[#allocation5 + $0x750] sm:$0xf]  ;;  %v5059_v19 = vld [vmem:[#allocation5 + $0x7e0] sm:$0xf] }
 0x312   : > { %v2116_v2 = vadd.f32 %v2099_v45, %v6717_v55  ;;  %v1817_v55 = vadd.f32 %v6722_v59, %v1788_v9  ;;  %3038 = vmatpush.bf16.msrb.mxu3 %v4928_v27  ;;  %v5596_v18 = vld [vmem:[#allocation5 + $0x7e4] sm:$0xf0]  ;;  %v5061_v58 = vld [vmem:[#allocation5 + $0x7e8] sm:$0xf0] }
 0x313   : > { %v2225_v49 = vadd.f32 %v6739_v30, %v2204_v39  ;;  %v4883_v39 = vld [vmem:[#allocation5 + $0x580] sm:$0xf]  ;;  %v5060_v48 = vor.u32 %v5596_v18, %v5059_v19  ;;  %v5576_v12 = vld [vmem:[#allocation5 + $0x744] sm:$0xf0] }
 0x314   : > { %v2137_v31 = vadd.f32 %v6726_v35, %v2116_v2  ;;  %v5520_v2 = vld [vmem:[#allocation5 + $0x584] sm:$0xf0] }
 0x315   : > { %v6773_v23 = vpack.c.bf16 %v2225_v49, %v2221_v38  ;;  %v5527_v38 = vld [vmem:[#allocation5 + $0x5c4] sm:$0xf]  ;;  %3002 = vmatpush.bf16.msra.mxu1 %v4908_v1  ;;  %v4884_v0 = vor.u32 %v5520_v2, %v4883_v39  ;;  %v5573_v39 = vld [vmem:[#allocation5 + $0x734] sm:$0xf] }
 0x316   : > { %vm2153_vm15 = vcmp.ge.f32.partialorder %v2137_v31, 0.0  ;;  %v2169_v22 = vmul.f32 0.2, %v2137_v31  ;;  %v2071_v21 = vpop.f32.mrf.mxu2  ;;  %v4920_v59 = vor.u32 %v5527_v38, %v4917_v44  ;;  %v5067_v38 = vld [vmem:[#allocation5 + $0x7f0] sm:$0xf] }
 0x317   : > { %v2100_v57 = vpop.f32.mrf.mxu3  ;;  %v5598_v44 = vld [vmem:[#allocation5 + $0x7f4] sm:$0xf0] }
 0x318   : > { %v2101_v42 = vadd.f32 %v2100_v57, %v2071_v21  ;;  %v2185_v29 = vsel %vm2153_vm15, %v2137_v31, %v2169_v22  ;;  %3039 = vmatpush.bf16.msrb.mxu3 %v4920_v59  ;;  %v5003_v21 = vld [vmem:[#allocation5 + $0x770] sm:$0xf]  ;;  %v5005_v57 = vld [vmem:[#allocation5 + $0x778] sm:$0xf0]  ;;  %vm3974_vm15 = vcmask 7168  }
 0x319   : > { %v2206_v14 = vmul.f32 %v6735_v25, %v2185_v29  ;;  %3003 = vmatpush.bf16.msra.mxu1 %v4900_v54  ;;  %v5008_v4 = vor.u32 %v5581_v43, %v5005_v57  ;;  %v5579_v29 = vld [vmem:[#allocation5 + $0x764] sm:$0xf] }
 0x31a   : > { %v2118_v40 = vadd.f32 %v2101_v42, %v1817_v55  ;;  %v5580_v42 = vld [vmem:[#allocation5 + $0x764] sm:$0xf0]  ;;  %v5000_v37 = vor.u32 %v5579_v29, %v4997_v47  ;;  %v5591_v43 = vld [vmem:[#allocation5 + $0x7c4] sm:$0xf]  ;;  %v4963_v29 = vld [vmem:[#allocation5 + $0x720] sm:$0xf] }
 0x31b   : > { %v2227_v16 = vadd.f32 %v6739_v30, %v2206_v14  ;;  %3423 = vmatpush.bf16.msra.mxu2 %v5008_v4  ;;  %v4996_v27 = vor.u32 %v5580_v42, %v4995_v3  ;;  %v5068_v14 = vor.u32 %v5598_v44, %v5067_v38  ;;  %v5045_v3 = vld [vmem:[#allocation5 + $0x7c8] sm:$0xf0]  ;;  %v5571_v47 = vld [vmem:[#allocation5 + $0x724] sm:$0xf] }
 0x31c   : > { %v2139_v34 = vadd.f32 %v6726_v35, %v2118_v40  ;;  %3040 = vmatpush.bf16.msrb.mxu3 %v4912_v6  ;;  %v5069_v40 = vld [vmem:[#allocation5 + $0x7f8] sm:$0xf0]  ;;  %v5595_v6 = vld [vmem:[#allocation5 + $0x7e4] sm:$0xf]  ;;  %v5048_v42 = vor.u32 %v5591_v43, %v5045_v3  ;;  %v4965_v44 = vld [vmem:[#allocation5 + $0x728] sm:$0xf0] }
 0x31d   : > { %v2342_v41 = vpack.c.bf16 %v2227_v16, %v2223_v32  ;;  %3004 = vmatpush.bf16.msra.mxu1 %v4892_v8  ;;  %v5072_v59 = vor.u32 %v5597_v60, %v5069_v40  ;;  %v5578_v32 = vld [vmem:[#allocation5 + $0x754] sm:$0xf0]  ;;  %v5577_v16 = vld [vmem:[#allocation5 + $0x754] sm:$0xf]  ;;  %v5064_v15 = vor.u32 %v5595_v6, %v5061_v58  ;;  %v4968_v60 = vor.u32 %v5571_v47, %v4965_v44  ;;  %v4957_v6 = vld [vmem:[#allocation5 + $0x718] sm:$0xf0] }
 0x31e   : > { %vm2155_vm0 = vcmp.ge.f32.partialorder %v2139_v34, 0.0  ;;  %v2171_v5 = vmul.f32 0.2, %v2139_v34  ;;  %v6791_v9 = vpop.f32.mrf.mxu2  ;;  %v4992_v13 = vor.u32 %v5577_v16, %v4989_v46  ;;  %v5574_v8 = vld [vmem:[#allocation5 + $0x734] sm:$0xf0] }
 0x31f   : > { %2535 = vmatmul.bf16.gmra.mxu1 %v2342_v41  ;;  %2573 = vmatmul.bf16.gmra.mxu3 %v2342_v41  ;;  %v5570_v46 = vld [vmem:[#allocation5 + $0x714] sm:$0xf0]  ;;  %v5585_v43 = vld [vmem:[#allocation5 + $0x794] sm:$0xf]  ;;  %v5548_v47 = vld [vmem:[#allocation5 + $0x664] sm:$0xf0] }
 0x320   : > { %v2187_v51 = vsel %vm2155_vm0, %v2139_v34, %v2171_v5  ;;  %3041 = vmatpush.bf16.msrb.mxu3 %v4904_v33  ;;  %3424 = vmatpush.bf16.msra.mxu2 %v5000_v37  ;;  %v4988_v5 = vor.u32 %v5578_v32, %v4987_v7  ;;  %v5035_v37 = vld [vmem:[#allocation5 + $0x7b0] sm:$0xf]  ;;  %v5037_v7 = vld [vmem:[#allocation5 + $0x7b8] sm:$0xf0] }
 0x321   : > { %v2208_v35 = vmul.f32 %v6735_v25, %v2187_v51  ;;  %v4888_v25 = vor.u32 %v5519_v63, %v4885_v11  ;;  %3005 = vmatpush.bf16.msra.mxu1 %v4884_v0  ;;  %v4979_v51 = vld [vmem:[#allocation5 + $0x740] sm:$0xf]  ;;  %v4971_v11 = vld [vmem:[#allocation5 + $0x730] sm:$0xf]  ;;  %v4973_v0 = vld [vmem:[#allocation5 + $0x738] sm:$0xf0] }
 0x322   : > { %v4980_v54 = vor.u32 %v5576_v12, %v4979_v51  ;;  %v5588_v51 = vld [vmem:[#allocation5 + $0x7a4] sm:$0xf0]  ;;  %v5587_v12 = vld [vmem:[#allocation5 + $0x7a4] sm:$0xf] }
 0x323   : > { %v2229_v53 = vadd.f32 %v6739_v30, %v2208_v35  ;;  %v2336_v30 = vpack.c.bf16 %v6754_v10, %v5824_v62  ;;  %v5575_v35 = vld [vmem:[#allocation5 + $0x744] sm:$0xf] }
 0x324   : > { %3042 = vmatpush.bf16.msrb.mxu3 %v4896_v52  ;;  %3425 = vmatpush.bf16.msra.mxu2 %v4992_v13  ;;  %v5593_v52 = vld [vmem:[#allocation5 + $0x7d4] sm:$0xf] }
 0x325   : > { %v2818_v45 = vpack.c.bf16 %v2229_v53, %v2225_v49  ;;  %v6793_v49 = vpop.f32.mrf.mxu0  ;;  %v4981_v53 = vld [vmem:[#allocation5 + $0x748] sm:$0xf0]  ;;  %v5056_v63 = vor.u32 %v5593_v52, %v5053_v17  ;;  %v5569_v13 = vld [vmem:[#allocation5 + $0x714] sm:$0xf] }
 0x326   : > { %v6795_v10 = vpop.f32.mrf.mxu2  ;;  %v4984_v50 = vor.u32 %v5575_v35, %v4981_v53  ;;  %v5029_v35 = vld [vmem:[#allocation5 + $0x7a8] sm:$0xf0] }
 0x327   : > { %v4949_v17 = vld [vmem:[#allocation5 + $0x708] sm:$0xf0] }
 0x328   : > { %3043 = vmatpush.bf16.msrb.mxu3 %v4888_v25  ;;  %3426 = vmatpush.bf16.msra.mxu2 %v4984_v50  ;;  %v4972_v25 = vor.u32 %v5574_v8, %v4971_v11  ;;  %v5568_v50 = vld [vmem:[#allocation5 + $0x704] sm:$0xf0]  ;;  %v5550_v8 = vld [vmem:[#allocation5 + $0x674] sm:$0xf0] }
 0x32d   : > { %v6797_v31 = vpop.f32.mrf.mxu0 }
 0x32e   : > { %v6801_v22 = vpop.f32.mrf.mxu2 }
 0x32f   : > { %2766 = vmatmul.bf16.vlgmr.msrb.gmra.mxu1 %v2336_v30  ;;  %2804 = vmatmul.bf16.vlgmr.msra.gmra.mxu3 %v2336_v30  ;;  %v4976_v30 = vor.u32 %v5573_v39, %v4973_v0  ;;  %v5549_v39 = vld [vmem:[#allocation5 + $0x674] sm:$0xf] }
 0x330   : > { %3409 = vmatpush.bf16.msrb.mxu1 %v5068_v14  ;;  %3437 = vmatpush.bf16.msra.mxu3 %v5072_v59  ;;  %v5590_v14 = vld [vmem:[#allocation5 + $0x7b4] sm:$0xf0]  ;;  %v5589_v59 = vld [vmem:[#allocation5 + $0x7b4] sm:$0xf] }
 0x331   : > { %3427 = vmatpush.bf16.msra.mxu2 %v4976_v30  ;;  %v5036_v40 = vor.u32 %v5590_v14, %v5035_v37  ;;  %v5040_v16 = vor.u32 %v5589_v59, %v5037_v7  ;;  %v5547_v37 = vld [vmem:[#allocation5 + $0x664] sm:$0xf]  ;;  %v5125_v14 = vld [vmem:[#allocation5 + $0x668] sm:$0xf0]  ;;  %v5584_v7 = vld [vmem:[#allocation5 + $0x784] sm:$0xf0] }
 0x332   : > { %v5128_v59 = vor.u32 %v5547_v37, %v5125_v14  ;;  %v5561_v14 = vld [vmem:[#allocation5 + $0x6d4] sm:$0xf] }
 0x334   : > { %3410 = vmatpush.bf16.msrb.mxu1 %v5060_v48  ;;  %3438 = vmatpush.bf16.msra.mxu3 %v5064_v15  ;;  %v4960_v48 = vor.u32 %v5569_v13, %v4957_v6  ;;  %v5027_v15 = vld [vmem:[#allocation5 + $0x7a0] sm:$0xf]  ;;  %v5566_v6 = vld [vmem:[#allocation5 + $0x6f4] sm:$0xf0] }
 0x335   : > { %v6805_v61 = vpop.f32.mrf.mxu0  ;;  %3428 = vmatpush.bf16.msra.mxu2 %v4968_v60  ;;  %v5028_v53 = vor.u32 %v5588_v51, %v5027_v15  ;;  %v5011_v60 = vld [vmem:[#allocation5 + $0x780] sm:$0xf]  ;;  %v5565_v15 = vld [vmem:[#allocation5 + $0x6f4] sm:$0xf]  ;;  %v5197_v51 = vld [vmem:[#allocation5 + $0x6f8] sm:$0xf0] }
 0x336   : > { %v6809_v34 = vpop.f32.mrf.mxu2 }
 0x338   : > { %3439 = vmatpush.bf16.msra.mxu3 %v5056_v63  ;;  %v5131_v63 = vld [vmem:[#allocation5 + $0x670] sm:$0xf] }
 0x339   : > { %3429 = vmatpush.bf16.msra.mxu2 %v4960_v48  ;;  %v5132_v0 = vor.u32 %v5550_v8, %v5131_v63  ;;  %v5563_v8 = vld [vmem:[#allocation5 + $0x6e4] sm:$0xf] }
 0x33c   : > { %3440 = vmatpush.bf16.msra.mxu3 %v5048_v42 }
 0x33d   : > { %v6815_v33 = vpop.f32.mrf.mxu0 }
 0x33f   : > { %2771 = vmatmul.bf16.gmra.mxu1 %v6773_v23  ;;  %2809 = vmatmul.bf16.gmra.mxu3 %v6773_v23 }
 0x340   : > { %3441 = vmatpush.bf16.msra.mxu3 %v5040_v16  ;;  %v5583_v16 = vld [vmem:[#allocation5 + $0x784] sm:$0xf] }
 0x345   : > { %v6823_v32 = vpop.f32.mrf.mxu0 }
 0x34f   : > { %3006 = vmatmul.bf16.vlgmr.msra.gmra.mxu1 %v6760_v20  ;;  %3044 = vmatmul.bf16.vlgmr.msrb.gmra.mxu3 %v6760_v20  ;;  %v5582_v20 = vld [vmem:[#allocation5 + $0x774] sm:$0xf0] }
 0x350   : > { %v5004_v55 = vor.u32 %v5582_v20, %v5003_v21  ;;  %v5043_v21 = vld [vmem:[#allocation5 + $0x7c0] sm:$0xf]  ;;  %v5592_v20 = vld [vmem:[#allocation5 + $0x7c4] sm:$0xf0] }
 0x351   : > { %v5044_v4 = vor.u32 %v5592_v20, %v5043_v21  ;;  %v5019_v21 = vld [vmem:[#allocation5 + $0x790] sm:$0xf]  ;;  %v5586_v20 = vld [vmem:[#allocation5 + $0x794] sm:$0xf0] }
 0x352   : > { %3395 = vmatpush.bf16.msrb.mxu0 %v5004_v55  ;;  %v6819_v55 = vpop.f32.mrf.mxu2  ;;  %v5020_v42 = vor.u32 %v5586_v20, %v5019_v21  ;;  %v5544_v21 = vld [vmem:[#allocation5 + $0x644] sm:$0xf0]  ;;  %v5543_v20 = vld [vmem:[#allocation5 + $0x644] sm:$0xf] }
 0x356   : > { %3396 = vmatpush.bf16.msrb.mxu0 %v4996_v27  ;;  %v5572_v27 = vld [vmem:[#allocation5 + $0x724] sm:$0xf0] }
 0x357   : > { %v4964_v38 = vor.u32 %v5572_v27, %v4963_v29  ;;  %v5021_v29 = vld [vmem:[#allocation5 + $0x798] sm:$0xf0]  ;;  %v5123_v27 = vld [vmem:[#allocation5 + $0x660] sm:$0xf] }
 0x358   : > { %v5124_v44 = vor.u32 %v5548_v47, %v5123_v27 }
 0x35a   : > { %3397 = vmatpush.bf16.msrb.mxu0 %v4988_v5  ;;  %v4955_v5 = vld [vmem:[#allocation5 + $0x710] sm:$0xf] }
 0x35b   : > { %v4956_v18 = vor.u32 %v5570_v46, %v4955_v5  ;;  %v5013_v5 = vld [vmem:[#allocation5 + $0x788] sm:$0xf0]  ;;  %v5012_v46 = vor.u32 %v5584_v7, %v5011_v60  ;;  %v5181_v60 = vld [vmem:[#allocation5 + $0x6d8] sm:$0xf0]  ;;  %v5099_v7 = vld [vmem:[#allocation5 + $0x630] sm:$0xf] }
 0x35c   : > { %v5016_v13 = vor.u32 %v5583_v16, %v5013_v5  ;;  %v5542_v16 = vld [vmem:[#allocation5 + $0x634] sm:$0xf0]  ;;  %v5541_v5 = vld [vmem:[#allocation5 + $0x634] sm:$0xf] }
 0x35e   : > { %3398 = vmatpush.bf16.msrb.mxu0 %v4980_v54  ;;  %v6829_v54 = vpop.f32.mrf.mxu2 }
 0x35f   : > { %3011 = vmatmul.bf16.gmra.mxu1 %v2818_v45  ;;  %3049 = vmatmul.bf16.gmra.mxu3 %v2818_v45  ;;  %v5051_v45 = vld [vmem:[#allocation5 + $0x7d0] sm:$0xf] }
 0x360   : > { %v5052_v26 = vor.u32 %v5594_v56, %v5051_v45  ;;  %v5032_v45 = vor.u32 %v5587_v12, %v5029_v35  ;;  %v4947_v56 = vld [vmem:[#allocation5 + $0x700] sm:$0xf]  ;;  %v5200_v12 = vor.u32 %v5565_v15, %v5197_v51  ;;  %v5115_v35 = vld [vmem:[#allocation5 + $0x650] sm:$0xf]  ;;  %v5559_v15 = vld [vmem:[#allocation5 + $0x6c4] sm:$0xf] }
 0x361   : > { %v4948_v52 = vor.u32 %v5568_v50, %v4947_v56 }
 0x362   : > { %3411 = vmatpush.bf16.msrb.mxu1 %v5052_v26  ;;  %3399 = vmatpush.bf16.msrb.mxu0 %v4972_v25  ;;  %v5567_v26 = vld [vmem:[#allocation5 + $0x704] sm:$0xf]  ;;  %v5133_v25 = vld [vmem:[#allocation5 + $0x678] sm:$0xf0] }
 0x363   : > { %3442 = vmatpush.bf16.msra.mxu3 %v5032_v45  ;;  %v4952_v11 = vor.u32 %v5567_v26, %v4949_v17  ;;  %v5136_v30 = vor.u32 %v5549_v39, %v5133_v25  ;;  %v5545_v45 = vld [vmem:[#allocation5 + $0x654] sm:$0xf]  ;;  %v5117_v26 = vld [vmem:[#allocation5 + $0x658] sm:$0xf0]  ;;  %v5564_v17 = vld [vmem:[#allocation5 + $0x6e4] sm:$0xf0] }
 0x364   : > { %v5120_v63 = vor.u32 %v5545_v45, %v5117_v26  ;;  %v5189_v39 = vld [vmem:[#allocation5 + $0x6e8] sm:$0xf0]  ;;  %v5540_v26 = vld [vmem:[#allocation5 + $0x624] sm:$0xf0] }
 0x365   : > { %3430 = vmatpush.bf16.msra.mxu2 %v4952_v11 }
 0x366   : > { %3412 = vmatpush.bf16.msrb.mxu1 %v5044_v4  ;;  %3400 = vmatpush.bf16.msrb.mxu0 %v4964_v38  ;;  %v6831_v4 = vpop.f32.mrf.mxu0  ;;  %v5024_v38 = vor.u32 %v5585_v43, %v5021_v29  ;;  %v6837_v56 = vpop.f32.mrf.mxu2 }
 0x368   : > { %3443 = vmatpush.bf16.msra.mxu3 %v5024_v38  ;;  %v5179_v38 = vld [vmem:[#allocation5 + $0x6d0] sm:$0xf] }
 0x369   : > { %3639 = vmatpush.bf16.msrb.mxu2 %v5136_v30  ;;  %v5107_v30 = vld [vmem:[#allocation5 + $0x640] sm:$0xf] }
 0x36a   : > { %3413 = vmatpush.bf16.msrb.mxu1 %v5036_v40  ;;  %3401 = vmatpush.bf16.msrb.mxu0 %v4956_v18  ;;  %v5195_v18 = vld [vmem:[#allocation5 + $0x6f0] sm:$0xf]  ;;  %v5108_v43 = vor.u32 %v5544_v21, %v5107_v30  ;;  %v5557_v30 = vld [vmem:[#allocation5 + $0x6b4] sm:$0xf] }
 0x36b   : > { %v5196_v48 = vor.u32 %v5566_v6, %v5195_v18  ;;  %v5171_v6 = vld [vmem:[#allocation5 + $0x6c0] sm:$0xf] }
 0x36c   : > { %3444 = vmatpush.bf16.msra.mxu3 %v5016_v13  ;;  %v5101_v13 = vld [vmem:[#allocation5 + $0x638] sm:$0xf0] }
 0x36d   : > { %3640 = vmatpush.bf16.msrb.mxu2 %v5128_v59  ;;  %v5184_v59 = vor.u32 %v5561_v14, %v5181_v60  ;;  %v5104_v18 = vor.u32 %v5541_v5, %v5101_v13  ;;  %v5085_v14 = vld [vmem:[#allocation5 + $0x618] sm:$0xf0] }
 0x36e   : > { %3414 = vmatpush.bf16.msrb.mxu1 %v5028_v53  ;;  %3402 = vmatpush.bf16.msrb.mxu0 %v4948_v52  ;;  %v5546_v53 = vld [vmem:[#allocation5 + $0x654] sm:$0xf0]  ;;  %v5187_v52 = vld [vmem:[#allocation5 + $0x6e0] sm:$0xf]  ;;  %v6841_v29 = vpop.f32.mrf.mxu0 }
 0x36f   : > { %v5116_v50 = vor.u32 %v5546_v53, %v5115_v35  ;;  %v5188_v11 = vor.u32 %v5564_v17, %v5187_v52  ;;  %v6845_v35 = vpop.f32.mrf.mxu2  ;;  %v5539_v52 = vld [vmem:[#allocation5 + $0x624] sm:$0xf] }
 0x370   : > { %3653 = vmatpush.bf16.msrb.mxu3 %v5200_v12  ;;  %v5173_v12 = vld [vmem:[#allocation5 + $0x6c8] sm:$0xf0] }
 0x371   : > { %3641 = vmatpush.bf16.msrb.mxu2 %v5120_v63  ;;  %v5176_v45 = vor.u32 %v5559_v15, %v5173_v12  ;;  %v5093_v63 = vld [vmem:[#allocation5 + $0x628] sm:$0xf0]  ;;  %v5535_v15 = vld [vmem:[#allocation5 + $0x604] sm:$0xf] }
 0x372   : > { %3611 = vmatpush.bf16.msra.mxu0 %v5132_v0  ;;  %3415 = vmatpush.bf16.msrb.mxu1 %v5020_v42  ;;  %v5192_v0 = vor.u32 %v5563_v8, %v5189_v39  ;;  %v5109_v42 = vld [vmem:[#allocation5 + $0x648] sm:$0xf0]  ;;  %v5096_v8 = vor.u32 %v5539_v52, %v5093_v63  ;;  %v5163_v39 = vld [vmem:[#allocation5 + $0x6b0] sm:$0xf]  ;;  %v5554_v63 = vld [vmem:[#allocation5 + $0x694] sm:$0xf0] }
 0x373   : > { %v5112_v47 = vor.u32 %v5543_v20, %v5109_v42  ;;  %v5165_v20 = vld [vmem:[#allocation5 + $0x6b8] sm:$0xf0]  ;;  %v5077_v12 = vld [vmem:[#allocation5 + $0x608] sm:$0xf0]  ;;  %v5147_v52 = vld [vmem:[#allocation5 + $0x690] sm:$0xf] }
 0x374   : > { %3654 = vmatpush.bf16.msrb.mxu3 %v5192_v0  ;;  %v5558_v0 = vld [vmem:[#allocation5 + $0x6b4] sm:$0xf0]  ;;  %v5168_v42 = vor.u32 %v5557_v30, %v5165_v20  ;;  %v5139_v20 = vld [vmem:[#allocation5 + $0x680] sm:$0xf] }
 0x375   : > { %3642 = vmatpush.bf16.msrb.mxu2 %v5112_v47  ;;  %v5164_v21 = vor.u32 %v5558_v0, %v5163_v39  ;;  %v5083_v47 = vld [vmem:[#allocation5 + $0x610] sm:$0xf]  ;;  %v5149_v39 = vld [vmem:[#allocation5 + $0x698] sm:$0xf0]  ;;  %v5148_v0 = vor.u32 %v5554_v63, %v5147_v52 }
 0x376   : > { %3612 = vmatpush.bf16.msra.mxu0 %v5124_v44  ;;  %3416 = vmatpush.bf16.msrb.mxu1 %v5012_v46  ;;  %v5562_v44 = vld [vmem:[#allocation5 + $0x6d4] sm:$0xf0]  ;;  %v5100_v46 = vor.u32 %v5542_v16, %v5099_v7  ;;  %v5556_v7 = vld [vmem:[#allocation5 + $0x6a4] sm:$0xf0]  ;;  %v5555_v16 = vld [vmem:[#allocation5 + $0x6a4] sm:$0xf] }
 0x377   : > { %v5180_v37 = vor.u32 %v5562_v44, %v5179_v38  ;;  %v5538_v38 = vld [vmem:[#allocation5 + $0x614] sm:$0xf0]  ;;  %v5537_v44 = vld [vmem:[#allocation5 + $0x614] sm:$0xf] }
 0x378   : > { %3655 = vmatpush.bf16.msrb.mxu3 %v5184_v59  ;;  %v5088_v60 = vor.u32 %v5537_v44, %v5085_v14  ;;  %v5155_v59 = vld [vmem:[#allocation5 + $0x6a0] sm:$0xf]  ;;  %v5141_v14 = vld [vmem:[#allocation5 + $0x688] sm:$0xf0] }
 0x379   : > { %3643 = vmatpush.bf16.msrb.mxu2 %v5104_v18  ;;  %v5156_v5 = vor.u32 %v5556_v7, %v5155_v59 }
 0x37a   : > { %3625 = vmatpush.bf16.msra.mxu1 %v5196_v48  ;;  %3613 = vmatpush.bf16.msra.mxu0 %v5116_v50  ;;  %v5560_v48 = vld [vmem:[#allocation5 + $0x6c4] sm:$0xf0]  ;;  %v5091_v50 = vld [vmem:[#allocation5 + $0x620] sm:$0xf] }
 0x37b   : > { %v5172_v51 = vor.u32 %v5560_v48, %v5171_v6  ;;  %v5092_v17 = vor.u32 %v5540_v26, %v5091_v50  ;;  %v5075_v6 = vld [vmem:[#allocation5 + $0x600] sm:$0xf]  ;;  %v5536_v48 = vld [vmem:[#allocation5 + $0x604] sm:$0xf0]  ;;  %v5080_v26 = vor.u32 %v5535_v15, %v5077_v12 }
 0x37c   : > { %v6799_v28 = vpop.f32.mrf.mxu1  ;;  %3656 = vmatpush.bf16.msrb.mxu3 %v5176_v45  ;;  %v3026_v45 = vpop.f32.mrf.mxu2 }
 0x37d   : > { %3644 = vmatpush.bf16.msrb.mxu2 %v5096_v8  ;;  %v5553_v8 = vld [vmem:[#allocation5 + $0x694] sm:$0xf] }
 0x37e   : > { %3626 = vmatpush.bf16.msra.mxu1 %v5188_v11  ;;  %3614 = vmatpush.bf16.msra.mxu0 %v5108_v43  ;;  %v2988_v43 = vpop.f32.mrf.mxu0  ;;  %v5152_v30 = vor.u32 %v5553_v8, %v5149_v39  ;;  %v2334_v39 = vld [vmem:[#allocation7 + $0x10] ss:$8 sm:$0x3] }
 0x380   : > { %3657 = vmatpush.bf16.msrb.mxu3 %v5168_v42  ;;  %v5552_v42 = vld [vmem:[#allocation5 + $0x684] sm:$0xf0] }
 0x381   : > { %3645 = vmatpush.bf16.msrb.mxu2 %v5088_v60  ;;  %v5140_v44 = vor.u32 %v5552_v42, %v5139_v20 }
 0x382   : > { %v6803_v23 = vpop.f32.mrf.mxu3  ;;  %3627 = vmatpush.bf16.msra.mxu1 %v5180_v37  ;;  %3615 = vmatpush.bf16.msra.mxu0 %v5100_v46  ;;  %v5084_v37 = vor.u32 %v5538_v38, %v5083_v47  ;;  %v5157_v46 = vld [vmem:[#allocation5 + $0x6a8] sm:$0xf0] }
 0x383   : > { %v5160_v18 = vor.u32 %v5555_v16, %v5157_v46  ;;  %v2570_v59 = vadd.f32 %v6803_v23, %v6791_v9 }
 0x384   : > { %v6807_v24 = vpop.f32.mrf.mxu1 }
 0x385   : > { %3658 = vmatpush.bf16.msrb.mxu3 %v5160_v18  ;;  %3646 = vmatpush.bf16.msrb.mxu2 %v5080_v26 }
 0x386   : > { %3628 = vmatpush.bf16.msra.mxu1 %v5172_v51  ;;  %3616 = vmatpush.bf16.msra.mxu0 %v5092_v17  ;;  %v5076_v51 = vor.u32 %v5536_v48, %v5075_v6  ;;  %v2532_v17 = vadd.f32 %v6799_v28, %v6789_v36  ;;  %v2330_v36 = vld [vmem:[#allocation7 + $0x6] ss:$8 sm:$0x3]  ;;  %v2787_v6 = vadd.f32 %v6819_v55, %v2570_v59  ;;  %v5613_v59 = vld [vmem:[#allocation5 + $0x874] sm:$0xf] }
 0x388   : > { %v2749_v47 = vadd.f32 %v6815_v33, %v2532_v17  ;;  %v6861_v33 = vperm.slane %v2330_v36, 0 }
 0x389   : > { %3659 = vmatpush.bf16.msrb.mxu3 %v5152_v30 }
 0x38a   : > { %v6811_v41 = vpop.f32.mrf.mxu3  ;;  %3629 = vmatpush.bf16.msra.mxu1 %v5164_v21  ;;  %3617 = vmatpush.bf16.msra.mxu0 %v5084_v37  ;;  %v2990_v21 = vpop.f32.mrf.mxu0  ;;  %v5551_v37 = vld [vmem:[#allocation5 + $0x684] sm:$0xf] }
 0x38b   : > { %v5144_v60 = vor.u32 %v5551_v37, %v5141_v14  ;;  %v2572_v9 = vadd.f32 %v6811_v41, %v6795_v10  ;;  %v6895_v37 = vperm.slane %v2334_v39, 0 }
 0x38d   : > { %3660 = vmatpush.bf16.msrb.mxu3 %v5144_v60  ;;  %v2789_v10 = vadd.f32 %v6829_v54, %v2572_v9 }
 0x38e   : > { %3630 = vmatpush.bf16.msra.mxu1 %v5156_v5  ;;  %3618 = vmatpush.bf16.msra.mxu0 %v5076_v51  ;;  %v2534_v5 = vadd.f32 %v6807_v24, %v6793_v49 }
 0x392   : > { %3631 = vmatpush.bf16.msra.mxu1 %v5148_v0  ;;  %v2993_v15 = vpop.f32.mrf.mxu0 }
 0x396   : > { %3632 = vmatpush.bf16.msra.mxu1 %v5140_v44 }
 0x39c   : > { %v6813_v1 = vpop.f32.mrf.mxu1 }
 0x39d   : > { %v2537_v18 = vadd.f32 %v6813_v1, %v6797_v31  ;;  %v6873_v1 = vperm.slane %v2330_v36, 1  ;;  %v5614_v36 = vld [vmem:[#allocation5 + $0x874] sm:$0xf0] }
 0x3a2   : > { %v6817_v2 = vpop.f32.mrf.mxu3 }
 0x3a3   : > { %v2575_v55 = vadd.f32 %v6817_v2, %v6801_v22 }
 0x3a4   : > { %v6821_v57 = vpop.f32.mrf.mxu1 }
 0x3aa   : > { %v6825_v19 = vpop.f32.mrf.mxu3 }
 0x3ac   : > { %v6827_v58 = vpop.f32.mrf.mxu1 }
 0x3ad   : > { %v2768_v7 = vadd.f32 %v6827_v58, %v2749_v47  ;;  %v2751_v58 = vadd.f32 %v6823_v32, %v2534_v5  ;;  %v2995_v47 = vpop.f32.mrf.mxu0 }
 0x3b2   : > { %v6833_v3 = vpop.f32.mrf.mxu3 }
 0x3b3   : > { %v2806_v23 = vadd.f32 %v6833_v3, %v2787_v6  ;;  %v2332_v3 = vld [vmem:[#allocation7 + $0x7] ss:$8 sm:$0x3] }
 0x3b4   : > { %v6835_v40 = vpop.f32.mrf.mxu1  ;;  %v6886_v8 = vperm.slane %v2332_v3, 0 }
 0x3b5   : > { %v2770_v12 = vadd.f32 %v6835_v40, %v2751_v58  ;;  %v2539_v40 = vadd.f32 %v6821_v57, %v6805_v61 }
 0x3b7   : > { %v2756_v57 = vadd.f32 %v6841_v29, %v2539_v40 }
 0x3ba   : > { %v6839_v25 = vpop.f32.mrf.mxu3 }
 0x3bb   : > { %v2808_v54 = vadd.f32 %v6839_v25, %v2789_v10 }
 0x3bc   : > { %v6843_v27 = vpop.f32.mrf.mxu1 }
 0x3c2   : > { %v6847_v53 = vpop.f32.mrf.mxu3 }
 0x3c4   : > { %v6849_v11 = vpop.f32.mrf.mxu1 }
 0x3ca   : > { %v6851_v13 = vpop.f32.mrf.mxu3 }
 0x3cc   : > { %v3007_v50 = vpop.f32.mrf.mxu1 }
 0x3cd   : > { %v3008_v38 = vadd.f32 %v3007_v50, %v2988_v43  ;;  %v3028_v43 = vpop.f32.mrf.mxu2  ;;  %v2754_v50 = vadd.f32 %v6831_v4, %v2537_v18  ;;  %v2577_v4 = vadd.f32 %v6825_v19, %v6809_v34 }
 0x3cf   : > { %v3055_v46 = vadd.f32 %v3008_v38, %v2768_v7  ;;  %v2773_v32 = vadd.f32 %v6843_v27, %v2754_v50  ;;  %v2792_v27 = vadd.f32 %v6837_v56, %v2575_v55  ;;  %v2794_v19 = vadd.f32 %v6845_v35, %v2577_v4  ;;  %v5261_v7 = vld [vmem:[#allocation5 + $0x878] sm:$0xf0]  ;;  %v5611_v50 = vld [vmem:[#allocation5 + $0x864] sm:$0xf] }
 0x3d0   : > { %v2775_v38 = vadd.f32 %v6849_v11, %v2756_v57  ;;  %v5264_v58 = vor.u32 %v5613_v59, %v5261_v7  ;;  %v5610_v57 = vld [vmem:[#allocation5 + $0x854] sm:$0xf0]  ;;  %v5608_v59 = vld [vmem:[#allocation5 + $0x844] sm:$0xf0]  ;;  %v5607_v7 = vld [vmem:[#allocation5 + $0x844] sm:$0xf] }
 0x3d1   : > { %v3068_v49 = vadd.f32 %v6861_v33, %v3055_v46  ;;  %v2811_v34 = vadd.f32 %v6847_v53, %v2792_v27  ;;  %v5259_v53 = vld [vmem:[#allocation5 + $0x870] sm:$0xf]  ;;  %v2813_v55 = vadd.f32 %v6851_v13, %v2794_v19  ;;  %v5609_v19 = vld [vmem:[#allocation5 + $0x854] sm:$0xf] }
 0x3d2   : > { %v3045_v28 = vpop.f32.mrf.mxu3 }
 0x3d3   : > { %v3046_v48 = vadd.f32 %v3045_v28, %v3026_v45  ;;  %v3084_v45 = vmul.f32 0.2, %v3068_v49  ;;  %vm3076_vm1 = vcmp.ge.f32.partialorder %v3068_v49, 0.0 }
 0x3d4   : > { %v3009_v16 = vpop.f32.mrf.mxu1 }
 0x3d5   : > { %v3010_v24 = vadd.f32 %v3009_v16, %v2990_v21  ;;  %v3056_v31 = vadd.f32 %v3046_v48, %v2806_v23  ;;  %v3031_v2 = vpop.f32.mrf.mxu2  ;;  %v3092_v0 = vsel %vm3076_vm1, %v3068_v49, %v3084_v45  ;;  %v6897_v16 = vperm.slane %v2332_v3, 1  ;;  %v5251_v49 = vld [vmem:[#allocation5 + $0x860] sm:$0xf]  ;;  %v5253_v45 = vld [vmem:[#allocation5 + $0x868] sm:$0xf0] }
 0x3d6   : > { %v3105_v44 = vmul.f32 %v6886_v8, %v3092_v0  ;;  %v5260_v23 = vor.u32 %v5614_v36, %v5259_v53  ;;  %v5243_v0 = vld [vmem:[#allocation5 + $0x850] sm:$0xf]  ;;  %v5628_v53 = vld [vmem:[#allocation5 + $0x8e4] sm:$0xf0]  ;;  %v5627_v36 = vld [vmem:[#allocation5 + $0x8e4] sm:$0xf] }
 0x3d7   : > { %v3057_v26 = vadd.f32 %v3010_v24, %v2770_v12  ;;  %v3069_v63 = vadd.f32 %v6873_v1, %v3056_v31  ;;  %v5612_v24 = vld [vmem:[#allocation5 + $0x864] sm:$0xf0] }
 0x3d8   : > { %v3118_v48 = vadd.f32 %v6895_v37, %v3105_v44  ;;  %v5252_v13 = vor.u32 %v5612_v24, %v5251_v49 }
 0x3d9   : > { %v3070_v30 = vadd.f32 %v6861_v33, %v3057_v26  ;;  %v3085_v42 = vmul.f32 0.2, %v3069_v63  ;;  %vm3077_vm3 = vcmp.ge.f32.partialorder %v3069_v63, 0.0  ;;  %v5323_v26 = vld [vmem:[#allocation5 + $0x8f0] sm:$0xf] }
 0x3da   : > { %v3047_v51 = vpop.f32.mrf.mxu3 }
 0x3db   : > { %v3048_v17 = vadd.f32 %v3047_v51, %v3028_v43  ;;  %v3086_v29 = vmul.f32 0.2, %v3070_v30  ;;  %vm3078_vm4 = vcmp.ge.f32.partialorder %v3070_v30, 0.0  ;;  %v3093_v46 = vsel %vm3077_vm3, %v3069_v63, %v3085_v42 }
 0x3dc   : > { %v3012_v41 = vpop.f32.mrf.mxu1  ;;  %v6901_v43 = vperm.slane %v2334_v39, 1  ;;  %v3106_v10 = vmul.f32 %v6897_v16, %v3093_v46  ;;  %v5256_v39 = vor.u32 %v5611_v50, %v5253_v45  ;;  %v5606_v50 = vld [vmem:[#allocation5 + $0x834] sm:$0xf0]  ;;  %v5301_v45 = vld [vmem:[#allocation5 + $0x8c8] sm:$0xf0] }
 0x3dd   : > { %v3013_v52 = vadd.f32 %v3012_v41, %v2993_v15  ;;  %v3058_v21 = vadd.f32 %v3048_v17, %v2808_v54  ;;  %v3094_v15 = vsel %vm3078_vm4, %v3070_v30, %v3086_v29  ;;  %v3033_v31 = vpop.f32.mrf.mxu2  ;;  %v5630_v17 = vld [vmem:[#allocation5 + $0x8f4] sm:$0xf0]  ;;  %v5317_v29 = vld [vmem:[#allocation5 + $0x8e8] sm:$0xf0] }
 0x3de   : > { %v3107_v63 = vmul.f32 %v6886_v8, %v3094_v15  ;;  %v3119_v30 = vadd.f32 %v6901_v43, %v3106_v10  ;;  %v5227_v15 = vld [vmem:[#allocation5 + $0x830] sm:$0xf] }
 0x3df   : > { %v3059_v22 = vadd.f32 %v3013_v52, %v2773_v32  ;;  %v3071_v5 = vadd.f32 %v6873_v1, %v3058_v21  ;;  %v5245_v21 = vld [vmem:[#allocation5 + $0x858] sm:$0xf0] }
 0x3e1   : > { %v3072_v61 = vadd.f32 %v6861_v33, %v3059_v22  ;;  %v3087_v41 = vmul.f32 0.2, %v3071_v5  ;;  %vm3079_vm7 = vcmp.ge.f32.partialorder %v3071_v5, 0.0  ;;  %v5629_v22 = vld [vmem:[#allocation5 + $0x8f4] sm:$0xf] }
 0x3e2   : > { %v3050_v20 = vpop.f32.mrf.mxu3 }
 0x3e3   : > { %vm3080_vm2 = vcmp.ge.f32.partialorder %v3072_v61, 0.0  ;;  %v3088_v25 = vmul.f32 0.2, %v3072_v61  ;;  %v3051_v56 = vadd.f32 %v3050_v20, %v3031_v2  ;;  %v5325_v2 = vld [vmem:[#allocation5 + $0x8f8] sm:$0xf0]  ;;  %v3095_v20 = vsel %vm3079_vm7, %v3071_v5, %v3087_v41 }
 0x3e4   : > { %v3014_v14 = vpop.f32.mrf.mxu1  ;;  %v5237_v5 = vld [vmem:[#allocation5 + $0x848] sm:$0xf0] }
 0x3e5   : > { %v3096_v28 = vsel %vm3080_vm2, %v3072_v61, %v3088_v25  ;;  %v3060_v35 = vadd.f32 %v3051_v56, %v2811_v34  ;;  %v3015_v60 = vadd.f32 %v3014_v14, %v2995_v47  ;;  %v5324_v25 = vor.u32 %v5630_v17, %v5323_v26  ;;  %v5315_v47 = vld [vmem:[#allocation5 + $0x8e0] sm:$0xf]  ;;  %v5604_v17 = vld [vmem:[#allocation5 + $0x824] sm:$0xf0] }
 0x3e6   : > { %v3109_v11 = vmul.f32 %v6886_v8, %v3096_v28  ;;  %v5328_v56 = vor.u32 %v5629_v22, %v5325_v2  ;;  %v5244_v28 = vor.u32 %v5610_v57, %v5243_v0  ;;  %v5316_v46 = vor.u32 %v5628_v53, %v5315_v47  ;;  %v5291_v2 = vld [vmem:[#allocation5 + $0x8b0] sm:$0xf]  ;;  %v5601_v57 = vld [vmem:[#allocation5 + $0x814] sm:$0xf]  ;;  %v5619_v47 = vld [vmem:[#allocation5 + $0x8a4] sm:$0xf] }
 0x3e7   : > { %v3073_v18 = vadd.f32 %v6873_v1, %v3060_v35  ;;  %v3061_v6 = vadd.f32 %v3015_v60, %v2775_v38  ;;  %v3120_v38 = vadd.f32 %v6895_v37, %v3107_v63  ;;  %v5248_v35 = vor.u32 %v5609_v19, %v5245_v21  ;;  %v5235_v60 = vld [vmem:[#allocation5 + $0x840] sm:$0xf]  ;;  %v5603_v63 = vld [vmem:[#allocation5 + $0x824] sm:$0xf]  ;;  %v5213_v19 = vld [vmem:[#allocation5 + $0x818] sm:$0xf0] }
 0x3e8   : > { %v3122_v9 = vadd.f32 %v6895_v37, %v3109_v11  ;;  %v5236_v49 = vor.u32 %v5608_v59, %v5235_v60  ;;  %v5240_v24 = vor.u32 %v5607_v7, %v5237_v5  ;;  %v5203_v53 = vld [vmem:[#allocation5 + $0x800] sm:$0xf]  ;;  %v5275_v60 = vld [vmem:[#allocation5 + $0x890] sm:$0xf]  ;;  %v5277_v59 = vld [vmem:[#allocation5 + $0x898] sm:$0xf0] }
 0x3e9   : > { %vm3081_vm5 = vcmp.ge.f32.partialorder %v3073_v18, 0.0  ;;  %v3089_v51 = vmul.f32 0.2, %v3073_v18  ;;  %v3074_v12 = vadd.f32 %v6861_v33, %v3061_v6  ;;  %v5307_v6 = vld [vmem:[#allocation5 + $0x8d0] sm:$0xf] }
 0x3ea   : > { %v3052_v32 = vpop.f32.mrf.mxu3  ;;  %v3233_v3 = vpack.c.bf16 %v3122_v9, %v3118_v48  ;;  %v5626_v9 = vld [vmem:[#allocation5 + $0x8d4] sm:$0xf0] }
 0x3eb   : > { %v3097_v52 = vsel %vm3081_vm5, %v3073_v18, %v3089_v51  ;;  %vm3082_vm6 = vcmp.ge.f32.partialorder %v3074_v12, 0.0  ;;  %v3090_v40 = vmul.f32 0.2, %v3074_v12  ;;  %v3053_v4 = vadd.f32 %v3052_v32, %v3033_v31  ;;  %v5605_v31 = vld [vmem:[#allocation5 + $0x834] sm:$0xf] }
 0x3ec   : > { %v3110_v33 = vmul.f32 %v6897_v16, %v3097_v52  ;;  %3403 = vmatmul.bf16.vlgmr.msrb.gmra.mxu0 %v3233_v3  ;;  %3431 = vmatmul.bf16.vlgmr.msra.gmra.mxu2 %v3233_v3  ;;  %v5320_v18 = vor.u32 %v5627_v36, %v5317_v29  ;;  %v5308_v10 = vor.u32 %v5626_v9, %v5307_v6  ;;  %v5624_v32 = vld [vmem:[#allocation5 + $0x8c4] sm:$0xf0]  ;;  %v5623_v3 = vld [vmem:[#allocation5 + $0x8c4] sm:$0xf]  ;;  %v5269_v9 = vld [vmem:[#allocation5 + $0x888] sm:$0xf0] }
 0x3ed   : > { %v3098_v54 = vsel %vm3082_vm6, %v3074_v12, %v3090_v40  ;;  %v3062_v27 = vadd.f32 %v3053_v4, %v2813_v55  ;;  %3829 = vmatpush.bf16.msrb.mxu0 %v5260_v23  ;;  %3857 = vmatpush.bf16.msra.mxu2 %v5264_v58  ;;  %v5625_v23 = vld [vmem:[#allocation5 + $0x8d4] sm:$0xf]  ;;  %v5309_v58 = vld [vmem:[#allocation5 + $0x8d8] sm:$0xf0]  ;;  %v5228_v52 = vor.u32 %v5606_v50, %v5227_v15  ;;  %v5219_v4 = vld [vmem:[#allocation5 + $0x820] sm:$0xf] }
 0x3ee   : > { %v3123_v61 = vadd.f32 %v6901_v43, %v3110_v33  ;;  %v3111_v34 = vmul.f32 %v6886_v8, %v3098_v54  ;;  %v5229_v55 = vld [vmem:[#allocation5 + $0x838] sm:$0xf0]  ;;  %v5312_v41 = vor.u32 %v5625_v23, %v5309_v58  ;;  %v5221_v33 = vld [vmem:[#allocation5 + $0x828] sm:$0xf0]  ;;  %v5304_v22 = vor.u32 %v5623_v3, %v5301_v45  ;;  %v5622_v54 = vld [vmem:[#allocation5 + $0x8b4] sm:$0xf0] }
 0x3ef   : > { %v3075_v42 = vadd.f32 %v6873_v1, %v3062_v27  ;;  %v3108_v1 = vmul.f32 %v6897_v16, %v3095_v20  ;;  %v5232_v40 = vor.u32 %v5605_v31, %v5229_v55  ;;  %v5621_v27 = vld [vmem:[#allocation5 + $0x8b4] sm:$0xf]  ;;  %v5220_v0 = vor.u32 %v5604_v17, %v5219_v4  ;;  %v5600_v36 = vld [vmem:[#allocation5 + $0x804] sm:$0xf0]  ;;  %v5599_v29 = vld [vmem:[#allocation5 + $0x804] sm:$0xf] }
 0x3f0   : > { %v3124_v44 = vadd.f32 %v6895_v37, %v3111_v34  ;;  %v3234_v14 = vpack.c.bf16 %v3123_v61, %v3119_v30  ;;  %v5224_v30 = vor.u32 %v5603_v63, %v5221_v33  ;;  %v5211_v61 = vld [vmem:[#allocation5 + $0x810] sm:$0xf]  ;;  %v5602_v34 = vld [vmem:[#allocation5 + $0x814] sm:$0xf0]  ;;  %v5292_v21 = vor.u32 %v5622_v54, %v5291_v2  ;;  %v5616_v6 = vld [vmem:[#allocation5 + $0x884] sm:$0xf0] }
 0x3f1   : > { %vm3083_vm8 = vcmp.ge.f32.partialorder %v3075_v42, 0.0  ;;  %v3091_v8 = vmul.f32 0.2, %v3075_v42  ;;  %3830 = vmatpush.bf16.msrb.mxu0 %v5252_v13  ;;  %3858 = vmatpush.bf16.msra.mxu2 %v5256_v39  ;;  %v3121_v51 = vadd.f32 %v6901_v43, %v3108_v1  ;;  %v5293_v39 = vld [vmem:[#allocation5 + $0x8b8] sm:$0xf0]  ;;  %v5204_v7 = vor.u32 %v5600_v36, %v5203_v53 }
 0x3f2   : > { %3417 = vmatmul.bf16.vlgmr.msrb.gmra.mxu1 %v3234_v14  ;;  %3445 = vmatmul.bf16.vlgmr.msra.gmra.mxu3 %v3234_v14  ;;  %v6919_v11 = vpack.c.bf16 %v3124_v44, %v3120_v38  ;;  %v5296_v20 = vor.u32 %v5621_v27, %v5293_v39  ;;  %v5212_v44 = vor.u32 %v5602_v34, %v5211_v61  ;;  %v5618_v1 = vld [vmem:[#allocation5 + $0x894] sm:$0xf0] }
 0x3f3   : > { %v3099_v37 = vsel %vm3083_vm8, %v3075_v42, %v3091_v8  ;;  %3843 = vmatpush.bf16.msrb.mxu1 %v5324_v25  ;;  %3871 = vmatpush.bf16.msra.mxu3 %v5328_v56  ;;  %v5283_v42 = vld [vmem:[#allocation5 + $0x8a0] sm:$0xf]  ;;  %v3232_v25 = vpack.c.bf16 %v3121_v51, %v5824_v62  ;;  %v5620_v56 = vld [vmem:[#allocation5 + $0x8a4] sm:$0xf0]  ;;  %v5216_v14 = vor.u32 %v5601_v57, %v5213_v19  ;;  %v5205_v8 = vld [vmem:[#allocation5 + $0x808] sm:$0xf0] }
 0x3f4   : > { %v3112_v48 = vmul.f32 %v6897_v16, %v3099_v37  ;;  %v5299_v16 = vld [vmem:[#allocation5 + $0x8c0] sm:$0xf]  ;;  %v5208_v5 = vor.u32 %v5599_v29, %v5205_v8  ;;  %v5276_v37 = vor.u32 %v5618_v1, %v5275_v60 }
 0x3f5   : > { %3831 = vmatpush.bf16.msrb.mxu0 %v5244_v28  ;;  %3859 = vmatpush.bf16.msra.mxu2 %v5248_v35  ;;  %v5300_v13 = vor.u32 %v5624_v32, %v5299_v16  ;;  %v5284_v28 = vor.u32 %v5620_v56, %v5283_v42 }
 0x3f6   : > { %v3125_v12 = vadd.f32 %v6901_v43, %v3112_v48  ;;  %v3231_v43 = vpack.c.bf16 %v3120_v38, %v5824_v62  ;;  %v5285_v38 = vld [vmem:[#allocation5 + $0x8a8] sm:$0xf0]  ;;  %v5617_v62 = vld [vmem:[#allocation5 + $0x894] sm:$0xf]  ;;  %v5615_v48 = vld [vmem:[#allocation5 + $0x884] sm:$0xf] }
 0x3f7   : > { %3844 = vmatpush.bf16.msrb.mxu1 %v5316_v46  ;;  %3872 = vmatpush.bf16.msra.mxu3 %v5320_v18  ;;  %v5288_v35 = vor.u32 %v5619_v47, %v5285_v38  ;;  %v5280_v46 = vor.u32 %v5617_v62, %v5277_v59  ;;  %v5267_v18 = vld [vmem:[#allocation5 + $0x880] sm:$0xf]  ;;  %v5272_v58 = vor.u32 %v5615_v48, %v5269_v9 }
 0x3f8   : > { %v6924_v26 = vpack.c.bf16 %v3125_v12, %v3121_v51  ;;  %v5268_v23 = vor.u32 %v5616_v6, %v5267_v18 }
 0x3f9   : > { %3832 = vmatpush.bf16.msrb.mxu0 %v5236_v49  ;;  %3860 = vmatpush.bf16.msra.mxu2 %v5240_v24 }
 0x3fb   : > { %3845 = vmatpush.bf16.msrb.mxu1 %v5308_v10  ;;  %3873 = vmatpush.bf16.msra.mxu3 %v5312_v41 }
 0x3fc   : > { %3619 = vmatmul.bf16.vlgmr.msra.gmra.mxu0 %v3231_v43  ;;  %3647 = vmatmul.bf16.vlgmr.msrb.gmra.mxu2 %v3231_v43  ;;  %v3226_v43 = vld [vmem:[#allocation7 + $0x11] ss:$8 sm:$0x3] }
 0x3fd   : > { %3833 = vmatpush.bf16.msrb.mxu0 %v5228_v52  ;;  %3861 = vmatpush.bf16.msra.mxu2 %v5232_v40  ;;  %v3891_v57 = vperm.slane %v3226_v43, 1 }
 0x3ff   : > { %3846 = vmatpush.bf16.msrb.mxu1 %v5300_v13  ;;  %3874 = vmatpush.bf16.msra.mxu3 %v5304_v22  ;;  %v3890_v13 = vperm.slane %v3226_v43, 0 }
 0x401   : > { %3834 = vmatpush.bf16.msrb.mxu0 %v5220_v0  ;;  %3862 = vmatpush.bf16.msra.mxu2 %v5224_v30  ;;  %v3228_v30 = vld [vmem:[#allocation7 + $0x12] ss:$8 sm:$0x3] }
 0x402   : > { %3633 = vmatmul.bf16.vlgmr.msra.gmra.mxu1 %v3232_v25  ;;  %3661 = vmatmul.bf16.vlgmr.msrb.gmra.mxu3 %v3232_v25  ;;  %v3911_v56 = vperm.slane %v3228_v30, 0 }
 0x403   : > { %3847 = vmatpush.bf16.msrb.mxu1 %v5292_v21  ;;  %3875 = vmatpush.bf16.msra.mxu3 %v5296_v20 }
 0x405   : > { %3835 = vmatpush.bf16.msrb.mxu0 %v5212_v44  ;;  %3863 = vmatpush.bf16.msra.mxu2 %v5216_v14  ;;  %v3230_v14 = vld [vmem:[#allocation7 + $0x13] ss:$8 sm:$0x3] }
 0x406   : > { %v3920_v1 = vperm.slane %v3230_v14, 0  ;;  %v3921_v18 = vperm.slane %v3230_v14, 1 }
 0x407   : > { %3848 = vmatpush.bf16.msrb.mxu1 %v5284_v28  ;;  %3876 = vmatpush.bf16.msra.mxu3 %v5288_v35  ;;  %v3912_v35 = vperm.slane %v3228_v30, 1 }
 0x409   : > { %3836 = vmatpush.bf16.msrb.mxu0 %v5204_v7  ;;  %3864 = vmatpush.bf16.msra.mxu2 %v5208_v5  ;;  %v3929_v7 = vld [vmem:[#allocation7 + $0x14] ss:$8 sm:$0x3] }
 0x40b   : > { %3849 = vmatpush.bf16.msrb.mxu1 %v5276_v37  ;;  %3877 = vmatpush.bf16.msra.mxu3 %v5280_v46 }
 0x40c   : > { %3837 = vmatmul.bf16.vlgmr.msrb.gmra.mxu0 %v6919_v11  ;;  %3865 = vmatmul.bf16.vlgmr.msra.gmra.mxu2 %v6919_v11 }
 0x40f   : > { %3850 = vmatpush.bf16.msrb.mxu1 %v5268_v23  ;;  %3878 = vmatpush.bf16.msra.mxu3 %v5272_v58 }
 0x412   : > { %3851 = vmatmul.bf16.vlgmr.msrb.gmra.mxu1 %v6924_v26  ;;  %3879 = vmatmul.bf16.vlgmr.msra.gmra.mxu3 %v6924_v26 }
 0x469   : > { %v3404_v49 = vpop.f32.mrf.mxu0 }
 0x46f   : > { %v3418_v24 = vpop.f32.mrf.mxu1  ;;  %v3432_v15 = vpop.f32.mrf.mxu2 }
 0x470   : > { %v3419_v52 = vadd.f32 %v3418_v24, %v3404_v49  ;;  %v3931_v49 = vperm.slane %v3929_v7, 0  ;;  %v3932_v24 = vperm.slane %v3929_v7, 1 }
 0x471   : > { %v3406_v51 = vpop.f32.mrf.mxu0 }
 0x475   : > { %v3446_v12 = vpop.f32.mrf.mxu3 }
 0x476   : > { %v3447_v22 = vadd.f32 %v3446_v12, %v3432_v15 }
 0x477   : > { %v3420_v50 = vpop.f32.mrf.mxu1  ;;  %v3434_v31 = vpop.f32.mrf.mxu2 }
 0x478   : > { %v3421_v54 = vadd.f32 %v3420_v50, %v3406_v51 }
 0x479   : > { %v3620_v55 = vpop.f32.mrf.mxu0 }
 0x47a   : > { %v3621_v26 = vadd.f32 %v3620_v55, %v3419_v52 }
 0x47d   : > { %v3448_v10 = vpop.f32.mrf.mxu3 }
 0x47e   : > { %v3449_v36 = vadd.f32 %v3448_v10, %v3434_v31 }
 0x47f   : > { %v3634_v41 = vpop.f32.mrf.mxu1  ;;  %v3648_v16 = vpop.f32.mrf.mxu2 }
 0x480   : > { %v3635_v63 = vadd.f32 %v3634_v41, %v3621_v26  ;;  %v3649_v39 = vadd.f32 %v3648_v16, %v3447_v22  ;;  %v3941_v16 = vld [vmem:[#allocation7 + $0x15] ss:$8 sm:$0x3] }
 0x481   : > { %v3622_v32 = vpop.f32.mrf.mxu0  ;;  %v3943_v52 = vperm.slane %v3941_v16, 0 }
 0x482   : > { %v3623_v61 = vadd.f32 %v3622_v32, %v3421_v54 }
 0x485   : > { %v3662_v3 = vpop.f32.mrf.mxu3 }
 0x486   : > { %v3663_v19 = vadd.f32 %v3662_v3, %v3649_v39 }
 0x487   : > { %v3636_v11 = vpop.f32.mrf.mxu1  ;;  %v3650_v45 = vpop.f32.mrf.mxu2 }
 0x488   : > { %v3637_v47 = vadd.f32 %v3636_v11, %v3623_v61  ;;  %v3651_v28 = vadd.f32 %v3650_v45, %v3449_v36 }
 0x489   : > { %v3838_v40 = vpop.f32.mrf.mxu0 }
 0x48d   : > { %v3664_v4 = vpop.f32.mrf.mxu3 }
 0x48e   : > { %v3665_v5 = vadd.f32 %v3664_v4, %v3651_v28 }
 0x48f   : > { %v3852_v17 = vpop.f32.mrf.mxu1  ;;  %v3866_v27 = vpop.f32.mrf.mxu2 }
 0x490   : > { %v3853_v33 = vadd.f32 %v3852_v17, %v3838_v40  ;;  %v3944_v40 = vperm.slane %v3941_v16, 1 }
 0x491   : > { %v3840_v42 = vpop.f32.mrf.mxu0 }
 0x492   : > { %v3885_v2 = vadd.f32 %v3853_v33, %v3635_v63  ;;  %v3953_v33 = vld [vmem:[#allocation7 + $0x16] ss:$0 sm:$0xff] }
 0x494   : > { %v3894_v0 = vadd.f32 %v3890_v13, %v3885_v2 }
 0x495   : > { %v3880_v34 = vpop.f32.mrf.mxu3 }
 0x496   : > { %vm3898_vm9 = vcmp.ge.f32.partialorder %v3894_v0, 0.0  ;;  %v3902_v21 = vmul.f32 0.2, %v3894_v0  ;;  %v3881_v20 = vadd.f32 %v3880_v34, %v3866_v27 }
 0x497   : > { %v3854_v25 = vpop.f32.mrf.mxu1  ;;  %v3868_v37 = vpop.f32.mrf.mxu2 }
 0x498   : > { %v3886_v38 = vadd.f32 %v3881_v20, %v3663_v19  ;;  %v3855_v44 = vadd.f32 %v3854_v25, %v3840_v42  ;;  %v3906_v53 = vsel %vm3898_vm9, %v3894_v0, %v3902_v21 }
 0x499   : > { %v3915_v60 = vmul.f32 %v3911_v56, %v3906_v53 }
 0x49a   : > { %v3895_v29 = vadd.f32 %v3891_v57, %v3886_v38  ;;  %v3887_v8 = vadd.f32 %v3855_v44, %v3637_v47 }
 0x49b   : > { %v3924_v58 = vadd.f32 %v3920_v1, %v3915_v60 }
 0x49c   : > { %vm3899_vm10 = vcmp.ge.f32.partialorder %v3895_v29, 0.0  ;;  %v3903_v62 = vmul.f32 0.2, %v3895_v29  ;;  %v3896_v59 = vadd.f32 %v3890_v13, %v3887_v8 }
 0x49d   : > { %v3882_v46 = vpop.f32.mrf.mxu3  ;;  %v3935_v31 = vmul.f32 %v3931_v49, %v3924_v58 }
 0x49e   : > { %vm3900_vm11 = vcmp.ge.f32.partialorder %v3896_v59, 0.0  ;;  %v3904_v6 = vmul.f32 0.2, %v3896_v59  ;;  %v3883_v48 = vadd.f32 %v3882_v46, %v3868_v37  ;;  %v3907_v9 = vsel %vm3899_vm10, %v3895_v29, %v3903_v62 }
 0x49f   : > { %v3916_v23 = vmul.f32 %v3912_v35, %v3907_v9 }
 0x4a0   : > { %v3888_v15 = vadd.f32 %v3883_v48, %v3665_v5  ;;  %v3908_v51 = vsel %vm3900_vm11, %v3896_v59, %v3904_v6 }
 0x4a1   : > { %v3925_v12 = vadd.f32 %v3921_v18, %v3916_v23  ;;  %v3917_v10 = vmul.f32 %v3911_v56, %v3908_v51 }
 0x4a2   : > { %v3897_v50 = vadd.f32 %v3891_v57, %v3888_v15 }
 0x4a3   : > { %v3936_v55 = vmul.f32 %v3932_v24, %v3925_v12  ;;  %v3926_v45 = vadd.f32 %v3920_v1, %v3917_v10 }
 0x4a4   : > { %vm3901_vm12 = vcmp.ge.f32.partialorder %v3897_v50, 0.0  ;;  %v3905_v41 = vmul.f32 0.2, %v3897_v50 }
 0x4a5   : > { %v3937_v32 = vadd.f32 %v3936_v55, %v3935_v31  ;;  %v3947_v43 = vmul.f32 %v3943_v52, %v3926_v45 }
 0x4a6   : > { %v3909_v3 = vsel %vm3901_vm12, %v3897_v50, %v3905_v41 }
 0x4a7   : > { %3938 = vadd.xlane.f32.xlu0 %v3937_v32  ;;  %v3918_v11 = vmul.f32 %v3912_v35, %v3909_v3 }
 0x4a9   : > { %v3927_v4 = vadd.f32 %v3921_v18, %v3918_v11 }
 0x4ab   : > { %v3948_v26 = vmul.f32 %v3944_v40, %v3927_v4 }
 0x4ad   : > { %v3949_v17 = vadd.f32 %v3948_v26, %v3947_v43 }
 0x4af   : > { %3950 = vadd.xlane.f32.xlu0 %v3949_v17 }
 0x51a   : > { %v3939_v63 = vpop.xlane.xlu0 %3938 }
 0x522   : > { %v3951_v13 = vpop.xlane.xlu0 %3950 }
 0x523   : > { %v3952_v22 = vadd.f32 %v3951_v13, %v3939_v63 }
 0x525   : > { %v3954_v2 = vadd.f32 %v3953_v33, %v3952_v22 }
 0x527   : > { %v3955_v54 = vsub.f32 0.0, %v3954_v2 }
 0x529   : > { %v3956_v27 = vmul.f32 1.442695, %v3955_v54 }
 0x52b   : > { %5691 = vpow2.f32 %v3956_v27 }
 0x531   : > { %v5692_v39 = vpop.eup %5691 }
 0x532   : > { %v3958_v0 = vadd.f32 1.0, %v5692_v39 }
 0x534   : > { %5693 = vrcp.f32 %v3958_v0  ;;  %v3970_v57 = vand.u32 2147483648, %v3958_v0  ;;  %v3968_v21 = vand.u32 2147483647, %v3958_v0  ;;  %vm3964_vm14 = vweird.f32 %v3958_v0 }
 0x536   : > { %v3971_v42 = vor.u32 1.1754944e-38, %v3970_v57  ;;  %vm3969_vm1 = vcmp.eq.f32.partialorder %v3968_v21, 8.507059e+37 }
 0x53a   : > { %v5694_v30 = vpop.eup %5693 }
 0x53b   : > { %v3960_v61 = vmul.f32 %v5694_v30, %v3958_v0  ;;  %vm3965_vm13 = vweird.f32 %v5694_v30 }
 0x53c   : > { %vm3966_vm0 = vmor %vm3964_vm14, %vm3965_vm13 }
 0x53d   : > { %v3961_v34 = vsub.f32 1.0, %v3960_v61 }
 0x53f   : > { %v3962_v19 = vmul.f32 %v5694_v30, %v3961_v34 }
 0x541   : > { %v3963_v20 = vadd.f32 %v5694_v30, %v3962_v19 }
 0x543   : > { %v3967_v25 = vsel %vm3966_vm0, %v5694_v30, %v3963_v20 }
 0x544   : > { %v3972_v56 = vsel %vm3969_vm1, %v3971_v42, %v3967_v25 }
 0x545   : > { %3975 = vst.msk [vmem:[%s404_s10] sm:$0xff] %vm3974_vm15, %v3972_v56 }
 0x546 PF: > { %p13_p12 = scmp.ge.s32.totalorder %s5869_s19, 4   ;;  %s6955_s15 = smov %s5811_s16 }
 0x547   : > { %s6956_s16 = smov %s5879_s22  ;;  %s6957_s17 = smov %s5869_s19 }
 0x548   :  { %15 = sbr.rel (!%p13_p12) target bundleno = 3 (0x3), region = 145 }
 0x54d   :  { %3995 = vsyncpa [#allocation4], 1 }
 0x54e   :  { %3997 = vsyncpa [#allocation4 + $0x1], 1 }
 0x54f   :  { %3998 = vsyncpa [#allocation6], 1 }

</bundles_post_ra>
